<compile_context>
chip_gen: v7x
topology: tpu7x:2x2x1
jax: 0.10.0
libtpu: 0.0.40
codegen_flags: <defaults>
</compile_context>

<pallas_src>
import math
import functools

import jax
import jax.numpy as jnp
from jax.experimental import pallas as pl
from jax.experimental.pallas import tpu as pltpu


# ----------------------------------------------------------------------------
# Fused Pallas kernel: the full TransformerEncoder stack for one batch tile.
# ----------------------------------------------------------------------------
def fused_encoder_kernel(tok_ref,
                         wqkv_ref, bqkv_ref, wo_ref, bo_ref,
                         g1_ref, beta1_ref,
                         wf1_ref, bf1_ref, wf2_ref, bf2_ref,
                         g2_ref, beta2_ref,
                         out_ref, *, num_heads):
    TB, S, D = tok_ref.shape
    L = wqkv_ref.shape[0]
    H = num_heads
    hd = D // H
    N = TB * S

    # One [TB*S, D] activation slab feeds every weight matmul.
    x = tok_ref[...].astype(jnp.float32).reshape(N, D)

    for l in range(L):                     # layers: statically unrolled
        # ---- fused QKV projection: single MXU matmul + single bias add ----
        # (1/sqrt(hd) is pre-folded into the Q columns of wqkv / bqkv.)
        qkv = jnp.dot(x.astype(jnp.bfloat16), wqkv_ref[l],
                      preferred_element_type=jnp.float32) + bqkv_ref[l]

        # Heads via reshape of the fused result (lane slices at D-aligned
        # offsets), merged (TB*H) leading batch dim for the attention einsums.
        def heads(t):
            return (t.reshape(TB, S, H, hd)
                     .transpose(0, 2, 1, 3)
                     .reshape(TB * H, S, hd))

        qh = heads(qkv[:, :D]).astype(jnp.bfloat16)
        kh = heads(qkv[:, D:2 * D]).astype(jnp.bfloat16)
        vh = heads(qkv[:, 2 * D:]).astype(jnp.bfloat16)

        # ---- scaled-dot-product attention (scale already folded into Q) ----
        s = jnp.einsum('bqd,bkd->bqk', qh, kh,
                       preferred_element_type=jnp.float32)
        s = s - jnp.max(s, axis=-1, keepdims=True)
        p = jnp.exp(s)
        p = p * pl.reciprocal(jnp.sum(p, axis=-1, keepdims=True), approx=True)
        o = jnp.einsum('bqk,bkd->bqd', p.astype(jnp.bfloat16), vh,
                       preferred_element_type=jnp.float32)

        # Back to one [N, D] slab (heads concatenated along features), then a
        # single full-width output projection.
        o = (o.reshape(TB, H, S, hd)
              .transpose(0, 2, 1, 3)
              .reshape(N, D))
        attn = jnp.dot(o.astype(jnp.bfloat16), wo_ref[l],
                       preferred_element_type=jnp.float32) + bo_ref[l]

        # ---- residual + LayerNorm 1 (post-norm, eps = 1e-5), f32 math ----
        y = x + attn
        mu = jnp.mean(y, axis=-1, keepdims=True)
        var = jnp.mean(jnp.square(y - mu), axis=-1, keepdims=True)
        y = (y - mu) * jax.lax.rsqrt(var + 1e-5) * g1_ref[l] + beta1_ref[l]

        # ---- feed-forward (ReLU, dim_feedforward = 4*D) ----
        f = jnp.dot(y.astype(jnp.bfloat16), wf1_ref[l],
                    preferred_element_type=jnp.float32) + bf1_ref[l]
        f = jnp.maximum(f, 0.0)
        f = jnp.dot(f.astype(jnp.bfloat16), wf2_ref[l],
                    preferred_element_type=jnp.float32) + bf2_ref[l]

        # ---- residual + LayerNorm 2 ----
        z = y + f
        mu2 = jnp.mean(z, axis=-1, keepdims=True)
        var2 = jnp.mean(jnp.square(z - mu2), axis=-1, keepdims=True)
        x = (z - mu2) * jax.lax.rsqrt(var2 + 1e-5) * g2_ref[l] + beta2_ref[l]

    out_ref[...] = x.reshape(TB, S, D).astype(out_ref.dtype)


def fused_encoder(tokens, stacked_layers, num_heads, tile_b=1):
    """tokens: [B, S, D] -> [B, S, D].

    Grid over batch tiles marked "parallel" (v7x megacore gets half the
    tokens per TensorCore); stacked layer weights use constant index maps so
    they stay VMEM-resident and are not re-DMA'd between grid steps.
    """
    B, S, D = tokens.shape
    assert B % tile_b == 0
    grid = (B // tile_b,)

    tok_spec = pl.BlockSpec((tile_b, S, D), lambda b: (b, 0, 0))
    out_spec = pl.BlockSpec((tile_b, S, D), lambda b: (b, 0, 0))

    def resident(arr):                      # whole array, constant block index
        nd = arr.ndim
        return pl.BlockSpec(arr.shape, lambda b, _nd=nd: (0,) * _nd)

    weight_specs = [resident(w) for w in stacked_layers]

    return pl.pallas_call(
        functools.partial(fused_encoder_kernel, num_heads=num_heads),
        out_shape=jax.ShapeDtypeStruct((B, S, D), tokens.dtype),
        grid_spec=pltpu.PrefetchScalarGridSpec(
            num_scalar_prefetch=0,
            grid=grid,
            in_specs=[tok_spec] + weight_specs,
            out_specs=out_spec,
        ),
        compiler_params=pltpu.CompilerParams(
            dimension_semantics=("parallel",),
        ),
    )(tokens, *stacked_layers)


# ----------------------------------------------------------------------------
# Parameter construction (deterministic, synthetic) + host-side weight stacking
# ----------------------------------------------------------------------------
def make_pos_encoding(total_len, dim):
    position = jnp.arange(total_len, dtype=jnp.float32)[:, None]
    div_term = jnp.exp(jnp.arange(0, dim, 2, dtype=jnp.float32)
                       * (-math.log(10000.0) / dim))
    pe = jnp.zeros((total_len, dim), dtype=jnp.float32)
    pe = pe.at[:, 0::2].set(jnp.sin(position * div_term))
    pe = pe.at[:, 1::2].set(jnp.cos(position * div_term))
    return pe


def stack_layer_params(layers, num_heads):
    """Stack per-layer weights along a leading L axis; matmul weights are cast
    to bfloat16, 1/sqrt(head_dim) is folded into the Q projection, biases and
    LayerNorm params stay f32.

    NOTE: weights here use right-multiplication layout (x @ W). If real
    PyTorch nn.TransformerEncoderLayer weights are ever loaded, transpose
    in_proj_weight / out_proj.weight / linear weights first.
    """
    D = layers[0][0].shape[0]
    hd = D // num_heads
    scale = 1.0 / math.sqrt(hd)

    cols = [[] for _ in range(12)]
    for (wqkv, bqkv, wout, bout, g1, beta1, w1, b1, w2, b2, g2, beta2) in layers:
        wqkv_s = jnp.concatenate([wqkv[:, :D] * scale, wqkv[:, D:]], axis=1)
        bqkv_s = jnp.concatenate([bqkv[:, :D] * scale, bqkv[:, D:]], axis=1)
        entries = (
            wqkv_s.astype(jnp.bfloat16),   # wqkv [D, 3D]  (Q scale folded)
            bqkv_s,                        # bqkv [1, 3D]  f32
            wout.astype(jnp.bfloat16),     # wo   [D, D]
            bout,                          # bo   [1, D]
            g1, beta1,                     # LayerNorm1 [1, D]
            w1.astype(jnp.bfloat16), b1,   # FFN1 [D, 4D], [1, 4D]
            w2.astype(jnp.bfloat16), b2,   # FFN2 [4D, D], [1, D]
            g2, beta2,                     # LayerNorm2 [1, D]
        )
        for c, e in zip(cols, entries):
            c.append(e)
    return tuple(jnp.stack(c) for c in cols)


def init_params(key, input_dim, model_dim, num_heads, num_layers, total_len):
    D = model_dim
    scale = 0.02

    def nrm(k, shape):
        return scale * jax.random.normal(k, shape, dtype=jnp.float32)

    keys = jax.random.split(key, 8 + num_layers)
    layers = []
    for layer_idx in range(num_layers):
        lk = jax.random.split(keys[8 + layer_idx], 8)
        layers.append((
            nrm(lk[0], (D, 3 * D)),                 # Wqkv (columns = q|k|v)
            nrm(lk[1], (1, 3 * D)),                 # bqkv
            nrm(lk[2], (D, D)),                     # Wout (attn out_proj)
            nrm(lk[3], (1, D)),                     # bout
            jnp.ones((1, D), jnp.float32),          # LN1 gamma
            jnp.zeros((1, D), jnp.float32),         # LN1 beta
            nrm(lk[4], (D, 4 * D)),                 # FFN W1
            nrm(lk[5], (1, 4 * D)),                 # FFN b1
            nrm(lk[6], (4 * D, D)),                 # FFN W2
            nrm(lk[7], (1, D)),                     # FFN b2
            jnp.ones((1, D), jnp.float32),          # LN2 gamma
            jnp.zeros((1, D), jnp.float32),         # LN2 beta
        ))

    return {
        "input_proj": (nrm(keys[0], (input_dim, D)), nrm(keys[1], (1, D))),
        "time_embed": (nrm(keys[2], (1, D)), nrm(keys[3], (1, D)),
                       nrm(keys[4], (D, D)), nrm(keys[5], (1, D))),
        "output_proj": (nrm(keys[6], (D, input_dim)), nrm(keys[7], (1, input_dim))),
        "pe": make_pos_encoding(total_len, D),
        "stacked_layers": stack_layer_params(layers, num_heads),
    }


# ----------------------------------------------------------------------------
# Full forward pass (== ScoreTransformerNet.forward, eval mode), single jit.
# ----------------------------------------------------------------------------
@functools.partial(jax.jit, static_argnums=(4, 5))
def score_transformer_forward(params, x_t, x_history, t, history_len, num_heads):
    w_in, b_in = params["input_proj"]
    h_embed = x_history @ w_in + b_in                      # [B, Hl, D]
    x_embed = x_t @ w_in + b_in                            # [B, P, D]

    w_t1, b_t1, w_t2, b_t2 = params["time_embed"]
    te = t @ w_t1 + b_t1                                   # [B, D]
    te = jax.nn.gelu(te, approximate=False)                # exact GELU (nn.GELU default)
    te = te @ w_t2 + b_t2
    x_embed = x_embed + te[:, None, :]                     # broadcast over predict_len

    tokens = jnp.concatenate([h_embed, x_embed], axis=1)   # [B, Hl+P, D]
    tokens = tokens + params["pe"][None, :tokens.shape[1], :]

    encoded = fused_encoder(tokens, params["stacked_layers"], num_heads)

    future = encoded[:, history_len:, :]                   # [B, P, D]
    w_out, b_out = params["output_proj"]
    return future @ w_out + b_out                          # [B, P, input_dim]


# ----------------------------------------------------------------------------
if __name__ == "__main__":
    # small, module-consistent shapes
    B = 2
    input_dim = 1
    history_len = 8
    predict_len = 8
    model_dim = 128
    num_heads = 4
    num_layers = 2
    total_len = history_len + predict_len

    key = jax.random.PRNGKey(0)
    kp, kx, kh, kt = jax.random.split(key, 4)

    params = init_params(kp, input_dim, model_dim, num_heads, num_layers, total_len)

    x_t = jax.random.normal(kx, (B, predict_len, input_dim), dtype=jnp.float32)
    x_history = jax.random.normal(kh, (B, history_len, input_dim), dtype=jnp.float32)
    t = jax.random.uniform(kt, (B, 1), dtype=jnp.float32)

    score = score_transformer_forward(params, x_t, x_history, t,
                                      history_len, num_heads)
    score = jax.block_until_ready(score)

    assert score.shape == (B, predict_len, input_dim), score.shape
    assert bool(jnp.all(jnp.isfinite(score)))
    print("KERNEL_OK")
</pallas_src>

<mosaic_0001>
module attributes {stable_mosaic.version = 11 : i64} {
  func.func @fused_encoder_kernel(%arg0: i32, %arg1: memref<1x16x128xf32, #tpu.memory_space<vmem>>, %arg2: memref<2x128x384xbf16, #tpu.memory_space<vmem>>, %arg3: memref<2x1x384xf32, #tpu.memory_space<vmem>>, %arg4: memref<2x128x128xbf16, #tpu.memory_space<vmem>>, %arg5: memref<2x1x128xf32, #tpu.memory_space<vmem>>, %arg6: memref<2x1x128xf32, #tpu.memory_space<vmem>>, %arg7: memref<2x1x128xf32, #tpu.memory_space<vmem>>, %arg8: memref<2x128x512xbf16, #tpu.memory_space<vmem>>, %arg9: memref<2x1x512xf32, #tpu.memory_space<vmem>>, %arg10: memref<2x512x128xbf16, #tpu.memory_space<vmem>>, %arg11: memref<2x1x128xf32, #tpu.memory_space<vmem>>, %arg12: memref<2x1x128xf32, #tpu.memory_space<vmem>>, %arg13: memref<2x1x128xf32, #tpu.memory_space<vmem>>, %arg14: memref<1x16x128xf32, #tpu.memory_space<vmem>>) attributes {dimension_semantics = [#tpu.dimension_semantics<parallel>], iteration_bounds = array<i64: 2>, scalar_prefetch = 0 : i64, scratch_operands = 0 : i64, tpu.core_type = #tpu.core_type<tc>, window_params = [{transform_indices = @transform_0, window_bounds = array<i64: 1, 16, 128>}, {pipeline_mode = #tpu.pipeline_mode<synchronous>, transform_indices = @transform_1, window_bounds = array<i64: 2, 128, 384>}, {pipeline_mode = #tpu.pipeline_mode<synchronous>, transform_indices = @transform_2, window_bounds = array<i64: 2, 1, 384>}, {pipeline_mode = #tpu.pipeline_mode<synchronous>, transform_indices = @transform_3, window_bounds = array<i64: 2, 128, 128>}, {pipeline_mode = #tpu.pipeline_mode<synchronous>, transform_indices = @transform_4, window_bounds = array<i64: 2, 1, 128>}, {pipeline_mode = #tpu.pipeline_mode<synchronous>, transform_indices = @transform_5, window_bounds = array<i64: 2, 1, 128>}, {pipeline_mode = #tpu.pipeline_mode<synchronous>, transform_indices = @transform_6, window_bounds = array<i64: 2, 1, 128>}, {pipeline_mode = #tpu.pipeline_mode<synchronous>, transform_indices = @transform_7, window_bounds = array<i64: 2, 128, 512>}, {pipeline_mode = #tpu.pipeline_mode<synchronous>, transform_indices = @transform_8, window_bounds = array<i64: 2, 1, 512>}, {pipeline_mode = #tpu.pipeline_mode<synchronous>, transform_indices = @transform_9, window_bounds = array<i64: 2, 512, 128>}, {pipeline_mode = #tpu.pipeline_mode<synchronous>, transform_indices = @transform_10, window_bounds = array<i64: 2, 1, 128>}, {pipeline_mode = #tpu.pipeline_mode<synchronous>, transform_indices = @transform_11, window_bounds = array<i64: 2, 1, 128>}, {pipeline_mode = #tpu.pipeline_mode<synchronous>, transform_indices = @transform_12, window_bounds = array<i64: 2, 1, 128>}, {transform_indices = @transform_13, window_bounds = array<i64: 1, 16, 128>}]} {
    %c0 = arith.constant 0 : index
    %c0_0 = arith.constant 0 : index
    %c0_1 = arith.constant 0 : index
    %0 = vector.load %arg1[%c0, %c0_0, %c0_1] : memref<1x16x128xf32, #tpu.memory_space<vmem>>, vector<1x16x128xf32>
    %1 = vector.shape_cast %0 : vector<1x16x128xf32> to vector<16x128xf32>
    %2 = arith.truncf %1 : vector<16x128xf32> to vector<16x128xbf16>
    %c0_2 = arith.constant 0 : index
    %c0_3 = arith.constant 0 : index
    %c0_4 = arith.constant 0 : index
    %3 = vector.load %arg2[%c0_2, %c0_3, %c0_4] : memref<2x128x384xbf16, #tpu.memory_space<vmem>>, vector<1x128x384xbf16>
    %4 = vector.shape_cast %3 : vector<1x128x384xbf16> to vector<128x384xbf16>
    %cst = arith.constant dense<0.000000e+00> : vector<16x384xf32>
    %5 = tpu.matmul %2, %4, %cst {dimension_numbers = #tpu.dot_dimension_numbers<[1], [0], [0], [1], [0, 0, 1, 1], [], []>} : vector<16x128xbf16>, vector<128x384xbf16>, vector<16x384xf32> -> vector<16x384xf32>
    %c0_5 = arith.constant 0 : index
    %c0_6 = arith.constant 0 : index
    %c0_7 = arith.constant 0 : index
    %6 = vector.load %arg3[%c0_5, %c0_6, %c0_7] : memref<2x1x384xf32, #tpu.memory_space<vmem>>, vector<1x1x384xf32>
    %7 = vector.shape_cast %6 : vector<1x1x384xf32> to vector<1x384xf32>
    %8 = vector.broadcast %7 : vector<1x384xf32> to vector<16x384xf32>
    %9 = arith.addf %5, %8 : vector<16x384xf32>
    %10 = vector.extract_strided_slice %9 {offsets = [0, 0], sizes = [16, 128], strides = [1, 1]} : vector<16x384xf32> to vector<16x128xf32>
    %11 = vector.shape_cast %10 : vector<16x128xf32> to vector<1x16x4x32xf32>
    %12 = tpu.transpose %11, [0, 2, 1, 3] : vector<1x16x4x32xf32> -> vector<1x4x16x32xf32>
    %13 = vector.shape_cast %12 : vector<1x4x16x32xf32> to vector<4x16x32xf32>
    %14 = arith.truncf %13 : vector<4x16x32xf32> to vector<4x16x32xbf16>
    %15 = vector.extract_strided_slice %9 {offsets = [0, 128], sizes = [16, 128], strides = [1, 1]} : vector<16x384xf32> to vector<16x128xf32>
    %16 = vector.shape_cast %15 : vector<16x128xf32> to vector<1x16x4x32xf32>
    %17 = tpu.transpose %16, [0, 2, 1, 3] : vector<1x16x4x32xf32> -> vector<1x4x16x32xf32>
    %18 = vector.shape_cast %17 : vector<1x4x16x32xf32> to vector<4x16x32xf32>
    %19 = arith.truncf %18 : vector<4x16x32xf32> to vector<4x16x32xbf16>
    %20 = vector.extract_strided_slice %9 {offsets = [0, 256], sizes = [16, 128], strides = [1, 1]} : vector<16x384xf32> to vector<16x128xf32>
    %21 = vector.shape_cast %20 : vector<16x128xf32> to vector<1x16x4x32xf32>
    %22 = tpu.transpose %21, [0, 2, 1, 3] : vector<1x16x4x32xf32> -> vector<1x4x16x32xf32>
    %23 = vector.shape_cast %22 : vector<1x4x16x32xf32> to vector<4x16x32xf32>
    %24 = arith.truncf %23 : vector<4x16x32xf32> to vector<4x16x32xbf16>
    "tpu.trace_start"() <{level = 10 : i32, message = "bqd,bkd->bqk"}> : () -> ()
    %cst_8 = arith.constant dense<0.000000e+00> : vector<4x16x16xf32>
    %25 = tpu.matmul %14, %19, %cst_8 {dimension_numbers = #tpu.dot_dimension_numbers<[2], [2], [1], [1], [0, 0, 0, 1, 1, 1], [0], [0]>} : vector<4x16x32xbf16>, vector<4x16x32xbf16>, vector<4x16x16xf32> -> vector<4x16x16xf32>
    "tpu.trace_stop"() : () -> ()
    %cst_9 = arith.constant dense<0xFF800000> : vector<4x16xf32>
    %26 = vector.multi_reduction <maximumf>, %25, %cst_9 [2] : vector<4x16x16xf32> to vector<4x16xf32>
    %27 = vector.shape_cast %26 : vector<4x16xf32> to vector<4x16x1xf32>
    %28 = vector.broadcast %27 : vector<4x16x1xf32> to vector<4x16x16xf32>
    %29 = arith.subf %25, %28 : vector<4x16x16xf32>
    %30 = math.exp %29 : vector<4x16x16xf32>
    %cst_10 = arith.constant dense<0.000000e+00> : vector<4x16xf32>
    %31 = vector.multi_reduction <add>, %30, %cst_10 [2] : vector<4x16x16xf32> to vector<4x16xf32>
    %32 = vector.shape_cast %31 : vector<4x16xf32> to vector<4x16x1xf32>
    %33 = tpu.reciprocal %32 {approx = true} : vector<4x16x1xf32> -> vector<4x16x1xf32>
    %34 = vector.broadcast %33 : vector<4x16x1xf32> to vector<4x16x16xf32>
    %35 = arith.mulf %30, %34 : vector<4x16x16xf32>
    %36 = arith.truncf %35 : vector<4x16x16xf32> to vector<4x16x16xbf16>
    "tpu.trace_start"() <{level = 10 : i32, message = "bqk,bkd->bqd"}> : () -> ()
    %cst_11 = arith.constant dense<0.000000e+00> : vector<4x16x32xf32>
    %37 = tpu.matmul %36, %24, %cst_11 {dimension_numbers = #tpu.dot_dimension_numbers<[2], [1], [1], [2], [0, 0, 0, 1, 1, 2], [0], [0]>} : vector<4x16x16xbf16>, vector<4x16x32xbf16>, vector<4x16x32xf32> -> vector<4x16x32xf32>
    "tpu.trace_stop"() : () -> ()
    %38 = vector.shape_cast %37 : vector<4x16x32xf32> to vector<1x4x16x32xf32>
    %39 = tpu.transpose %38, [0, 2, 1, 3] : vector<1x4x16x32xf32> -> vector<1x16x4x32xf32>
    %40 = vector.shape_cast %39 : vector<1x16x4x32xf32> to vector<16x128xf32>
    %41 = arith.truncf %40 : vector<16x128xf32> to vector<16x128xbf16>
    %c0_12 = arith.constant 0 : index
    %c0_13 = arith.constant 0 : index
    %c0_14 = arith.constant 0 : index
    %42 = vector.load %arg4[%c0_12, %c0_13, %c0_14] : memref<2x128x128xbf16, #tpu.memory_space<vmem>>, vector<1x128x128xbf16>
    %43 = vector.shape_cast %42 : vector<1x128x128xbf16> to vector<128x128xbf16>
    %cst_15 = arith.constant dense<0.000000e+00> : vector<16x128xf32>
    %44 = tpu.matmul %41, %43, %cst_15 {dimension_numbers = #tpu.dot_dimension_numbers<[1], [0], [0], [1], [0, 0, 1, 1], [], []>} : vector<16x128xbf16>, vector<128x128xbf16>, vector<16x128xf32> -> vector<16x128xf32>
    %c0_16 = arith.constant 0 : index
    %c0_17 = arith.constant 0 : index
    %c0_18 = arith.constant 0 : index
    %45 = vector.load %arg5[%c0_16, %c0_17, %c0_18] : memref<2x1x128xf32, #tpu.memory_space<vmem>>, vector<1x1x128xf32>
    %46 = vector.shape_cast %45 : vector<1x1x128xf32> to vector<1x128xf32>
    %47 = vector.broadcast %46 : vector<1x128xf32> to vector<16x128xf32>
    %48 = arith.addf %44, %47 : vector<16x128xf32>
    %49 = arith.addf %1, %48 : vector<16x128xf32>
    %cst_19 = arith.constant dense<0.000000e+00> : vector<16xf32>
    %50 = vector.multi_reduction <add>, %49, %cst_19 [1] : vector<16x128xf32> to vector<16xf32>
    %51 = vector.shape_cast %50 : vector<16xf32> to vector<16x1xf32>
    %cst_20 = arith.constant 1.280000e+02 : f32
    %52 = vector.broadcast %cst_20 : f32 to vector<16x1xf32>
    %53 = arith.divf %51, %52 : vector<16x1xf32>
    %54 = vector.broadcast %53 : vector<16x1xf32> to vector<16x128xf32>
    %55 = arith.subf %49, %54 : vector<16x128xf32>
    %56 = arith.mulf %55, %55 : vector<16x128xf32>
    %cst_21 = arith.constant dense<0.000000e+00> : vector<16xf32>
    %57 = vector.multi_reduction <add>, %56, %cst_21 [1] : vector<16x128xf32> to vector<16xf32>
    %58 = vector.shape_cast %57 : vector<16xf32> to vector<16x1xf32>
    %cst_22 = arith.constant 1.280000e+02 : f32
    %59 = vector.broadcast %cst_22 : f32 to vector<16x1xf32>
    %60 = arith.divf %58, %59 : vector<16x1xf32>
    %61 = vector.broadcast %53 : vector<16x1xf32> to vector<16x128xf32>
    %62 = arith.subf %49, %61 : vector<16x128xf32>
    %cst_23 = arith.constant 9.99999974E-6 : f32
    %63 = vector.broadcast %cst_23 : f32 to vector<16x1xf32>
    %64 = arith.addf %60, %63 : vector<16x1xf32>
    %65 = math.rsqrt %64 : vector<16x1xf32>
    %66 = vector.broadcast %65 : vector<16x1xf32> to vector<16x128xf32>
    %67 = arith.mulf %62, %66 : vector<16x128xf32>
    %c0_24 = arith.constant 0 : index
    %c0_25 = arith.constant 0 : index
    %c0_26 = arith.constant 0 : index
    %68 = vector.load %arg6[%c0_24, %c0_25, %c0_26] : memref<2x1x128xf32, #tpu.memory_space<vmem>>, vector<1x1x128xf32>
    %69 = vector.shape_cast %68 : vector<1x1x128xf32> to vector<1x128xf32>
    %70 = vector.broadcast %69 : vector<1x128xf32> to vector<16x128xf32>
    %71 = arith.mulf %67, %70 : vector<16x128xf32>
    %c0_27 = arith.constant 0 : index
    %c0_28 = arith.constant 0 : index
    %c0_29 = arith.constant 0 : index
    %72 = vector.load %arg7[%c0_27, %c0_28, %c0_29] : memref<2x1x128xf32, #tpu.memory_space<vmem>>, vector<1x1x128xf32>
    %73 = vector.shape_cast %72 : vector<1x1x128xf32> to vector<1x128xf32>
    %74 = vector.broadcast %73 : vector<1x128xf32> to vector<16x128xf32>
    %75 = arith.addf %71, %74 : vector<16x128xf32>
    %76 = arith.truncf %75 : vector<16x128xf32> to vector<16x128xbf16>
    %c0_30 = arith.constant 0 : index
    %c0_31 = arith.constant 0 : index
    %c0_32 = arith.constant 0 : index
    %77 = vector.load %arg8[%c0_30, %c0_31, %c0_32] : memref<2x128x512xbf16, #tpu.memory_space<vmem>>, vector<1x128x512xbf16>
    %78 = vector.shape_cast %77 : vector<1x128x512xbf16> to vector<128x512xbf16>
    %cst_33 = arith.constant dense<0.000000e+00> : vector<16x512xf32>
    %79 = tpu.matmul %76, %78, %cst_33 {dimension_numbers = #tpu.dot_dimension_numbers<[1], [0], [0], [1], [0, 0, 1, 1], [], []>} : vector<16x128xbf16>, vector<128x512xbf16>, vector<16x512xf32> -> vector<16x512xf32>
    %c0_34 = arith.constant 0 : index
    %c0_35 = arith.constant 0 : index
    %c0_36 = arith.constant 0 : index
    %80 = vector.load %arg9[%c0_34, %c0_35, %c0_36] : memref<2x1x512xf32, #tpu.memory_space<vmem>>, vector<1x1x512xf32>
    %81 = vector.shape_cast %80 : vector<1x1x512xf32> to vector<1x512xf32>
    %82 = vector.broadcast %81 : vector<1x512xf32> to vector<16x512xf32>
    %83 = arith.addf %79, %82 : vector<16x512xf32>
    %cst_37 = arith.constant 0.000000e+00 : f32
    %84 = vector.broadcast %cst_37 : f32 to vector<16x512xf32>
    %85 = arith.maximumf %83, %84 : vector<16x512xf32>
    %86 = arith.truncf %85 : vector<16x512xf32> to vector<16x512xbf16>
    %c0_38 = arith.constant 0 : index
    %c0_39 = arith.constant 0 : index
    %c0_40 = arith.constant 0 : index
    %87 = vector.load %arg10[%c0_38, %c0_39, %c0_40] : memref<2x512x128xbf16, #tpu.memory_space<vmem>>, vector<1x512x128xbf16>
    %88 = vector.shape_cast %87 : vector<1x512x128xbf16> to vector<512x128xbf16>
    %cst_41 = arith.constant dense<0.000000e+00> : vector<16x128xf32>
    %89 = tpu.matmul %86, %88, %cst_41 {dimension_numbers = #tpu.dot_dimension_numbers<[1], [0], [0], [1], [0, 0, 1, 1], [], []>} : vector<16x512xbf16>, vector<512x128xbf16>, vector<16x128xf32> -> vector<16x128xf32>
    %c0_42 = arith.constant 0 : index
    %c0_43 = arith.constant 0 : index
    %c0_44 = arith.constant 0 : index
    %90 = vector.load %arg11[%c0_42, %c0_43, %c0_44] : memref<2x1x128xf32, #tpu.memory_space<vmem>>, vector<1x1x128xf32>
    %91 = vector.shape_cast %90 : vector<1x1x128xf32> to vector<1x128xf32>
    %92 = vector.broadcast %91 : vector<1x128xf32> to vector<16x128xf32>
    %93 = arith.addf %89, %92 : vector<16x128xf32>
    %94 = arith.addf %75, %93 : vector<16x128xf32>
    %cst_45 = arith.constant dense<0.000000e+00> : vector<16xf32>
    %95 = vector.multi_reduction <add>, %94, %cst_45 [1] : vector<16x128xf32> to vector<16xf32>
    %96 = vector.shape_cast %95 : vector<16xf32> to vector<16x1xf32>
    %cst_46 = arith.constant 1.280000e+02 : f32
    %97 = vector.broadcast %cst_46 : f32 to vector<16x1xf32>
    %98 = arith.divf %96, %97 : vector<16x1xf32>
    %99 = vector.broadcast %98 : vector<16x1xf32> to vector<16x128xf32>
    %100 = arith.subf %94, %99 : vector<16x128xf32>
    %101 = arith.mulf %100, %100 : vector<16x128xf32>
    %cst_47 = arith.constant dense<0.000000e+00> : vector<16xf32>
    %102 = vector.multi_reduction <add>, %101, %cst_47 [1] : vector<16x128xf32> to vector<16xf32>
    %103 = vector.shape_cast %102 : vector<16xf32> to vector<16x1xf32>
    %cst_48 = arith.constant 1.280000e+02 : f32
    %104 = vector.broadcast %cst_48 : f32 to vector<16x1xf32>
    %105 = arith.divf %103, %104 : vector<16x1xf32>
    %106 = vector.broadcast %98 : vector<16x1xf32> to vector<16x128xf32>
    %107 = arith.subf %94, %106 : vector<16x128xf32>
    %cst_49 = arith.constant 9.99999974E-6 : f32
    %108 = vector.broadcast %cst_49 : f32 to vector<16x1xf32>
    %109 = arith.addf %105, %108 : vector<16x1xf32>
    %110 = math.rsqrt %109 : vector<16x1xf32>
    %111 = vector.broadcast %110 : vector<16x1xf32> to vector<16x128xf32>
    %112 = arith.mulf %107, %111 : vector<16x128xf32>
    %c0_50 = arith.constant 0 : index
    %c0_51 = arith.constant 0 : index
    %c0_52 = arith.constant 0 : index
    %113 = vector.load %arg12[%c0_50, %c0_51, %c0_52] : memref<2x1x128xf32, #tpu.memory_space<vmem>>, vector<1x1x128xf32>
    %114 = vector.shape_cast %113 : vector<1x1x128xf32> to vector<1x128xf32>
    %115 = vector.broadcast %114 : vector<1x128xf32> to vector<16x128xf32>
    %116 = arith.mulf %112, %115 : vector<16x128xf32>
    %c0_53 = arith.constant 0 : index
    %c0_54 = arith.constant 0 : index
    %c0_55 = arith.constant 0 : index
    %117 = vector.load %arg13[%c0_53, %c0_54, %c0_55] : memref<2x1x128xf32, #tpu.memory_space<vmem>>, vector<1x1x128xf32>
    %118 = vector.shape_cast %117 : vector<1x1x128xf32> to vector<1x128xf32>
    %119 = vector.broadcast %118 : vector<1x128xf32> to vector<16x128xf32>
    %120 = arith.addf %116, %119 : vector<16x128xf32>
    %121 = arith.truncf %120 : vector<16x128xf32> to vector<16x128xbf16>
    %c1 = arith.constant 1 : index
    %c0_56 = arith.constant 0 : index
    %c0_57 = arith.constant 0 : index
    %122 = vector.load %arg2[%c1, %c0_56, %c0_57] : memref<2x128x384xbf16, #tpu.memory_space<vmem>>, vector<1x128x384xbf16>
    %123 = vector.shape_cast %122 : vector<1x128x384xbf16> to vector<128x384xbf16>
    %cst_58 = arith.constant dense<0.000000e+00> : vector<16x384xf32>
    %124 = tpu.matmul %121, %123, %cst_58 {dimension_numbers = #tpu.dot_dimension_numbers<[1], [0], [0], [1], [0, 0, 1, 1], [], []>} : vector<16x128xbf16>, vector<128x384xbf16>, vector<16x384xf32> -> vector<16x384xf32>
    %c1_59 = arith.constant 1 : index
    %c0_60 = arith.constant 0 : index
    %c0_61 = arith.constant 0 : index
    %125 = vector.load %arg3[%c1_59, %c0_60, %c0_61] : memref<2x1x384xf32, #tpu.memory_space<vmem>>, vector<1x1x384xf32>
    %126 = vector.shape_cast %125 : vector<1x1x384xf32> to vector<1x384xf32>
    %127 = vector.broadcast %126 : vector<1x384xf32> to vector<16x384xf32>
    %128 = arith.addf %124, %127 : vector<16x384xf32>
    %129 = vector.extract_strided_slice %128 {offsets = [0, 0], sizes = [16, 128], strides = [1, 1]} : vector<16x384xf32> to vector<16x128xf32>
    %130 = vector.shape_cast %129 : vector<16x128xf32> to vector<1x16x4x32xf32>
    %131 = tpu.transpose %130, [0, 2, 1, 3] : vector<1x16x4x32xf32> -> vector<1x4x16x32xf32>
    %132 = vector.shape_cast %131 : vector<1x4x16x32xf32> to vector<4x16x32xf32>
    %133 = arith.truncf %132 : vector<4x16x32xf32> to vector<4x16x32xbf16>
    %134 = vector.extract_strided_slice %128 {offsets = [0, 128], sizes = [16, 128], strides = [1, 1]} : vector<16x384xf32> to vector<16x128xf32>
    %135 = vector.shape_cast %134 : vector<16x128xf32> to vector<1x16x4x32xf32>
    %136 = tpu.transpose %135, [0, 2, 1, 3] : vector<1x16x4x32xf32> -> vector<1x4x16x32xf32>
    %137 = vector.shape_cast %136 : vector<1x4x16x32xf32> to vector<4x16x32xf32>
    %138 = arith.truncf %137 : vector<4x16x32xf32> to vector<4x16x32xbf16>
    %139 = vector.extract_strided_slice %128 {offsets = [0, 256], sizes = [16, 128], strides = [1, 1]} : vector<16x384xf32> to vector<16x128xf32>
    %140 = vector.shape_cast %139 : vector<16x128xf32> to vector<1x16x4x32xf32>
    %141 = tpu.transpose %140, [0, 2, 1, 3] : vector<1x16x4x32xf32> -> vector<1x4x16x32xf32>
    %142 = vector.shape_cast %141 : vector<1x4x16x32xf32> to vector<4x16x32xf32>
    %143 = arith.truncf %142 : vector<4x16x32xf32> to vector<4x16x32xbf16>
    "tpu.trace_start"() <{level = 10 : i32, message = "bqd,bkd->bqk"}> : () -> ()
    %cst_62 = arith.constant dense<0.000000e+00> : vector<4x16x16xf32>
    %144 = tpu.matmul %133, %138, %cst_62 {dimension_numbers = #tpu.dot_dimension_numbers<[2], [2], [1], [1], [0, 0, 0, 1, 1, 1], [0], [0]>} : vector<4x16x32xbf16>, vector<4x16x32xbf16>, vector<4x16x16xf32> -> vector<4x16x16xf32>
    "tpu.trace_stop"() : () -> ()
    %cst_63 = arith.constant dense<0xFF800000> : vector<4x16xf32>
    %145 = vector.multi_reduction <maximumf>, %144, %cst_63 [2] : vector<4x16x16xf32> to vector<4x16xf32>
    %146 = vector.shape_cast %145 : vector<4x16xf32> to vector<4x16x1xf32>
    %147 = vector.broadcast %146 : vector<4x16x1xf32> to vector<4x16x16xf32>
    %148 = arith.subf %144, %147 : vector<4x16x16xf32>
    %149 = math.exp %148 : vector<4x16x16xf32>
    %cst_64 = arith.constant dense<0.000000e+00> : vector<4x16xf32>
    %150 = vector.multi_reduction <add>, %149, %cst_64 [2] : vector<4x16x16xf32> to vector<4x16xf32>
    %151 = vector.shape_cast %150 : vector<4x16xf32> to vector<4x16x1xf32>
    %152 = tpu.reciprocal %151 {approx = true} : vector<4x16x1xf32> -> vector<4x16x1xf32>
    %153 = vector.broadcast %152 : vector<4x16x1xf32> to vector<4x16x16xf32>
    %154 = arith.mulf %149, %153 : vector<4x16x16xf32>
    %155 = arith.truncf %154 : vector<4x16x16xf32> to vector<4x16x16xbf16>
    "tpu.trace_start"() <{level = 10 : i32, message = "bqk,bkd->bqd"}> : () -> ()
    %cst_65 = arith.constant dense<0.000000e+00> : vector<4x16x32xf32>
    %156 = tpu.matmul %155, %143, %cst_65 {dimension_numbers = #tpu.dot_dimension_numbers<[2], [1], [1], [2], [0, 0, 0, 1, 1, 2], [0], [0]>} : vector<4x16x16xbf16>, vector<4x16x32xbf16>, vector<4x16x32xf32> -> vector<4x16x32xf32>
    "tpu.trace_stop"() : () -> ()
    %157 = vector.shape_cast %156 : vector<4x16x32xf32> to vector<1x4x16x32xf32>
    %158 = tpu.transpose %157, [0, 2, 1, 3] : vector<1x4x16x32xf32> -> vector<1x16x4x32xf32>
    %159 = vector.shape_cast %158 : vector<1x16x4x32xf32> to vector<16x128xf32>
    %160 = arith.truncf %159 : vector<16x128xf32> to vector<16x128xbf16>
    %c1_66 = arith.constant 1 : index
    %c0_67 = arith.constant 0 : index
    %c0_68 = arith.constant 0 : index
    %161 = vector.load %arg4[%c1_66, %c0_67, %c0_68] : memref<2x128x128xbf16, #tpu.memory_space<vmem>>, vector<1x128x128xbf16>
    %162 = vector.shape_cast %161 : vector<1x128x128xbf16> to vector<128x128xbf16>
    %cst_69 = arith.constant dense<0.000000e+00> : vector<16x128xf32>
    %163 = tpu.matmul %160, %162, %cst_69 {dimension_numbers = #tpu.dot_dimension_numbers<[1], [0], [0], [1], [0, 0, 1, 1], [], []>} : vector<16x128xbf16>, vector<128x128xbf16>, vector<16x128xf32> -> vector<16x128xf32>
    %c1_70 = arith.constant 1 : index
    %c0_71 = arith.constant 0 : index
    %c0_72 = arith.constant 0 : index
    %164 = vector.load %arg5[%c1_70, %c0_71, %c0_72] : memref<2x1x128xf32, #tpu.memory_space<vmem>>, vector<1x1x128xf32>
    %165 = vector.shape_cast %164 : vector<1x1x128xf32> to vector<1x128xf32>
    %166 = vector.broadcast %165 : vector<1x128xf32> to vector<16x128xf32>
    %167 = arith.addf %163, %166 : vector<16x128xf32>
    %168 = arith.addf %120, %167 : vector<16x128xf32>
    %cst_73 = arith.constant dense<0.000000e+00> : vector<16xf32>
    %169 = vector.multi_reduction <add>, %168, %cst_73 [1] : vector<16x128xf32> to vector<16xf32>
    %170 = vector.shape_cast %169 : vector<16xf32> to vector<16x1xf32>
    %cst_74 = arith.constant 1.280000e+02 : f32
    %171 = vector.broadcast %cst_74 : f32 to vector<16x1xf32>
    %172 = arith.divf %170, %171 : vector<16x1xf32>
    %173 = vector.broadcast %172 : vector<16x1xf32> to vector<16x128xf32>
    %174 = arith.subf %168, %173 : vector<16x128xf32>
    %175 = arith.mulf %174, %174 : vector<16x128xf32>
    %cst_75 = arith.constant dense<0.000000e+00> : vector<16xf32>
    %176 = vector.multi_reduction <add>, %175, %cst_75 [1] : vector<16x128xf32> to vector<16xf32>
    %177 = vector.shape_cast %176 : vector<16xf32> to vector<16x1xf32>
    %cst_76 = arith.constant 1.280000e+02 : f32
    %178 = vector.broadcast %cst_76 : f32 to vector<16x1xf32>
    %179 = arith.divf %177, %178 : vector<16x1xf32>
    %180 = vector.broadcast %172 : vector<16x1xf32> to vector<16x128xf32>
    %181 = arith.subf %168, %180 : vector<16x128xf32>
    %cst_77 = arith.constant 9.99999974E-6 : f32
    %182 = vector.broadcast %cst_77 : f32 to vector<16x1xf32>
    %183 = arith.addf %179, %182 : vector<16x1xf32>
    %184 = math.rsqrt %183 : vector<16x1xf32>
    %185 = vector.broadcast %184 : vector<16x1xf32> to vector<16x128xf32>
    %186 = arith.mulf %181, %185 : vector<16x128xf32>
    %c1_78 = arith.constant 1 : index
    %c0_79 = arith.constant 0 : index
    %c0_80 = arith.constant 0 : index
    %187 = vector.load %arg6[%c1_78, %c0_79, %c0_80] : memref<2x1x128xf32, #tpu.memory_space<vmem>>, vector<1x1x128xf32>
    %188 = vector.shape_cast %187 : vector<1x1x128xf32> to vector<1x128xf32>
    %189 = vector.broadcast %188 : vector<1x128xf32> to vector<16x128xf32>
    %190 = arith.mulf %186, %189 : vector<16x128xf32>
    %c1_81 = arith.constant 1 : index
    %c0_82 = arith.constant 0 : index
    %c0_83 = arith.constant 0 : index
    %191 = vector.load %arg7[%c1_81, %c0_82, %c0_83] : memref<2x1x128xf32, #tpu.memory_space<vmem>>, vector<1x1x128xf32>
    %192 = vector.shape_cast %191 : vector<1x1x128xf32> to vector<1x128xf32>
    %193 = vector.broadcast %192 : vector<1x128xf32> to vector<16x128xf32>
    %194 = arith.addf %190, %193 : vector<16x128xf32>
    %195 = arith.truncf %194 : vector<16x128xf32> to vector<16x128xbf16>
    %c1_84 = arith.constant 1 : index
    %c0_85 = arith.constant 0 : index
    %c0_86 = arith.constant 0 : index
    %196 = vector.load %arg8[%c1_84, %c0_85, %c0_86] : memref<2x128x512xbf16, #tpu.memory_space<vmem>>, vector<1x128x512xbf16>
    %197 = vector.shape_cast %196 : vector<1x128x512xbf16> to vector<128x512xbf16>
    %cst_87 = arith.constant dense<0.000000e+00> : vector<16x512xf32>
    %198 = tpu.matmul %195, %197, %cst_87 {dimension_numbers = #tpu.dot_dimension_numbers<[1], [0], [0], [1], [0, 0, 1, 1], [], []>} : vector<16x128xbf16>, vector<128x512xbf16>, vector<16x512xf32> -> vector<16x512xf32>
    %c1_88 = arith.constant 1 : index
    %c0_89 = arith.constant 0 : index
    %c0_90 = arith.constant 0 : index
    %199 = vector.load %arg9[%c1_88, %c0_89, %c0_90] : memref<2x1x512xf32, #tpu.memory_space<vmem>>, vector<1x1x512xf32>
    %200 = vector.shape_cast %199 : vector<1x1x512xf32> to vector<1x512xf32>
    %201 = vector.broadcast %200 : vector<1x512xf32> to vector<16x512xf32>
    %202 = arith.addf %198, %201 : vector<16x512xf32>
    %cst_91 = arith.constant 0.000000e+00 : f32
    %203 = vector.broadcast %cst_91 : f32 to vector<16x512xf32>
    %204 = arith.maximumf %202, %203 : vector<16x512xf32>
    %205 = arith.truncf %204 : vector<16x512xf32> to vector<16x512xbf16>
    %c1_92 = arith.constant 1 : index
    %c0_93 = arith.constant 0 : index
    %c0_94 = arith.constant 0 : index
    %206 = vector.load %arg10[%c1_92, %c0_93, %c0_94] : memref<2x512x128xbf16, #tpu.memory_space<vmem>>, vector<1x512x128xbf16>
    %207 = vector.shape_cast %206 : vector<1x512x128xbf16> to vector<512x128xbf16>
    %cst_95 = arith.constant dense<0.000000e+00> : vector<16x128xf32>
    %208 = tpu.matmul %205, %207, %cst_95 {dimension_numbers = #tpu.dot_dimension_numbers<[1], [0], [0], [1], [0, 0, 1, 1], [], []>} : vector<16x512xbf16>, vector<512x128xbf16>, vector<16x128xf32> -> vector<16x128xf32>
    %c1_96 = arith.constant 1 : index
    %c0_97 = arith.constant 0 : index
    %c0_98 = arith.constant 0 : index
    %209 = vector.load %arg11[%c1_96, %c0_97, %c0_98] : memref<2x1x128xf32, #tpu.memory_space<vmem>>, vector<1x1x128xf32>
    %210 = vector.shape_cast %209 : vector<1x1x128xf32> to vector<1x128xf32>
    %211 = vector.broadcast %210 : vector<1x128xf32> to vector<16x128xf32>
    %212 = arith.addf %208, %211 : vector<16x128xf32>
    %213 = arith.addf %194, %212 : vector<16x128xf32>
    %cst_99 = arith.constant dense<0.000000e+00> : vector<16xf32>
    %214 = vector.multi_reduction <add>, %213, %cst_99 [1] : vector<16x128xf32> to vector<16xf32>
    %215 = vector.shape_cast %214 : vector<16xf32> to vector<16x1xf32>
    %cst_100 = arith.constant 1.280000e+02 : f32
    %216 = vector.broadcast %cst_100 : f32 to vector<16x1xf32>
    %217 = arith.divf %215, %216 : vector<16x1xf32>
    %218 = vector.broadcast %217 : vector<16x1xf32> to vector<16x128xf32>
    %219 = arith.subf %213, %218 : vector<16x128xf32>
    %220 = arith.mulf %219, %219 : vector<16x128xf32>
    %cst_101 = arith.constant dense<0.000000e+00> : vector<16xf32>
    %221 = vector.multi_reduction <add>, %220, %cst_101 [1] : vector<16x128xf32> to vector<16xf32>
    %222 = vector.shape_cast %221 : vector<16xf32> to vector<16x1xf32>
    %cst_102 = arith.constant 1.280000e+02 : f32
    %223 = vector.broadcast %cst_102 : f32 to vector<16x1xf32>
    %224 = arith.divf %222, %223 : vector<16x1xf32>
    %225 = vector.broadcast %217 : vector<16x1xf32> to vector<16x128xf32>
    %226 = arith.subf %213, %225 : vector<16x128xf32>
    %cst_103 = arith.constant 9.99999974E-6 : f32
    %227 = vector.broadcast %cst_103 : f32 to vector<16x1xf32>
    %228 = arith.addf %224, %227 : vector<16x1xf32>
    %229 = math.rsqrt %228 : vector<16x1xf32>
    %230 = vector.broadcast %229 : vector<16x1xf32> to vector<16x128xf32>
    %231 = arith.mulf %226, %230 : vector<16x128xf32>
    %c1_104 = arith.constant 1 : index
    %c0_105 = arith.constant 0 : index
    %c0_106 = arith.constant 0 : index
    %232 = vector.load %arg12[%c1_104, %c0_105, %c0_106] : memref<2x1x128xf32, #tpu.memory_space<vmem>>, vector<1x1x128xf32>
    %233 = vector.shape_cast %232 : vector<1x1x128xf32> to vector<1x128xf32>
    %234 = vector.broadcast %233 : vector<1x128xf32> to vector<16x128xf32>
    %235 = arith.mulf %231, %234 : vector<16x128xf32>
    %c1_107 = arith.constant 1 : index
    %c0_108 = arith.constant 0 : index
    %c0_109 = arith.constant 0 : index
    %236 = vector.load %arg13[%c1_107, %c0_108, %c0_109] : memref<2x1x128xf32, #tpu.memory_space<vmem>>, vector<1x1x128xf32>
    %237 = vector.shape_cast %236 : vector<1x1x128xf32> to vector<1x128xf32>
    %238 = vector.broadcast %237 : vector<1x128xf32> to vector<16x128xf32>
    %239 = arith.addf %235, %238 : vector<16x128xf32>
    %240 = vector.shape_cast %239 : vector<16x128xf32> to vector<1x16x128xf32>
    %c0_110 = arith.constant 0 : index
    %c0_111 = arith.constant 0 : index
    %c0_112 = arith.constant 0 : index
    %241 = vector.load %arg14[%c0_110, %c0_111, %c0_112] : memref<1x16x128xf32, #tpu.memory_space<vmem>>, vector<1x16x128xf32>
    tpu.vector_store %arg14[%c0_110, %c0_111, %c0_112], %240 {strides = array<i32>} : memref<1x16x128xf32, #tpu.memory_space<vmem>>, vector<1x16x128xf32>,
    return
  }
  func.func @transform_0(%arg0: i32) -> (i32, i32, i32) {
    %c0_i32 = arith.constant 0 : i32
    %c0_i32_0 = arith.constant 0 : i32
    %c0_i32_1 = arith.constant 0 : i32
    return %arg0, %c0_i32, %c0_i32_0 : i32, i32, i32
  }
  func.func @transform_1(%arg0: i32) -> (i32, i32, i32) {
    %c0_i32 = arith.constant 0 : i32
    %c0_i32_0 = arith.constant 0 : i32
    %c0_i32_1 = arith.constant 0 : i32
    %c0_i32_2 = arith.constant 0 : i32
    return %c0_i32, %c0_i32_0, %c0_i32_1 : i32, i32, i32
  }
  func.func @transform_2(%arg0: i32) -> (i32, i32, i32) {
    %c0_i32 = arith.constant 0 : i32
    %c0_i32_0 = arith.constant 0 : i32
    %c0_i32_1 = arith.constant 0 : i32
    %c0_i32_2 = arith.constant 0 : i32
    return %c0_i32, %c0_i32_0, %c0_i32_1 : i32, i32, i32
  }
  func.func @transform_3(%arg0: i32) -> (i32, i32, i32) {
    %c0_i32 = arith.constant 0 : i32
    %c0_i32_0 = arith.constant 0 : i32
    %c0_i32_1 = arith.constant 0 : i32
    %c0_i32_2 = arith.constant 0 : i32
    return %c0_i32, %c0_i32_0, %c0_i32_1 : i32, i32, i32
  }
  func.func @transform_4(%arg0: i32) -> (i32, i32, i32) {
    %c0_i32 = arith.constant 0 : i32
    %c0_i32_0 = arith.constant 0 : i32
    %c0_i32_1 = arith.constant 0 : i32
    %c0_i32_2 = arith.constant 0 : i32
    return %c0_i32, %c0_i32_0, %c0_i32_1 : i32, i32, i32
  }
  func.func @transform_5(%arg0: i32) -> (i32, i32, i32) {
    %c0_i32 = arith.constant 0 : i32
    %c0_i32_0 = arith.constant 0 : i32
    %c0_i32_1 = arith.constant 0 : i32
    %c0_i32_2 = arith.constant 0 : i32
    return %c0_i32, %c0_i32_0, %c0_i32_1 : i32, i32, i32
  }
  func.func @transform_6(%arg0: i32) -> (i32, i32, i32) {
    %c0_i32 = arith.constant 0 : i32
    %c0_i32_0 = arith.constant 0 : i32
    %c0_i32_1 = arith.constant 0 : i32
    %c0_i32_2 = arith.constant 0 : i32
    return %c0_i32, %c0_i32_0, %c0_i32_1 : i32, i32, i32
  }
  func.func @transform_7(%arg0: i32) -> (i32, i32, i32) {
    %c0_i32 = arith.constant 0 : i32
    %c0_i32_0 = arith.constant 0 : i32
    %c0_i32_1 = arith.constant 0 : i32
    %c0_i32_2 = arith.constant 0 : i32
    return %c0_i32, %c0_i32_0, %c0_i32_1 : i32, i32, i32
  }
  func.func @transform_8(%arg0: i32) -> (i32, i32, i32) {
    %c0_i32 = arith.constant 0 : i32
    %c0_i32_0 = arith.constant 0 : i32
    %c0_i32_1 = arith.constant 0 : i32
    %c0_i32_2 = arith.constant 0 : i32
    return %c0_i32, %c0_i32_0, %c0_i32_1 : i32, i32, i32
  }
  func.func @transform_9(%arg0: i32) -> (i32, i32, i32) {
    %c0_i32 = arith.constant 0 : i32
    %c0_i32_0 = arith.constant 0 : i32
    %c0_i32_1 = arith.constant 0 : i32
    %c0_i32_2 = arith.constant 0 : i32
    return %c0_i32, %c0_i32_0, %c0_i32_1 : i32, i32, i32
  }
  func.func @transform_10(%arg0: i32) -> (i32, i32, i32) {
    %c0_i32 = arith.constant 0 : i32
    %c0_i32_0 = arith.constant 0 : i32
    %c0_i32_1 = arith.constant 0 : i32
    %c0_i32_2 = arith.constant 0 : i32
    return %c0_i32, %c0_i32_0, %c0_i32_1 : i32, i32, i32
  }
  func.func @transform_11(%arg0: i32) -> (i32, i32, i32) {
    %c0_i32 = arith.constant 0 : i32
    %c0_i32_0 = arith.constant 0 : i32
    %c0_i32_1 = arith.constant 0 : i32
    %c0_i32_2 = arith.constant 0 : i32
    return %c0_i32, %c0_i32_0, %c0_i32_1 : i32, i32, i32
  }
  func.func @transform_12(%arg0: i32) -> (i32, i32, i32) {
    %c0_i32 = arith.constant 0 : i32
    %c0_i32_0 = arith.constant 0 : i32
    %c0_i32_1 = arith.constant 0 : i32
    %c0_i32_2 = arith.constant 0 : i32
    return %c0_i32, %c0_i32_0, %c0_i32_1 : i32, i32, i32
  }
  func.func @transform_13(%arg0: i32) -> (i32, i32, i32) {
    %c0_i32 = arith.constant 0 : i32
    %c0_i32_0 = arith.constant 0 : i32
    %c0_i32_1 = arith.constant 0 : i32
    return %arg0, %c0_i32, %c0_i32_0 : i32, i32, i32
  }
}

</mosaic_0001>

<bundles_post_ra>
// kernel: score_transformer_forward.1
= control target key start
LH: loop header
LB: loop body
LE: loop exit
PB: predicated region body
PF: predicated region fallthrough
CT: control target
= control target key end

     0   :  { %s8614_s0 = inlined_call_operand.vmem [shape: f32[2,16,128], index: 0, kind: input, shape index: {}]   ;;  %s8615_s1 = inlined_call_operand.vmem [shape: bf16[2,128,384], index: 1, kind: input, shape index: {}]   ;;  %s8616_s2 = inlined_call_operand.vmem [shape: f32[2,1,384], index: 2, kind: input, shape index: {}]   ;;  %s8617_s3 = inlined_call_operand.hbm [shape: bf16[2,128,128], index: 3, kind: input, shape index: {}]   ;;  %s8618_s4 = inlined_call_operand.vmem [shape: f32[2,1,128], index: 4, kind: input, shape index: {}]   ;;  %s8619_s5 = inlined_call_operand.vmem [shape: f32[2,1,128], index: 5, kind: input, shape index: {}]   ;;  %s8620_s6 = inlined_call_operand.vmem [shape: f32[2,1,128], index: 6, kind: input, shape index: {}]   ;;  %s8621_s7 = inlined_call_operand.hbm [shape: bf16[2,128,512], index: 7, kind: input, shape index: {}]   ;;  %s8622_s8 = inlined_call_operand.vmem [shape: f32[2,1,512], index: 8, kind: input, shape index: {}]   ;;  %s8623_s9 = inlined_call_operand.hbm [shape: bf16[2,512,128], index: 9, kind: input, shape index: {}]   ;;  %s8624_s10 = inlined_call_operand.vmem [shape: f32[2,1,128], index: 10, kind: input, shape index: {}]   ;;  %s8625_s11 = inlined_call_operand.hbm [shape: f32[2,1,128], index: 11, kind: input, shape index: {}]   ;;  %s8626_s12 = inlined_call_operand.hbm [shape: f32[2,1,128], index: 12, kind: input, shape index: {}]   ;;  %s8627_s13 = inlined_call_operand.vmem [shape: f32[2,16,128], index: 13, kind: output, shape index: {}]  }
   0x1   :  { %8633 = sst [smem:[#allocation14_spill]] %s8621_s7 }
   0x2   :  { %8634 = sst [smem:[#allocation15_spill]] %s8625_s11 }
   0x3   :  { %8635 = sst [smem:[#allocation16_spill]] %s8627_s13 }
   0x4   :  { %18 = vsyncpa [#allocation3], 0 }
   0x5   :  { %19 = vsyncpa [#allocation5], 0 }
   0x6   :  { %20 = vsyncpa [#allocation8], 0  ;;  %s7484_s25 = smov 0  }
   0x7 LB: > { %8636 = sst [smem:[#allocation13_spill]] %s7394_s25  ;;  %s7396_s26 = smov [#allocation4]   ;;  %s7394_s25 = sphi %s7484_s25, %s26_s25  }
   0x8   : > { %s375_s27 = sshll.u32 %s7396_s26, 4  ;;  %s7490_s28 = sadd.s32 4294967295, %s7394_s25   ;;  %s7495_s27 = int_to_ptr.vmem [resolvable:$true] %s375_s27 }
   0x9   : > { %p6169_p0 = scmp.ge.s32.totalorder %s7394_s25, 1  ;;  %p335_p1 = scmp.lt.s32.totalorder %s7394_s25, 3 }
   0xa   : > { %p8631_p2 = scmp.eq.s32.totalorder %s7490_s28, 0  ;;  %s7397_s30 = smov [#allocation7]  }
   0xb   : > { %p7497_p3 = pnand %p6169_p0, %p335_p1  ;;  %s407_s14 = sshll.u32 %s7397_s30, 4  ;;  %s7503_s14 = int_to_ptr.vmem [resolvable:$true] %s407_s14 }
   0xc   : > { %s7398_s16 = smov [#allocation2]   ;;  %s8639_s7 = sld [smem:[#allocation14_spill]] }
   0xd   : > { %s8637_s29 = scalar_select %p7497_p3, 1, 0 }
   0xe   : > { %p6832_p4 = pneg %p7497_p3  ;;  %s353_s17 = sshll.u32 %s7398_s16, 4  ;;  %s7511_s17 = int_to_ptr.vmem [resolvable:$true] %s353_s17 }
  0x10   : > { %p7507_p5 = pnand %p8631_p2, %p6832_p4 }
  0x12   : > { %s7236_s20 = scalar_lea.hbm %s8639_s7, 8192  ;;  %p7521_p7 = pneg %p7507_p5 }
  0x13   : > { %p7237_p6 = scmp.ne.s32.totalorder %s8639_s7, %s7236_s20  ;;  %p7243_p10 = scmp.lt.u32.totalorder %s7236_s20, %s8639_s7 }
  0x15   : > { %p7239_p8 = pnand %p7521_p7, %p7237_p6 }
  0x17   : > { %p7240_p9 = pneg %p7239_p8 }
  0x19   : > { %p7245_p11 = pnand %p7243_p10, %p7240_p9 }
  0x1b   : > { %7248 = shalt.err (!%p7245_p11)
}
  0x1c   : > { %s7249_s30 = scalar_lea.vmem %s7495_s27, 8192  ;;  %p7257_p1 = scmp.lt.s32.totalorder %s7495_s27, %s7495_s27 }
  0x1d   : > { %p7250_p12 = scmp.ne.s32.totalorder %s7495_s27, %s7249_s30  ;;  %p7258_p4 = scmp.lt.s32.totalorder %s7249_s30, %s7249_s30 }
  0x1f   : > { %p7252_p13 = pnand %p7250_p12, %p7521_p7  ;;  %p7259_p6 = por %p7258_p4, %p7257_p1 }
  0x21   : > { %p7253_p0 = pneg %p7252_p13 }
  0x23   : > { %p7260_p8 = pnand %p7259_p6, %p7253_p0 }
  0x25   : > { %7263 = shalt.err (!%p7260_p8)
}
  0x26   : > { %s7399_s16 = smov 256   ;;  %s8629_s18 = smov 16  }
  0x27   : > { %6838 = dma.hbm_to_vmem [thread:$0]  (!%p7507_p5), %s8639_s7, 8192, %s7495_s27, [#allocation5], %s7399_s16, %s7399_s16, %s8629_s18  }
  0x28   : > { %s8641_s11 = sld [smem:[#allocation15_spill]] }
  0x2e   : > { %s7264_s24 = scalar_lea.hbm %s8641_s11, 32 }
  0x2f   : > { %p7265_p9 = scmp.ne.s32.totalorder %s8641_s11, %s7264_s24  ;;  %p7271_p12 = scmp.lt.u32.totalorder %s7264_s24, %s8641_s11 }
  0x31   : > { %p7267_p10 = pnand %p7265_p9, %p7521_p7 }
  0x33   : > { %p7268_p11 = pneg %p7267_p10 }
  0x35   : > { %p7273_p13 = pnand %p7271_p12, %p7268_p11 }
  0x37   : > { %7276 = shalt.err (!%p7273_p13)
}
  0x38   : > { %s7277_s27 = scalar_lea.vmem %s7503_s14, 32  ;;  %p7285_p6 = scmp.lt.s32.totalorder %s7503_s14, %s7503_s14 }
  0x39   : > { %p7278_p0 = scmp.ne.s32.totalorder %s7503_s14, %s7277_s27  ;;  %p7286_p8 = scmp.lt.s32.totalorder %s7277_s27, %s7277_s27 }
  0x3b   : > { %p7280_p1 = pnand %p7278_p0, %p7521_p7  ;;  %p7287_p9 = por %p7286_p8, %p7285_p6 }
  0x3d   : > { %p7281_p4 = pneg %p7280_p1 }
  0x3f   : > { %p7288_p10 = pnand %p7287_p9, %p7281_p4 }
  0x41   : > { %7291 = shalt.err (!%p7288_p10)
}
  0x42   : > { %s8630_s16 = smov 1   ;;  %s7292_s21 = scalar_lea.hbm %s8617_s3, 2048 }
  0x43   : > { %6844 = dma.hbm_to_vmem [thread:$0]  (!%p7507_p5), %s8641_s11, 32, %s7503_s14, [#allocation8], %s8629_s18, %s8629_s18, %s8630_s16  }
  0x44   : > { %p7293_p11 = scmp.ne.s32.totalorder %s8617_s3, %s7292_s21  ;;  %p7299_p0 = scmp.lt.u32.totalorder %s7292_s21, %s8617_s3 }
  0x46   : > { %p7295_p12 = pnand %p7293_p11, %p7521_p7 }
  0x48   : > { %p7296_p13 = pneg %p7295_p12 }
  0x4a   : > { %p7301_p1 = pnand %p7299_p0, %p7296_p13 }
  0x4c   : > { %7304 = shalt.err (!%p7301_p1)
}
  0x4d   : > { %s7305_s14 = scalar_lea.vmem %s7511_s17, 2048  ;;  %p7313_p9 = scmp.lt.s32.totalorder %s7511_s17, %s7511_s17 }
  0x4e   : > { %p7306_p4 = scmp.ne.s32.totalorder %s7511_s17, %s7305_s14  ;;  %p7314_p10 = scmp.lt.s32.totalorder %s7305_s14, %s7305_s14 }
  0x50   : > { %p7308_p6 = pnand %p7306_p4, %p7521_p7  ;;  %p7315_p11 = por %p7314_p10, %p7313_p9 }
  0x52   : > { %p7309_p8 = pneg %p7308_p6 }
  0x54   : > { %p7316_p12 = pnand %p7315_p11, %p7309_p8 }
  0x56   : > { %7319 = shalt.err (!%p7316_p12)
}
  0x57   : > { %s7402_s27 = smov 64   ;;  %s7403_s13 = smov 4  }
  0x58   : > { %6835 = dma.hbm_to_vmem [thread:$0]  (!%p7507_p5), %s8617_s3, 2048, %s7511_s17, [#allocation3], %s7402_s27, %s7402_s27, %s7403_s13  }
  0x59   : > { %s7404_s20 = smov [#allocation6]   ;;  %s7405_s22 = smov [#allocation9]  }
  0x5a   : > { %s391_s21 = sshll.u32 %s7404_s20, 4  ;;  %s420_s24 = sshll.u32 %s7405_s22, 4  ;;  %s392_s21 = int_to_ptr.vmem [resolvable:$true] %s391_s21  ;;  %s421_s24 = int_to_ptr.vmem [resolvable:$true] %s420_s24 }
  0x5b   : > { %s7320_s14 = scalar_lea.hbm %s8623_s9, 8192 }
  0x5c   : > { %p7321_p13 = scmp.ne.s32.totalorder %s8623_s9, %s7320_s14  ;;  %p7327_p4 = scmp.lt.u32.totalorder %s7320_s14, %s8623_s9 }
  0x5e   : > { %p7323_p0 = pnand %p7321_p13, %p7521_p7 }
  0x60   : > { %p7324_p1 = pneg %p7323_p0 }
  0x62   : > { %p7329_p6 = pnand %p7327_p4, %p7324_p1 }
  0x64   : > { %7332 = shalt.err (!%p7329_p6)
}
  0x65   : > { %s7333_s17 = scalar_lea.vmem %s392_s21, 8192  ;;  %p7341_p11 = scmp.lt.s32.totalorder %s392_s21, %s392_s21 }
  0x66   : > { %p7334_p8 = scmp.ne.s32.totalorder %s392_s21, %s7333_s17  ;;  %p7342_p12 = scmp.lt.s32.totalorder %s7333_s17, %s7333_s17 }
  0x68   : > { %p7336_p9 = pnand %p7334_p8, %p7521_p7  ;;  %p7343_p2 = por %p7342_p12, %p7341_p11 }
  0x6a   : > { %p7337_p10 = pneg %p7336_p9 }
  0x6c   : > { %p7344_p3 = pnand %p7343_p2, %p7337_p10 }
  0x6e   : > { %7347 = shalt.err (!%p7344_p3)
}
  0x6f   : > { %6841 = dma.hbm_to_vmem [thread:$0]  (!%p7507_p5), %s8623_s9, 8192, %s392_s21, [#allocation5], %s7402_s27, %s7402_s27, %s7403_s13  }
  0x70   : > { %s7348_s25 = scalar_lea.hbm %s8626_s12, 32 }
  0x71   : > { %p7349_p13 = scmp.ne.s32.totalorder %s8626_s12, %s7348_s25  ;;  %p7355_p3 = scmp.lt.u32.totalorder %s7348_s25, %s8626_s12 }
  0x73   : > { %p7351_p0 = pnand %p7349_p13, %p7521_p7 }
  0x75   : > { %p7352_p2 = pneg %p7351_p0 }
  0x77   : > { %p7357_p1 = pnand %p7355_p3, %p7352_p2 }
  0x79   : > { %7360 = shalt.err (!%p7357_p1)
}
  0x7a   : > { %s7361_s30 = scalar_lea.vmem %s421_s24, 32  ;;  %p7369_p9 = scmp.lt.s32.totalorder %s421_s24, %s421_s24 }
  0x7b   : > { %p7362_p4 = scmp.ne.s32.totalorder %s421_s24, %s7361_s30  ;;  %p7370_p10 = scmp.lt.s32.totalorder %s7361_s30, %s7361_s30 }
  0x7d   : > { %p7364_p6 = pnand %p7362_p4, %p7521_p7  ;;  %p7371_p11 = por %p7370_p10, %p7369_p9 }
  0x7f   : > { %p7365_p8 = pneg %p7364_p6 }
  0x81   : > { %p7372_p12 = pnand %p7371_p11, %p7365_p8 }
  0x83   : > { %7375 = shalt.err (!%p7372_p12)
}
  0x84   : > { %s8642_s27 = smov 1   ;;  %s8643_s13 = smov 16  }
  0x85   : > { %6847 = dma.hbm_to_vmem [thread:$0]  (!%p7507_p5), %s8626_s12, 32, %s421_s24, [#allocation8], %s8643_s13, %s8643_s13, %s8642_s27  }
  0x86   : > { %p8644_p13 = scmp.ne.s32.totalorder %s8637_s29, 0 }
  0x87   : > { %p8645_p7 = scmp.eq.s32.totalorder (!%p8644_p13), %s7490_s28, 0 }
  0x88   : > { %444 = sbr.rel (%p8644_p13) target bundleno = 5382 (0x1506), region = 72 }
  0x8f   : > { %7381 = dma.done.wait (%p8645_p7), [#allocation3], 2048   ;;  %p8646_p0 = pmov %p8645_p7 }
  0x91   : > { %7383 = vsyncadd (%p8646_p0), [#allocation3], 4294965248  ;;  %p8647_p2 = pmov %p8646_p0 }
  0x92   : > { %p8648_p3 = pmov %p8646_p0 }
  0x93   : > { %7385 = dma.done.wait (%p8647_p2), [#allocation5], 16384  }
  0x94   : > { %7387 = vsyncadd (%p8648_p3), [#allocation5], 4294950912  ;;  %p8649_p1 = pmov %p8646_p0 }
  0x95   : > { %p8650_p5 = pmov %p8646_p0 }
  0x96   : > { %7389 = dma.done.wait (%p8649_p1), [#allocation8], 64  }
  0x97   : > { %7391 = vsyncadd (%p8650_p5), [#allocation8], 4294967232  ;;  %v7406_v0 = vmov 0   ;;  %v6914_v1 = vld [vmem:[%s8615_s1 + $0x4] ss:$12 sps:$4 sm:$0xff]   ;;  %p504_p4 = scmp.lt.s32.totalorder %s7490_s28, 1  ;;  %v552_v22 = vlaneseq }
  0x98   : > { %727 = vmatprep.mubr.bf16.mxu0 %v7406_v0  ;;  %v6916_v2 = vld [vmem:[%s8615_s1] ss:$12 sps:$4 sm:$0xff]   ;;  %695 = vmatprep.subr.bf16.mxu0 %v6914_v1  ;;  %v6917_v3 = vld [vmem:[%s8615_s1 + $0x1c] ss:$12 sps:$4 sm:$0xff]   ;;  %v6919_v4 = vld [vmem:[%s8615_s1 + $0x18] ss:$12 sps:$4 sm:$0xff]  }
  0x99   : > { %696 = vmatpush1.bf16.msra.mxu0 %v6916_v2  ;;  %v6920_v5 = vld [vmem:[%s8615_s1 + $0x34] ss:$12 sps:$4 sm:$0xff]   ;;  %s8654_s28 = smov (!%p504_p4, %s7490_s28), 1  ;;  %v6922_v6 = vld [vmem:[%s8615_s1 + $0x30] ss:$12 sps:$4 sm:$0xff]   ;;  %v7407_v21 = vmov 0.0  }
  0x9a   : > { %697 = vmatprep.subr.bf16.mxu0 %v6917_v3  ;;  %v6923_v7 = vld [vmem:[%s8615_s1 + $0x4c] ss:$12 sps:$4 sm:$0xff]   ;;  %s6478_s30 = sshll.u32 %s8654_s28, 4  ;;  %v6925_v8 = vld [vmem:[%s8615_s1 + $0x48] ss:$12 sps:$4 sm:$0xff]   ;;  %6636 = vmatprep.subr.bf16.mxu1 %v7407_v21  ;;  %v7714_v23 = vshrl.u32 %v552_v22, 7 }
  0x9b   : > { %v6926_v9 = vld [vmem:[%s8615_s1 + $0x64] ss:$12 sps:$4 sm:$0xff]   ;;  %v6928_v10 = vld [vmem:[%s8615_s1 + $0x60] ss:$12 sps:$4 sm:$0xff]   ;;  %v6929_v11 = vld [vmem:[%s8615_s1 + $0x7c] ss:$12 sps:$4 sm:$0xff]   ;;  %s7701_s27 = scalar_lea.vmem %s8614_s0, %s6478_s30 }
  0x9c   : > { %v6931_v12 = vld [vmem:[%s8615_s1 + $0x78] ss:$12 sps:$4 sm:$0xff]   ;;  %v6932_v13 = vld [vmem:[%s8615_s1 + $0x94] ss:$12 sps:$4 sm:$0xff]   ;;  %v6934_v14 = vld [vmem:[%s8615_s1 + $0x90] ss:$12 sps:$4 sm:$0xff]  }
  0x9d   : > { %698 = vmatpush1.bf16.msra.mxu0 %v6919_v4  ;;  %v6935_v15 = vld [vmem:[%s8615_s1 + $0xac] ss:$12 sps:$4 sm:$0xff]   ;;  %v6937_v16 = vld [vmem:[%s8615_s1 + $0xa8] ss:$12 sps:$4 sm:$0xff]   ;;  %v515_v17 = vld [vmem:[%s7701_s27] sm:$0xff]  ;;  %v7721_v25 = vsub.s32 0, %v7714_v23 }
  0x9e   : > { %699 = vmatprep.subr.bf16.mxu0 %v6920_v5  ;;  %v516_v18 = vld [vmem:[%s7701_s27 + $0x8] sm:$0xff]  ;;  %v6940_v26 = vld [vmem:[%s8615_s1 + $0x38] ss:$12 sps:$4 sm:$0xff]   ;;  %v7729_v27 = vld [vmem:[%s8616_s2] sm:$0x7]  ;;  %v7732_v28 = vsub.s32 1, %v7714_v23 }
  0x9f   : > { %v517_v19 = vpack.c.bf16 %v516_v18, %v515_v17  ;;  %v6938_v20 = vld [vmem:[%s8615_s1 + $0x8] ss:$12 sps:$4 sm:$0xff]   ;;  %v6939_v24 = vld [vmem:[%s8615_s1 + $0x20] ss:$12 sps:$4 sm:$0xff]   ;;  %v555_v29 = vrot.slane %v7729_v27, %v7721_v25  ;;  %v6941_v30 = vld [vmem:[%s8615_s1 + $0x50] ss:$12 sps:$4 sm:$0xff]  }
  0xa0   : > { %6637 = vmatpush3.bf16.msra.mxu1 %v6938_v20  ;;  %v559_v31 = vrot.slane %v7729_v27, %v7732_v28  ;;  %v6942_v35 = vld [vmem:[%s8615_s1 + $0x68] ss:$12 sps:$4 sm:$0xff]   ;;  %s7408_s20 = smov 96   ;;  %s7409_s22 = smov 64   ;;  %v6943_v40 = vld [vmem:[%s8615_s1 + $0x80] ss:$12 sps:$4 sm:$0xff]  }
  0xa1   : > { %700 = vmatpush1.bf16.msra.mxu0 %v6922_v6  ;;  %6638 = vmatprep.subr.bf16.mxu1 %v7407_v21  ;;  %s7410_s21 = smov 32   ;;  %v6944_v42 = vld [vmem:[%s8615_s1 + $0x98] ss:$12 sps:$4 sm:$0xff]   ;;  %v6945_v43 = vld [vmem:[%s8615_s1 + $0xb0] ss:$12 sps:$4 sm:$0xff]   ;;  %vm7411_vm0 = vmmov 0  }
  0xa2   : > { %701 = vmatprep.subr.bf16.mxu0 %v6923_v7  ;;  %6652 = vmatprep.mubr.msk.bf16.mxu1 %vm7411_vm0, %v7407_v21  ;;  %v7412_v44 = vmov 1983009808   ;;  %v7413_v48 = vmov 1934713408   ;;  %vm1667_vm1 = vcmask 261120   ;;  %vm1856_vm2 = vcmask 130048  }
  0xa3   : > { %v802_v45 = vunpack.c.l.s4 %v7412_v44  ;;  %v834_v49 = vunpack.c.l.s4 %v7413_v48  ;;  %vm2423_vm3 = vcmask 523264   ;;  %vm2426_vm4 = vcmask 785408   ;;  %s8651_s26 = sld [smem:[#allocation16_spill]] }
  0xa4   : > { %6639 = vmatpush3.bf16.msra.mxu1 %v6939_v24 }
  0xa5   : > { %702 = vmatpush1.bf16.msra.mxu0 %v6925_v8  ;;  %6640 = vmatprep.subr.bf16.mxu1 %v7407_v21  ;;  %v803_v50 = vunpack.c.0.s8 %v802_v45  ;;  %v835_v53 = vunpack.c.0.s8 %v834_v49 }
  0xa6   : > { %703 = vmatprep.subr.bf16.mxu0 %v6926_v9 }
  0xa7   : > { %v7792_v54 = vsub.s32 %v803_v50, %v7714_v23  ;;  %v7795_v61 = vsub.s32 %v835_v53, %v7714_v23 }
  0xa8   : > { %6641 = vmatpush3.bf16.msra.mxu1 %v6940_v26 }
  0xa9   : > { %704 = vmatpush1.bf16.msra.mxu0 %v6928_v10  ;;  %6642 = vmatprep.subr.bf16.mxu1 %v7407_v21  ;;  %s513_s13 = scalar_lea.vmem %s8651_s26, %s6478_s30 }
  0xaa   : > { %705 = vmatprep.subr.bf16.mxu0 %v6929_v11 }
  0xac   : > { %6643 = vmatpush3.bf16.msra.mxu1 %v6941_v30 }
  0xad   : > { %706 = vmatpush1.bf16.msra.mxu0 %v6931_v12  ;;  %6644 = vmatprep.subr.bf16.mxu1 %v7407_v21 }
  0xae   : > { %707 = vmatprep.subr.bf16.mxu0 %v6932_v13 }
  0xb0   : > { %6645 = vmatpush3.bf16.msra.mxu1 %v6942_v35 }
  0xb1   : > { %708 = vmatpush1.bf16.msra.mxu0 %v6934_v14  ;;  %6646 = vmatprep.subr.bf16.mxu1 %v7407_v21 }
  0xb2   : > { %709 = vmatprep.subr.bf16.mxu0 %v6935_v15 }
  0xb4   : > { %6647 = vmatpush3.bf16.msra.mxu1 %v6943_v40 }
  0xb5   : > { %710 = vmatpush1.bf16.msra.mxu0 %v6937_v16  ;;  %6648 = vmatprep.subr.bf16.mxu1 %v7407_v21 }
  0xb6   : > { %6680 = vmatprep.subr.bf16.mxu0 %v7407_v21 }
  0xb8   : > { %728 = vmatmul.mubr.bf16.vlgmr.msra.gmra.mrb[0].mxu0 %v517_v19  ;;  %6649 = vmatpush3.bf16.msra.mxu1 %v6944_v42 }
  0xb9   : > { %6650 = vmatprep.subr.bf16.mxu1 %v7407_v21  ;;  %6682 = vmatprep.mubr.msk.bf16.mxu0 %vm7411_vm0, %v7407_v21 }
  0xbc   : > { %6651 = vmatpush3.bf16.msra.mxu1 %v6945_v43 }
  0xbd   : > { %6656 = vmatprep.subr.bf16.mxu1 %v7407_v21 }
  0xbf   : > { %6653 = vmatmul.mubr.bf16.vlgmr.msra.gmra.mrb[0].mxu1 %v517_v19 }
  0xc0   : > { %6658 = vmatprep.mubr.msk.bf16.mxu1 %vm7411_vm0, %v7407_v21 }
 0x18b   : > { %v729_v32 = vpop.f32.mrb[0].mxu0 }
 0x18c   : > { %v7743_v33 = vadd.f32 %v729_v32, %v555_v29  ;;  %v731_v34 = vpop.f32.mrb[1].mxu0 }
 0x18d   : > { %v732_v36 = vadd.f32 %v731_v34, %v559_v31  ;;  %v733_v37 = vpop.f32.mrb[2].mxu0 }
 0x18e   : > { %v735_v38 = vpop.f32.mrb[3].mxu0  ;;  %781 = vrot.lane.b32.xlu0 %v7743_v33, %s7408_s20  ;;  %v7752_v39 = vadd.f32 %v733_v37, %v555_v29 }
 0x18f   : > { %1083 = vrot.lane.b32.xlu1 %v732_v36, %s7409_s22  ;;  %v736_v41 = vadd.f32 %v735_v38, %v559_v31 }
 0x192   : > { %1077 = vrot.lane.b32.xlu0 %v732_v36, %s7408_s20 }
 0x193   : > { %783 = vrot.lane.b32.xlu1 %v7752_v39, %s7408_s20 }
 0x196   : > { %1089 = vrot.lane.b32.xlu0 %v732_v36, %s7410_s21 }
 0x197   : > { %1085 = vrot.lane.b32.xlu1 %v736_v41, %s7409_s22 }
 0x19a   : > { %1079 = vrot.lane.b32.xlu0 %v736_v41, %s7408_s20 }
 0x19b   : > { %1091 = vrot.lane.b32.xlu1 %v736_v41, %s7410_s21 }
 0x19e   : > { %787 = vrot.lane.b32.xlu0 %v7743_v33, %s7409_s22 }
 0x19f   : > { %789 = vrot.lane.b32.xlu1 %v7752_v39, %s7409_s22 }
 0x1a2   : > { %793 = vrot.lane.b32.xlu0 %v7743_v33, %s7410_s21 }
 0x1a3   : > { %795 = vrot.lane.b32.xlu1 %v7752_v39, %s7410_s21 }
 0x200   : > { %v7787_v46 = vpop.permute.xlu0 %781 }
 0x201   : > { %v1084_v47 = vpop.permute.xlu1 %1083 }
 0x202   : > { %v1095_v55 = vcombine.low %v732_v36, %v1084_v47  ;;  %v1096_v56 = vcombine.high %v732_v36, %v1084_v47 }
 0x204   : > { %v1078_v51 = vpop.permute.xlu0 %1077  ;;  %v1103_v62 = vrot.slane %v1095_v55, %v7792_v54  ;;  %v1110_v63 = vrot.slane %v1096_v56, %v7792_v54 }
 0x205   : > { %v7789_v52 = vpop.permute.xlu1 %783 }
 0x208   : > { %v1090_v57 = vpop.permute.xlu0 %1089 }
 0x209   : > { %v1111_v58 = vcombine.low %v1078_v51, %v1090_v57  ;;  %v1112_v59 = vcombine.high %v1078_v51, %v1090_v57  ;;  %v1086_v60 = vpop.permute.xlu1 %1085 }
 0x20a   : > { %v1163_v3 = vcombine.low %v736_v41, %v1086_v60  ;;  %v1164_v4 = vcombine.high %v736_v41, %v1086_v60 }
 0x20b   : > { %v1119_v1 = vrot.slane %v1111_v58, %v7792_v54  ;;  %v1126_v2 = vrot.slane %v1112_v59, %v7792_v54 }
 0x20c   : > { %v1080_v5 = vpop.permute.xlu0 %1079  ;;  %v1171_v17 = vrot.slane %v1163_v3, %v7792_v54  ;;  %v1178_v18 = vrot.slane %v1164_v4, %v7792_v54 }
 0x20d   : > { %v1127_v6 = vcombine.low %v1103_v62, %v1119_v1  ;;  %v1128_v7 = vcombine.high %v1103_v62, %v1119_v1  ;;  %v1143_v8 = vcombine.low %v1110_v63, %v1126_v2  ;;  %v1144_v9 = vcombine.high %v1110_v63, %v1126_v2  ;;  %v1092_v10 = vpop.permute.xlu1 %1091 }
 0x20e   : > { %v1179_v11 = vcombine.low %v1080_v5, %v1092_v10  ;;  %v1180_v12 = vcombine.high %v1080_v5, %v1092_v10 }
 0x20f   : > { %v1135_v13 = vrot.slane %v1127_v6, %v7795_v61  ;;  %v1142_v14 = vrot.slane %v1128_v7, %v7795_v61  ;;  %v1151_v15 = vrot.slane %v1143_v8, %v7795_v61  ;;  %v1158_v16 = vrot.slane %v1144_v9, %v7795_v61 }
 0x210   : > { %v1187_v19 = vrot.slane %v1179_v11, %v7792_v54  ;;  %v1194_v20 = vrot.slane %v1180_v12, %v7792_v54  ;;  %v788_v22 = vpop.permute.xlu0 %787 }
 0x211   : > { %v1231_v24 = vcombine.low %v1135_v13, %v1142_v14  ;;  %v6214_v26 = vcombine.high %v1135_v13, %v1142_v14  ;;  %v1247_v29 = vcombine.low %v1151_v15, %v1158_v16  ;;  %v6215_v30 = vcombine.high %v1151_v15, %v1158_v16  ;;  %v790_v31 = vpop.permute.xlu1 %789 }
 0x212   : > { %v1195_v32 = vcombine.low %v1171_v17, %v1187_v19  ;;  %v1196_v34 = vcombine.high %v1171_v17, %v1187_v19  ;;  %v1211_v35 = vcombine.low %v1178_v18, %v1194_v20  ;;  %v1212_v36 = vcombine.high %v1178_v18, %v1194_v20 }
 0x213   : > { %v7810_v37 = vrot.slane %v1231_v24, %v7792_v54  ;;  %v7813_v38 = vrot.slane %v6214_v26, %v7792_v54  ;;  %v7816_v40 = vrot.slane %v1247_v29, %v7792_v54  ;;  %v7819_v41 = vrot.slane %v6215_v30, %v7792_v54 }
 0x214   : > { %v1203_v42 = vrot.slane %v1195_v32, %v7795_v61  ;;  %v1210_v43 = vrot.slane %v1196_v34, %v7795_v61  ;;  %v1219_v44 = vrot.slane %v1211_v35, %v7795_v61  ;;  %v1226_v45 = vrot.slane %v1212_v36, %v7795_v61  ;;  %v794_v57 = vpop.permute.xlu0 %793 }
 0x215   : > { %v799_v47 = vcombine.low %v7743_v33, %v788_v22  ;;  %v800_v48 = vcombine.high %v7743_v33, %v788_v22  ;;  %v867_v49 = vcombine.low %v7752_v39, %v790_v31  ;;  %v868_v50 = vcombine.high %v7752_v39, %v790_v31  ;;  %v796_v58 = vpop.permute.xlu1 %795 }
 0x216   : > { %v1299_v51 = vcombine.low %v1203_v42, %v1210_v43  ;;  %v6216_v53 = vcombine.high %v1203_v42, %v1210_v43  ;;  %v1315_v55 = vcombine.low %v1219_v44, %v1226_v45  ;;  %v6217_v56 = vcombine.high %v1219_v44, %v1226_v45 }
 0x217   : > { %v807_v59 = vrot.slane %v799_v47, %v7792_v54  ;;  %v814_v60 = vrot.slane %v800_v48, %v7792_v54  ;;  %v815_v1 = vcombine.low %v7787_v46, %v794_v57  ;;  %v816_v2 = vcombine.high %v7787_v46, %v794_v57 }
 0x218   : > { %v7832_v62 = vrot.slane %v1299_v51, %v7792_v54  ;;  %v7835_v63 = vrot.slane %v6216_v53, %v7792_v54  ;;  %v7838_v33 = vrot.slane %v1315_v55, %v7792_v54  ;;  %v7841_v39 = vrot.slane %v6217_v56, %v7792_v54 }
 0x219   : > { %v883_v3 = vcombine.low %v7789_v52, %v796_v58  ;;  %v884_v4 = vcombine.high %v7789_v52, %v796_v58  ;;  %v875_v5 = vrot.slane %v867_v49, %v7792_v54  ;;  %v882_v6 = vrot.slane %v868_v50, %v7792_v54 }
 0x21a   : > { %v1263_v7 = vcombine.low %v7810_v37, %v7813_v38  ;;  %v1279_v8 = vcombine.low %v7816_v40, %v7819_v41  ;;  %v823_v9 = vrot.slane %v815_v1, %v7792_v54  ;;  %v830_v10 = vrot.slane %v816_v2, %v7792_v54 }
 0x21b   : > { %v891_v46 = vrot.slane %v883_v3, %v7792_v54  ;;  %v898_v11 = vrot.slane %v884_v4, %v7792_v54  ;;  %v1331_v13 = vcombine.low %v7832_v62, %v7835_v63  ;;  %v1347_v14 = vcombine.low %v7838_v33, %v7841_v39 }
 0x21c   : > { %v7858_v52 = vrot.slane %v1263_v7, %v7795_v61  ;;  %v1287_v12 = vrot.slane %v1279_v8, %v7795_v61  ;;  %v831_v15 = vcombine.low %v807_v59, %v823_v9  ;;  %v832_v16 = vcombine.high %v807_v59, %v823_v9 }
 0x21d   : > { %v847_v17 = vcombine.low %v814_v60, %v830_v10  ;;  %v848_v18 = vcombine.high %v814_v60, %v830_v10  ;;  %v899_v19 = vcombine.low %v875_v5, %v891_v46  ;;  %v900_v20 = vcombine.high %v875_v5, %v891_v46 }
 0x21e   : > { %v915_v22 = vcombine.low %v882_v6, %v898_v11  ;;  %v916_v24 = vcombine.high %v882_v6, %v898_v11  ;;  %v839_v26 = vrot.slane %v831_v15, %v7795_v61  ;;  %v846_v29 = vrot.slane %v832_v16, %v7795_v61 }
 0x21f   : > { %v855_v30 = vrot.slane %v847_v17, %v7795_v61  ;;  %v862_v31 = vrot.slane %v848_v18, %v7795_v61  ;;  %v907_v32 = vrot.slane %v899_v19, %v7795_v61  ;;  %v914_v34 = vrot.slane %v900_v20, %v7795_v61 }
 0x220   : > { %v923_v35 = vrot.slane %v915_v22, %v7795_v61  ;;  %v930_v36 = vrot.slane %v916_v24, %v7795_v61  ;;  %v935_v42 = vcombine.low %v839_v26, %v846_v29  ;;  %v6210_v43 = vcombine.high %v839_v26, %v846_v29 }
 0x221   : > { %v951_v44 = vcombine.low %v855_v30, %v862_v31  ;;  %v6211_v45 = vcombine.high %v855_v30, %v862_v31  ;;  %v1003_v47 = vcombine.low %v907_v32, %v914_v34  ;;  %v6212_v48 = vcombine.high %v907_v32, %v914_v34 }
 0x222   : > { %v1019_v49 = vcombine.low %v923_v35, %v930_v36  ;;  %v6213_v50 = vcombine.high %v923_v35, %v930_v36  ;;  %v942_v51 = vrot.slane %v935_v42, %v7792_v54  ;;  %v950_v53 = vrot.slane %v6210_v43, %v7792_v54 }
 0x223   : > { %v958_v55 = vrot.slane %v951_v44, %v7792_v54  ;;  %v966_v56 = vrot.slane %v6211_v45, %v7792_v54  ;;  %v1010_v57 = vrot.slane %v1003_v47, %v7792_v54  ;;  %v1018_v58 = vrot.slane %v6212_v48, %v7792_v54 }
 0x224   : > { %v1026_v59 = vrot.slane %v1019_v49, %v7792_v54  ;;  %v1034_v60 = vrot.slane %v6213_v50, %v7792_v54  ;;  %v967_v1 = vcombine.low %v942_v51, %v950_v53  ;;  %v1339_v3 = vrot.slane %v1331_v13, %v7795_v61 }
 0x225   : > { %v983_v2 = vcombine.low %v958_v55, %v966_v56  ;;  %v1355_v4 = vrot.slane %v1347_v14, %v7795_v61  ;;  %v1035_v5 = vcombine.low %v1010_v57, %v1018_v58  ;;  %v1295_v46 = vcombine.low %v7858_v52, %v1287_v12 }
 0x226   : > { %v1051_v6 = vcombine.low %v1026_v59, %v1034_v60  ;;  %v975_v7 = vrot.slane %v967_v1, %v7795_v61  ;;  %v1332_v18 = vcombine.high %v7832_v62, %v7835_v63  ;;  %v1348_v19 = vcombine.high %v7838_v33, %v7841_v39 }
 0x227   : > { %v991_v8 = vrot.slane %v983_v2, %v7795_v61  ;;  %v1043_v9 = vrot.slane %v1035_v5, %v7795_v61  ;;  %v1363_v11 = vcombine.low %v1339_v3, %v1355_v4  ;;  %v1364_v14 = vcombine.high %v1339_v3, %v1355_v4 }
 0x228   : > { %v1059_v10 = vrot.slane %v1051_v6, %v7795_v61  ;;  %v1296_v20 = vcombine.high %v7858_v52, %v1287_v12  ;;  %v1264_v22 = vcombine.high %v7810_v37, %v7813_v38  ;;  %v1280_v24 = vcombine.high %v7816_v40, %v7819_v41 }
 0x229   : > { %v1367_v15 = vpack.c.bf16 %v1363_v11, %v1295_v46  ;;  %v999_v16 = vcombine.low %v975_v7, %v991_v8  ;;  %v1346_v30 = vrot.slane %v1332_v18, %v7795_v61  ;;  %v1362_v62 = vrot.slane %v1348_v19, %v7795_v61 }
 0x22a   : > { %v1067_v17 = vcombine.low %v1043_v9, %v1059_v10  ;;  %v1368_v29 = vpack.c.bf16 %v1364_v14, %v1296_v20  ;;  %v1278_v63 = vrot.slane %v1264_v22, %v7795_v61  ;;  %v1294_v33 = vrot.slane %v1280_v24, %v7795_v61 }
 0x22b   : > { %v1672_v13 = vsel %vm1667_vm1, %v1367_v15, 0  ;;  %v1365_v52 = vcombine.low %v1346_v30, %v1362_v62  ;;  %v968_v12 = vcombine.high %v942_v51, %v950_v53  ;;  %v984_v37 = vcombine.high %v958_v55, %v966_v56 }
 0x22c   : > { %6657 = vmatpush3.bf16.xpose.msra.mxu1 %v1672_v13  ;;  %v1071_v26 = vpack.c.bf16 %v1067_v17, %v999_v16  ;;  %v1719_v39 = vsel %vm1667_vm1, %v1368_v29, 0  ;;  %v1036_v38 = vcombine.high %v1010_v57, %v1018_v58  ;;  %v1052_v40 = vcombine.high %v1026_v59, %v1034_v60  ;;  %v772_v59 = vpop.f32.mrb[0].mxu1 }
 0x22d   : > { %6662 = vmatprep.subr.bf16.mxu1 %v7407_v21  ;;  %v1000_v41 = vcombine.high %v975_v7, %v991_v8  ;;  %v1068_v31 = vcombine.high %v1043_v9, %v1059_v10  ;;  %v1297_v32 = vcombine.low %v1278_v63, %v1294_v33  ;;  %v982_v35 = vrot.slane %v968_v12, %v7795_v61  ;;  %v6654_v60 = vpop.f32.mrb[1].mxu1 }
 0x22e   : > { %v998_v36 = vrot.slane %v984_v37, %v7795_v61  ;;  %v1050_v42 = vrot.slane %v1036_v38, %v7795_v61  ;;  %v1066_v43 = vrot.slane %v1052_v40, %v7795_v61  ;;  %v1366_v47 = vcombine.high %v1346_v30, %v1362_v62  ;;  %v775_v1 = vpop.f32.mrb[2].mxu1 }
 0x22f   : > { %v1369_v34 = vpack.c.bf16 %v1365_v52, %v1297_v32  ;;  %v1072_v44 = vpack.c.bf16 %v1068_v31, %v1000_v41  ;;  %v1298_v50 = vcombine.high %v1278_v63, %v1294_v33  ;;  %v6655_v2 = vpop.f32.mrb[3].mxu1  ;;  %v7937_v63 = vsub.s32 2, %v7714_v23 }
 0x230   : > { %v1001_v48 = vcombine.low %v982_v35, %v998_v36  ;;  %v1069_v49 = vcombine.low %v1050_v42, %v1066_v43  ;;  %v1002_v56 = vcombine.high %v982_v35, %v998_v36  ;;  %v1070_v57 = vcombine.high %v1050_v42, %v1066_v43 }
 0x231   : > { %v1766_v45 = vsel %vm1667_vm1, %v1369_v34, 0  ;;  %v1370_v51 = vpack.c.bf16 %v1366_v47, %v1298_v50  ;;  %v563_v33 = vrot.slane %v7729_v27, %v7937_v63 }
 0x232   : > { %v1073_v53 = vpack.c.bf16 %v1069_v49, %v1001_v48  ;;  %v1074_v58 = vpack.c.bf16 %v1070_v57, %v1002_v56 }
 0x233   : > { %6659 = vmatmul.mubr.msk.bf16.vlgmr.msra.gmra.mrb[4].mxu1 %vm1667_vm1, %v1071_v26  ;;  %v1813_v55 = vsel %vm1667_vm1, %v1370_v51, 0  ;;  %v7947_v52 = vadd.f32 %v775_v1, %v563_v33 }
 0x234   : > { %6663 = vmatpush3.bf16.xpose.msra.mxu1 %v1719_v39  ;;  %6664 = vmatprep.mubr.msk.bf16.mxu1 %vm7411_vm0, %v7407_v21  ;;  %v7941_v39 = vadd.f32 %v772_v59, %v563_v33 }
 0x235   : > { %6668 = vmatprep.subr.bf16.mxu1 %v7407_v21 }
 0x23b   : > { %6665 = vmatmul.mubr.msk.bf16.vlgmr.msra.gmra.mrb[8].mxu1 %vm1667_vm1, %v1072_v44 }
 0x23c   : > { %6669 = vmatpush3.bf16.xpose.msra.mxu1 %v1766_v45  ;;  %6670 = vmatprep.mubr.msk.bf16.mxu1 %vm7411_vm0, %v7407_v21 }
 0x23d   : > { %6674 = vmatprep.subr.bf16.mxu1 %v7407_v21 }
 0x243   : > { %6671 = vmatmul.mubr.msk.bf16.vlgmr.msra.gmra.mrb[12].mxu1 %vm1667_vm1, %v1073_v53 }
 0x244   : > { %6675 = vmatpush3.bf16.xpose.msra.mxu1 %v1813_v55  ;;  %6676 = vmatprep.mubr.msk.bf16.mxu1 %vm7411_vm0, %v7407_v21 }
 0x245   : > { %6686 = vmatprep.subr.bf16.mxu1 %v7407_v21 }
 0x24b   : > { %6677 = vmatmul.mubr.msk.bf16.vlgmr.msra.gmra.mrb[16].mxu1 %vm1667_vm1, %v1074_v58 }
 0x24c   : > { %6688 = vmatprep.mubr.msk.bf16.mxu1 %vm7411_vm0, %v7407_v21 }
 0x306   : > { %v1708_v3 = vpop.f32.mrb[4].mxu1 }
 0x307   : > { %v6660_v4 = vpop.f32.mrb[5].mxu1  ;;  %v1857_v5 = vsel %vm1856_vm2, %v1708_v3, -inf }
 0x308   : > { %1858 = vmax.xlane.f32.xlu0 %v1857_v5  ;;  %v1711_v6 = vpop.f32.mrb[6].mxu1 }
 0x309   : > { %v6661_v7 = vpop.f32.mrb[7].mxu1  ;;  %v1860_v8 = vsel %vm1856_vm2, %v1711_v6, -inf }
 0x30a   : > { %1861 = vmax.xlane.f32.xlu1 %v1860_v8 }
 0x30e   : > { %v1755_v9 = vpop.f32.mrb[8].mxu1 }
 0x30f   : > { %v6666_v10 = vpop.f32.mrb[9].mxu1  ;;  %v1863_v46 = vsel %vm1856_vm2, %v1755_v9, -inf }
 0x310   : > { %1864 = vmax.xlane.f32.xlu0 %v1863_v46  ;;  %v1758_v11 = vpop.f32.mrb[10].mxu1 }
 0x311   : > { %v6667_v15 = vpop.f32.mrb[11].mxu1  ;;  %v1866_v16 = vsel %vm1856_vm2, %v1758_v11, -inf }
 0x314   : > { %1867 = vmax.xlane.f32.xlu0 %v1866_v16 }
 0x316   : > { %v1802_v17 = vpop.f32.mrb[12].mxu1 }
 0x317   : > { %v6672_v13 = vpop.f32.mrb[13].mxu1  ;;  %v1869_v14 = vsel %vm1856_vm2, %v1802_v17, -inf }
 0x318   : > { %1870 = vmax.xlane.f32.xlu1 %v1869_v14  ;;  %v7930_v18 = vpop.f32.mrb[14].mxu1 }
 0x319   : > { %v6673_v19 = vpop.f32.mrb[15].mxu1  ;;  %v1872_v20 = vsel %vm1856_vm2, %v7930_v18, -inf }
 0x31a   : > { %1873 = vmax.xlane.f32.xlu0 %v1872_v20 }
 0x31e   : > { %v1849_v22 = vpop.f32.mrb[16].mxu1 }
 0x31f   : > { %v6678_v24 = vpop.f32.mrb[17].mxu1  ;;  %v1875_v26 = vsel %vm1856_vm2, %v1849_v22, -inf }
 0x320   : > { %1876 = vmax.xlane.f32.xlu1 %v1875_v26  ;;  %v1852_v29 = vpop.f32.mrb[18].mxu1 }
 0x321   : > { %v6679_v30 = vpop.f32.mrb[19].mxu1  ;;  %v1878_v62 = vsel %vm1856_vm2, %v1852_v29, -inf }
 0x322   : > { %1879 = vmax.xlane.f32.xlu0 %v1878_v62 }
 0x331   : > { %1373 = vrot.lane.b32.xlu1 %v7941_v39, %s7408_s20 }
 0x335   : > { %1379 = vrot.lane.b32.xlu1 %v7941_v39, %s7409_s22 }
 0x338   : > { %1375 = vrot.lane.b32.xlu0 %v7947_v52, %s7408_s20 }
 0x339   : > { %1381 = vrot.lane.b32.xlu1 %v7947_v52, %s7409_s22 }
 0x33c   : > { %1385 = vrot.lane.b32.xlu0 %v7941_v39, %s7410_s21 }
 0x395   : > { %v1859_v27 = vpop.xlane.xlu0 %1858 }
 0x396   : > { %v1881_v12 = vsub.f32 %v1708_v3, %v1859_v27 }
 0x397   : > { %v1862_v37 = vpop.xlane.xlu1 %1861 }
 0x398   : > { %v1889_v38 = vmul.f32 1.442695, %v1881_v12  ;;  %v1882_v40 = vsub.f32 %v1711_v6, %v1862_v37 }
 0x39a   : > { %7154 = vpow2.f32 %v1889_v38  ;;  %v1891_v41 = vmul.f32 1.442695, %v1882_v40 }
 0x39c   : > { %7156 = vpow2.f32 %v1891_v41 }
 0x39d   : > { %v1865_v31 = vpop.xlane.xlu0 %1864 }
 0x39e   : > { %v1883_v32 = vsub.f32 %v1755_v9, %v1865_v31 }
 0x3a0   : > { %v1893_v34 = vmul.f32 1.442695, %v1883_v32 }
 0x3a1   : > { %v1868_v35 = vpop.xlane.xlu0 %1867 }
 0x3a2   : > { %7158 = vpow2.f32 %v1893_v34  ;;  %v1884_v36 = vsub.f32 %v1758_v11, %v1868_v35 }
 0x3a4   : > { %v7955_v42 = vpop.eup %7154  ;;  %v1895_v43 = vmul.f32 1.442695, %v1884_v36 }
 0x3a5   : > { %v1871_v44 = vpop.xlane.xlu1 %1870  ;;  %v1905_v45 = vsel %vm1856_vm2, %v7955_v42, 0.0 }
 0x3a6   : > { %v7959_v47 = vpop.eup %7156  ;;  %7160 = vpow2.f32 %v1895_v43  ;;  %v1885_v48 = vsub.f32 %v1802_v17, %v1871_v44  ;;  %1906 = vadd.xlane.f32.xlu1 %v1905_v45 }
 0x3a7   : > { %v1908_v49 = vsel %vm1856_vm2, %v7959_v47, 0.0  ;;  %v1874_v51 = vpop.xlane.xlu0 %1873 }
 0x3a8   : > { %v1897_v50 = vmul.f32 1.442695, %v1885_v48  ;;  %1909 = vadd.xlane.f32.xlu0 %v1908_v49  ;;  %v1886_v10 = vsub.f32 %v7930_v18, %v1874_v51 }
 0x3aa   : > { %7162 = vpow2.f32 %v1897_v50  ;;  %v1899_v46 = vmul.f32 1.442695, %v1886_v10 }
 0x3ac   : > { %v7963_v53 = vpop.eup %7158 }
 0x3ad   : > { %v1877_v55 = vpop.xlane.xlu1 %1876  ;;  %v1911_v56 = vsel %vm1856_vm2, %v7963_v53, 0.0 }
 0x3ae   : > { %v1887_v57 = vsub.f32 %v1849_v22, %v1877_v55  ;;  %1912 = vadd.xlane.f32.xlu1 %v1911_v56 }
 0x3af   : > { %v1880_v58 = vpop.xlane.xlu0 %1879 }
 0x3b0   : > { %v7967_v59 = vpop.eup %7160  ;;  %v1901_v60 = vmul.f32 1.442695, %v1887_v57  ;;  %v1888_v1 = vsub.f32 %v1852_v29, %v1880_v58 }
 0x3b1   : > { %v1914_v2 = vsel %vm1856_vm2, %v7967_v59, 0.0  ;;  %v1374_v17 = vpop.permute.xlu1 %1373 }
 0x3b2   : > { %7164 = vpow2.f32 %v1901_v60  ;;  %v1903_v3 = vmul.f32 1.442695, %v1888_v1  ;;  %1915 = vadd.xlane.f32.xlu0 %v1914_v2 }
 0x3b3   : > { %v1376_v16 = vpop.permute.xlu0 %1375 }
 0x3b4   : > { %v7971_v4 = vpop.eup %7162  ;;  %7166 = vpow2.f32 %v1903_v3 }
 0x3b5   : > { %v1917_v5 = vsel %vm1856_vm2, %v7971_v4, 0.0  ;;  %7168 = vpow2.f32 %v1899_v46  ;;  %v1380_v14 = vpop.permute.xlu1 %1379 }
 0x3b6   : > { %1918 = vadd.xlane.f32.xlu0 %v1917_v5  ;;  %v1391_v22 = vcombine.low %v7941_v39, %v1380_v14  ;;  %v1392_v24 = vcombine.high %v7941_v39, %v1380_v14 }
 0x3b7   : > { %v1386_v13 = vpop.permute.xlu0 %1385 }
 0x3b8   : > { %v1407_v19 = vcombine.low %v1374_v17, %v1386_v13  ;;  %v1408_v20 = vcombine.high %v1374_v17, %v1386_v13  ;;  %v1399_v30 = vrot.slane %v1391_v22, %v7792_v54  ;;  %v1406_v62 = vrot.slane %v1392_v24, %v7792_v54 }
 0x3b9   : > { %v1382_v29 = vpop.permute.xlu1 %1381 }
 0x3ba   : > { %v1415_v18 = vrot.slane %v1407_v19, %v7792_v54  ;;  %v1422_v26 = vrot.slane %v1408_v20, %v7792_v54  ;;  %v1459_v35 = vcombine.low %v7947_v52, %v1382_v29  ;;  %v1460_v36 = vcombine.high %v7947_v52, %v1382_v29 }
 0x3bc   : > { %v7975_v6 = vpop.eup %7164  ;;  %v1423_v33 = vcombine.low %v1399_v30, %v1415_v18  ;;  %v1424_v27 = vcombine.high %v1399_v30, %v1415_v18  ;;  %v1439_v12 = vcombine.low %v1406_v62, %v1422_v26  ;;  %v1440_v37 = vcombine.high %v1406_v62, %v1422_v26 }
 0x3bd   : > { %v1923_v7 = vsel %vm1856_vm2, %v7975_v6, 0.0  ;;  %v1467_v56 = vrot.slane %v1459_v35, %v7792_v54  ;;  %v1474_v57 = vrot.slane %v1460_v36, %v7792_v54 }
 0x3be   : > { %v7979_v8 = vpop.eup %7166  ;;  %1924 = vadd.xlane.f32.xlu0 %v1923_v7  ;;  %v1431_v40 = vrot.slane %v1423_v33, %v7795_v61  ;;  %v1438_v41 = vrot.slane %v1424_v27, %v7795_v61  ;;  %v1447_v39 = vrot.slane %v1439_v12, %v7795_v61  ;;  %v1454_v31 = vrot.slane %v1440_v37, %v7795_v61 }
 0x3bf   : > { %1387 = vrot.lane.b32.xlu1 %v7947_v52, %s7410_s21  ;;  %v1926_v9 = vsel %vm1856_vm2, %v7979_v8, 0.0  ;;  %v7986_v11 = vpop.eup %7168 }
 0x3c0   : > { %v1920_v15 = vsel %vm1856_vm2, %v7986_v11, 0.0  ;;  %v1527_v43 = vcombine.low %v1431_v40, %v1438_v41  ;;  %v6218_v44 = vcombine.high %v1431_v40, %v1438_v41  ;;  %v1543_v45 = vcombine.low %v1447_v39, %v1454_v31 }
 0x3c1   : > { %v6219_v48 = vcombine.high %v1447_v39, %v1454_v31 }
 0x3c2   : > { %1927 = vadd.xlane.f32.xlu0 %v1926_v9  ;;  %v1534_v58 = vrot.slane %v1527_v43, %v7792_v54  ;;  %v1542_v1 = vrot.slane %v6218_v44, %v7792_v54  ;;  %v1550_v2 = vrot.slane %v1543_v45, %v7792_v54 }
 0x3c3   : > { %v1558_v3 = vrot.slane %v6219_v48, %v7792_v54 }
 0x3c4   : > { %v1559_v14 = vcombine.low %v1534_v58, %v1542_v1 }
 0x3c5   : > { %v1575_v19 = vcombine.low %v1550_v2, %v1558_v3  ;;  %v1576_v40 = vcombine.high %v1550_v2, %v1558_v3 }
 0x3c6   : > { %v1567_v12 = vrot.slane %v1559_v14, %v7795_v61 }
 0x3c7   : > { %v1583_v37 = vrot.slane %v1575_v19, %v7795_v61 }
 0x3e3   : > { %1921 = vadd.xlane.f32.xlu1 %v1920_v15 }
 0x433   : > { %v1907_v38 = vpop.xlane.xlu1 %1906 }
 0x434   : > { %7170 = vrcp.f32 %v1907_v38  ;;  %v1560_v38 = vcombine.high %v1534_v58, %v1542_v1 }
 0x435   : > { %v1910_v34 = vpop.xlane.xlu0 %1909 }
 0x436   : > { %7172 = vrcp.f32 %v1910_v34 }
 0x43b   : > { %v1913_v32 = vpop.xlane.xlu1 %1912 }
 0x43e   : > { %v7171_v33 = vpop.eup %7170 }
 0x43f   : > { %v1388_v49 = vpop.permute.xlu1 %1387  ;;  %v1916_v55 = vpop.xlane.xlu0 %1915 }
 0x440   : > { %v1475_v50 = vcombine.low %v1376_v16, %v1388_v49  ;;  %v1476_v51 = vcombine.high %v1376_v16, %v1388_v49  ;;  %7174 = vrcp.f32 %v1916_v55  ;;  %v7173_v41 = vpop.eup %7172  ;;  %v1591_v49 = vcombine.low %v1567_v12, %v1583_v37 }
 0x441   : > { %7176 = vrcp.f32 %v1913_v32 }
 0x442   : > { %v1483_v60 = vrot.slane %v1475_v50, %v7792_v54  ;;  %v1490_v52 = vrot.slane %v1476_v51, %v7792_v54  ;;  %v1574_v50 = vrot.slane %v1560_v38, %v7795_v61  ;;  %v1590_v51 = vrot.slane %v1576_v40, %v7795_v61 }
 0x443   : > { %v8014_v13 = vpop.xlane.xlu0 %1918 }
 0x444   : > { %v1491_v5 = vcombine.low %v1467_v56, %v1483_v60  ;;  %v1492_v7 = vcombine.high %v1467_v56, %v1483_v60  ;;  %v1507_v9 = vcombine.low %v1474_v57, %v1490_v52  ;;  %v1508_v10 = vcombine.high %v1474_v57, %v1490_v52 }
 0x445   : > { %v1592_v57 = vcombine.high %v1567_v12, %v1583_v37  ;;  %v1938_v60 = vmul.f32 %v7173_v41, %v7959_v47 }
 0x446   : > { %v1499_v46 = vrot.slane %v1491_v5, %v7795_v61  ;;  %v1506_v15 = vrot.slane %v1492_v7, %v7795_v61  ;;  %v1515_v16 = vrot.slane %v1507_v9, %v7795_v61  ;;  %v1522_v17 = vrot.slane %v1508_v10, %v7795_v61 }
 0x447   : > { %v1937_v7 = vmul.f32 %v7171_v33, %v7955_v42  ;;  %v1593_v10 = vcombine.low %v1574_v50, %v1590_v51 }
 0x448   : > { %v1595_v20 = vcombine.low %v1499_v46, %v1506_v15  ;;  %v6220_v22 = vcombine.high %v1499_v46, %v1506_v15  ;;  %v1611_v24 = vcombine.low %v1515_v16, %v1522_v17  ;;  %v6221_v18 = vcombine.high %v1515_v16, %v1522_v17 }
 0x449   : > { %v1594_v46 = vcombine.high %v1574_v50, %v1590_v51  ;;  %v1945_v15 = vpack.c.bf16 %v1938_v60, %v1937_v7 }
 0x44a   : > { %v1602_v26 = vrot.slane %v1595_v20, %v7792_v54  ;;  %v1610_v29 = vrot.slane %v6220_v22, %v7792_v54  ;;  %v1618_v30 = vrot.slane %v1611_v24, %v7792_v54  ;;  %v1626_v62 = vrot.slane %v6221_v18, %v7792_v54  ;;  %v7175_v34 = vpop.eup %7174 }
 0x44b   : > { %v1925_v27 = vpop.xlane.xlu0 %1924  ;;  %v7177_v45 = vpop.eup %7176  ;;  %v1940_v52 = vmul.f32 %v7175_v34, %v7967_v59 }
 0x44c   : > { %v1627_v39 = vcombine.low %v1602_v26, %v1610_v29  ;;  %v1643_v31 = vcombine.low %v1618_v30, %v1626_v62  ;;  %v1628_v32 = vcombine.high %v1602_v26, %v1610_v29  ;;  %v1644_v35 = vcombine.high %v1618_v30, %v1626_v62  ;;  %v6949_v30 = vld [vmem:[#allocation2 + $0x18] sm:$0xff]  }
 0x44d   : > { %7178 = vrcp.f32 %v1925_v27  ;;  %v1939_v9 = vmul.f32 %v7177_v45, %v7963_v53 }
 0x44e   : > { %v1635_v36 = vrot.slane %v1627_v39, %v7795_v61  ;;  %v1651_v43 = vrot.slane %v1643_v31, %v7795_v61  ;;  %v1642_v44 = vrot.slane %v1628_v32, %v7795_v61  ;;  %v1658_v55 = vrot.slane %v1644_v35, %v7795_v61 }
 0x44f   : > { %v1928_v48 = vpop.xlane.xlu0 %1927  ;;  %v1946_v16 = vpack.c.bf16 %v1940_v52, %v1939_v9 }
 0x450   : > { %7180 = vrcp.f32 %v1928_v48  ;;  %v1659_v56 = vcombine.low %v1635_v36, %v1651_v43  ;;  %v1660_v58 = vcombine.high %v1635_v36, %v1651_v43  ;;  %v1661_v3 = vcombine.low %v1642_v44, %v1658_v55 }
 0x451   : > { %v1662_v5 = vcombine.high %v1642_v44, %v1658_v55  ;;  %7182 = vrcp.f32 %v8014_v13  ;;  %v6948_v13 = vld [vmem:[#allocation2 + $0x10] sm:$0xff]  }
 0x452   : > { %v1663_v1 = vpack.c.bf16 %v1659_v56, %v1591_v49  ;;  %v1664_v2 = vpack.c.bf16 %v1660_v58, %v1592_v57  ;;  %v1665_v47 = vpack.c.bf16 %v1661_v3, %v1593_v10 }
 0x453   : > { %v1666_v59 = vpack.c.bf16 %v1662_v5, %v1594_v46 }
 0x454   : > { %6681 = vmatpush3.bf16.msra.mxu0 %v1663_v1  ;;  %6687 = vmatpush3.bf16.msra.mxu1 %v1664_v2 }
 0x455   : > { %6692 = vmatprep.subr.bf16.mxu0 %v7407_v21  ;;  %6698 = vmatprep.subr.bf16.mxu1 %v7407_v21 }
 0x457   : > { %6683 = vmatmul.mubr.msk.bf16.vlgmr.msra.gmra.mrb[4].mxu0 %vm1856_vm2, %v1945_v15  ;;  %6689 = vmatmul.mubr.msk.bf16.vlgmr.msra.gmra.mrb[20].mxu1 %vm1856_vm2, %v1946_v16  ;;  %v7179_v17 = vpop.eup %7178 }
 0x458   : > { %6693 = vmatpush3.bf16.msra.mxu0 %v1665_v47  ;;  %6699 = vmatpush3.bf16.msra.mxu1 %v1666_v59  ;;  %v1943_v53 = vmul.f32 %v7179_v17, %v7975_v6  ;;  %v6946_v6 = vld [vmem:[#allocation2] sm:$0xff]  }
 0x459   : > { %6700 = vmatprep.mubr.msk.bf16.mxu1 %vm7411_vm0, %v7407_v21  ;;  %6694 = vmatprep.mubr.msk.bf16.mxu0 %vm7411_vm0, %v7407_v21 }
 0x45a   : > { %v7181_v42 = vpop.eup %7180  ;;  %6704 = vmatprep.subr.bf16.mxu0 %v7407_v21 }
 0x45b   : > { %v1944_v14 = vmul.f32 %v7181_v42, %v7979_v8  ;;  %v7183_v22 = vpop.eup %7182  ;;  %v6947_v8 = vld [vmem:[#allocation2 + $0x8] sm:$0xff]  }
 0x45c   : > { %v1941_v18 = vmul.f32 %v7183_v22, %v7971_v4  ;;  %v6950_v4 = vld [vmem:[#allocation2 + $0x20] sm:$0xff]  }
 0x45d   : > { %v1948_v19 = vpack.c.bf16 %v1944_v14, %v1943_v53 }
 0x45f   : > { %6701 = vmatmul.mubr.msk.bf16.vlgmr.msra.gmra.mrb[24].mxu1 %vm1856_vm2, %v1948_v19 }
 0x460   : > { %2832 = vmatprep.mubr.bf16.mxu1 %v7406_v0 }
 0x470   : > { %v1922_v20 = vpop.xlane.xlu1 %1921 }
 0x471   : > { %7184 = vrcp.f32 %v1922_v20 }
 0x47b   : > { %v7185_v24 = vpop.eup %7184 }
 0x47c   : > { %v1942_v26 = vmul.f32 %v7185_v24, %v7986_v11  ;;  %v6951_v11 = vld [vmem:[#allocation2 + $0x28] sm:$0xff]  }
 0x47e   : > { %v1947_v29 = vpack.c.bf16 %v1942_v26, %v1941_v18 }
 0x480   : > { %6695 = vmatmul.mubr.msk.bf16.vlgmr.msra.gmra.mrb[8].mxu0 %vm1856_vm2, %v1947_v29 }
 0x481   : > { %6720 = vmatprep.mubr.msk.bf16.mxu0 %vm7411_vm0, %v7407_v21  ;;  %6705 = vmatpush3.bf16.msra.mxu0 %v6946_v6 }
 0x482   : > { %6706 = vmatprep.subr.bf16.mxu0 %v7407_v21 }
 0x485   : > { %6707 = vmatpush3.bf16.msra.mxu0 %v6947_v8 }
 0x486   : > { %6708 = vmatprep.subr.bf16.mxu0 %v7407_v21 }
 0x489   : > { %6709 = vmatpush3.bf16.msra.mxu0 %v6948_v13 }
 0x48a   : > { %6710 = vmatprep.subr.bf16.mxu0 %v7407_v21 }
 0x48d   : > { %6711 = vmatpush3.bf16.msra.mxu0 %v6949_v30 }
 0x48e   : > { %6712 = vmatprep.subr.bf16.mxu0 %v7407_v21 }
 0x491   : > { %6713 = vmatpush3.bf16.msra.mxu0 %v6950_v4 }
 0x492   : > { %6714 = vmatprep.subr.bf16.mxu0 %v7407_v21 }
 0x495   : > { %6715 = vmatpush3.bf16.msra.mxu0 %v6951_v11 }
 0x496   : > { %6716 = vmatprep.subr.bf16.mxu0 %v7407_v21 }
 0x52a   : > { %v1986_v62 = vpop.f32.mrb[4].mxu0  ;;  %v2030_v33 = vpop.f32.mrb[20].mxu1 }
 0x52b   : > { %v6684_v27 = vpop.f32.mrb[5].mxu0  ;;  %v6690_v12 = vpop.f32.mrb[21].mxu1 }
 0x52c   : > { %v1989_v37 = vpop.f32.mrb[6].mxu0  ;;  %v2033_v38 = vpop.f32.mrb[22].mxu1 }
 0x52d   : > { %v6685_v40 = vpop.f32.mrb[7].mxu0  ;;  %v6691_v41 = vpop.f32.mrb[23].mxu1 }
 0x532   : > { %v2118_v39 = vpop.f32.mrb[24].mxu1 }
 0x533   : > { %v2141_v31 = vcombine.low %v2030_v33, %v2118_v39  ;;  %v2142_v32 = vcombine.high %v2030_v33, %v2118_v39  ;;  %v6702_v34 = vpop.f32.mrb[25].mxu1  ;;  %v6952_v39 = vld [vmem:[#allocation2 + $0x30] sm:$0xff]  }
 0x534   : > { %v2121_v35 = vpop.f32.mrb[26].mxu1  ;;  %6717 = vmatpush3.bf16.msra.mxu0 %v6952_v39  ;;  %v6954_v39 = vld [vmem:[#allocation4] ss:$16 sps:$4 sm:$0xff]  }
 0x535   : > { %v2209_v36 = vcombine.low %v2033_v38, %v2121_v35  ;;  %v2210_v43 = vcombine.high %v2033_v38, %v2121_v35  ;;  %v6703_v44 = vpop.f32.mrb[27].mxu1  ;;  %v2149_v51 = vrot.slane %v2141_v31, %v7792_v54  ;;  %v2156_v55 = vrot.slane %v2142_v32, %v7792_v54  ;;  %6718 = vmatprep.subr.bf16.mxu0 %v7407_v21 }
 0x537   : > { %v2217_v9 = vrot.slane %v2209_v36, %v7792_v54  ;;  %v2224_v10 = vrot.slane %v2210_v43, %v7792_v54 }
 0x553   : > { %v2074_v45 = vpop.f32.mrb[8].mxu0 }
 0x554   : > { %v2125_v48 = vcombine.low %v1986_v62, %v2074_v45  ;;  %v2126_v49 = vcombine.high %v1986_v62, %v2074_v45  ;;  %v6696_v50 = vpop.f32.mrb[9].mxu0 }
 0x555   : > { %v2077_v56 = vpop.f32.mrb[10].mxu0 }
 0x556   : > { %v2133_v57 = vrot.slane %v2125_v48, %v7792_v54  ;;  %v2140_v58 = vrot.slane %v2126_v49, %v7792_v54  ;;  %v2193_v60 = vcombine.low %v1989_v37, %v2077_v56  ;;  %v2194_v52 = vcombine.high %v1989_v37, %v2077_v56  ;;  %v6697_v1 = vpop.f32.mrb[11].mxu0 }
 0x558   : > { %v2157_v2 = vcombine.low %v2133_v57, %v2149_v51  ;;  %v2158_v3 = vcombine.high %v2133_v57, %v2149_v51  ;;  %v2173_v5 = vcombine.low %v2140_v58, %v2156_v55  ;;  %v2174_v7 = vcombine.high %v2140_v58, %v2156_v55 }
 0x559   : > { %v2201_v46 = vrot.slane %v2193_v60, %v7792_v54  ;;  %v2208_v15 = vrot.slane %v2194_v52, %v7792_v54 }
 0x55a   : > { %v2165_v16 = vrot.slane %v2157_v2, %v7795_v61  ;;  %v2172_v47 = vrot.slane %v2158_v3, %v7795_v61  ;;  %v2181_v59 = vrot.slane %v2173_v5, %v7795_v61  ;;  %v2188_v17 = vrot.slane %v2174_v7, %v7795_v61  ;;  %v6953_v3 = vld [vmem:[#allocation2 + $0x38] sm:$0xff]  }
 0x55b   : > { %v2225_v42 = vcombine.low %v2201_v46, %v2217_v9  ;;  %v2226_v53 = vcombine.high %v2201_v46, %v2217_v9  ;;  %v2241_v14 = vcombine.low %v2208_v15, %v2224_v10  ;;  %v2242_v19 = vcombine.high %v2208_v15, %v2224_v10  ;;  %6719 = vmatpush3.bf16.msra.mxu0 %v6953_v3  ;;  %v6977_v3 = vld [vmem:[#allocation4 + $0x6c] ss:$16 sps:$4 sm:$0xff]  }
 0x55c   : > { %v2261_v20 = vcombine.low %v2165_v16, %v2172_v47  ;;  %v6230_v22 = vcombine.high %v2165_v16, %v2172_v47  ;;  %v2277_v24 = vcombine.low %v2181_v59, %v2188_v17  ;;  %v6231_v18 = vcombine.high %v2181_v59, %v2188_v17 }
 0x55d   : > { %v2233_v26 = vrot.slane %v2225_v42, %v7795_v61  ;;  %v2240_v29 = vrot.slane %v2226_v53, %v7795_v61  ;;  %v2249_v6 = vrot.slane %v2241_v14, %v7795_v61  ;;  %v2256_v8 = vrot.slane %v2242_v19, %v7795_v61 }
 0x55e   : > { %v2268_v13 = vrot.slane %v2261_v20, %v7792_v54  ;;  %v2276_v30 = vrot.slane %v6230_v22, %v7792_v54  ;;  %v2284_v4 = vrot.slane %v2277_v24, %v7792_v54  ;;  %v2292_v11 = vrot.slane %v6231_v18, %v7792_v54 }
 0x55f   : > { %v2329_v62 = vcombine.low %v2233_v26, %v2240_v29  ;;  %v6232_v33 = vcombine.high %v2233_v26, %v2240_v29  ;;  %v2345_v27 = vcombine.low %v2249_v6, %v2256_v8  ;;  %v6233_v12 = vcombine.high %v2249_v6, %v2256_v8 }
 0x560   : > { %v2294_v37 = vcombine.high %v2268_v13, %v2276_v30  ;;  %v2310_v38 = vcombine.high %v2284_v4, %v2292_v11  ;;  %v2293_v40 = vcombine.low %v2268_v13, %v2276_v30  ;;  %v2309_v41 = vcombine.low %v2284_v4, %v2292_v11  ;;  %v6234_v30 = vld [vmem:[%s8618_s4] ss:$0 sm:$0xff] }
 0x561   : > { %v2336_v31 = vrot.slane %v2329_v62, %v7792_v54  ;;  %v2344_v32 = vrot.slane %v6232_v33, %v7792_v54  ;;  %v2352_v34 = vrot.slane %v2345_v27, %v7792_v54  ;;  %v2360_v35 = vrot.slane %v6233_v12, %v7792_v54 }
 0x562   : > { %v2308_v36 = vrot.slane %v2294_v37, %v7795_v61  ;;  %v2324_v43 = vrot.slane %v2310_v38, %v7795_v61  ;;  %v2301_v44 = vrot.slane %v2293_v40, %v7795_v61  ;;  %v2317_v45 = vrot.slane %v2309_v41, %v7795_v61  ;;  %v7234_v37 = vld [vmem:[%s7701_s27] sm:$0xff]  ;;  %v7235_v40 = vld [vmem:[%s7701_s27 + $0x8] sm:$0xff] }
 0x563   : > { %v2362_v48 = vcombine.high %v2336_v31, %v2344_v32  ;;  %v2378_v49 = vcombine.high %v2352_v34, %v2360_v35  ;;  %v2361_v50 = vcombine.low %v2336_v31, %v2344_v32  ;;  %v2377_v51 = vcombine.low %v2352_v34, %v2360_v35  ;;  %v6956_v31 = vld [vmem:[#allocation4 + $0x4] ss:$16 sps:$4 sm:$0xff]   ;;  %v6957_v32 = vld [vmem:[#allocation4 + $0x8] ss:$16 sps:$4 sm:$0xff]   ;;  %v6959_v34 = vld [vmem:[#allocation4 + $0xc] ss:$16 sps:$4 sm:$0xff]  }
 0x564   : > { %v2327_v55 = vcombine.low %v2308_v36, %v2324_v43  ;;  %v2325_v56 = vcombine.low %v2301_v44, %v2317_v45  ;;  %v2326_v57 = vcombine.high %v2301_v44, %v2317_v45  ;;  %v2328_v58 = vcombine.high %v2308_v36, %v2324_v43  ;;  %v6962_v35 = vld [vmem:[#allocation4 + $0x24] ss:$16 sps:$4 sm:$0xff]   ;;  %2800 = vmatprep.subr.bf16.mxu1 %v6956_v31  ;;  %v6965_v36 = vld [vmem:[#allocation4 + $0x2c] ss:$16 sps:$4 sm:$0xff]   ;;  %v6960_v43 = vld [vmem:[#allocation4 + $0x20] ss:$16 sps:$4 sm:$0xff]  }
 0x565   : > { %v2376_v60 = vrot.slane %v2362_v48, %v7795_v61  ;;  %v2392_v52 = vrot.slane %v2378_v49, %v7795_v61  ;;  %v2369_v1 = vrot.slane %v2361_v50, %v7795_v61  ;;  %v2385_v2 = vrot.slane %v2377_v51, %v7795_v61  ;;  %2843 = vmatprep.subr.bf16.mxu0 %v6959_v34  ;;  %v6963_v44 = vld [vmem:[#allocation4 + $0x28] ss:$16 sps:$4 sm:$0xff]   ;;  %v7005_v34 = vld [vmem:[#allocation6 + $0x80] sm:$0xff]  }
 0x566   : > { %2801 = vmatpush1.bf16.msra.mxu1 %v6954_v39 }
 0x567   : > { %v2395_v5 = vcombine.low %v2376_v60, %v2392_v52  ;;  %v2394_v7 = vcombine.high %v2369_v1, %v2385_v2  ;;  %v2393_v9 = vcombine.low %v2369_v1, %v2385_v2  ;;  %v2396_v10 = vcombine.high %v2376_v60, %v2392_v52  ;;  %2802 = vmatprep.subr.bf16.mxu1 %v6962_v35  ;;  %v6971_v60 = vld [vmem:[#allocation4 + $0x4c] ss:$16 sps:$4 sm:$0xff]   ;;  %v6966_v52 = vld [vmem:[#allocation4 + $0x40] ss:$16 sps:$4 sm:$0xff]   ;;  %v6969_v1 = vld [vmem:[#allocation4 + $0x48] ss:$16 sps:$4 sm:$0xff]  }
 0x568   : > { %v6974_v2 = vld [vmem:[#allocation4 + $0x64] ss:$16 sps:$4 sm:$0xff]  }
 0x569   : > { %v6889_v46 = vpack.i.bf16 %v2395_v5, %v2327_v55  ;;  %v6884_v15 = vpack.i.bf16 %v2394_v7, %v2326_v57  ;;  %v6894_v16 = vpack.i.bf16 %v2396_v10, %v2328_v58  ;;  %v6968_v58 = vld [vmem:[#allocation4 + $0x44] ss:$16 sps:$4 sm:$0xff]   ;;  %v6972_v5 = vld [vmem:[#allocation4 + $0x60] ss:$16 sps:$4 sm:$0xff]   ;;  %v6975_v7 = vld [vmem:[#allocation4 + $0x68] ss:$16 sps:$4 sm:$0xff]  }
 0x56a   : > { %2803 = vmatpush1.bf16.msra.mxu1 %v6960_v43  ;;  %v6980_v10 = vld [vmem:[#allocation4 + $0x84] ss:$16 sps:$4 sm:$0xff]   ;;  %v7007_v43 = vld [vmem:[#allocation6 + $0xc8] sm:$0xff]  }
 0x56b   : > { %6890 = vrot.lane.b32.xlu0 %v6889_v46, %s7409_s22  ;;  %6885 = vrot.lane.b32.xlu1 %v6884_v15, %s7410_s21  ;;  %v6981_v46 = vld [vmem:[#allocation4 + $0x88] ss:$16 sps:$4 sm:$0xff]   ;;  %v6983_v15 = vld [vmem:[#allocation4 + $0x8c] ss:$16 sps:$4 sm:$0xff]  }
 0x56c   : > { %2804 = vmatprep.subr.bf16.mxu1 %v6968_v58  ;;  %v7017_v58 = vld [vmem:[#allocation6 + $0x98] sm:$0xff]  }
 0x56e   : > { %2805 = vmatpush1.bf16.msra.mxu1 %v6966_v52  ;;  %v7019_v52 = vld [vmem:[#allocation6 + $0xe0] sm:$0xff]  }
 0x56f   : > { %6895 = vrot.lane.b32.xlu1 %v6894_v16, %s7408_s20  ;;  %2806 = vmatprep.subr.bf16.mxu1 %v6974_v2  ;;  %v6986_v16 = vld [vmem:[#allocation4 + $0xa4] ss:$16 sps:$4 sm:$0xff]  }
 0x570   : > { %v7021_v2 = vld [vmem:[#allocation6 + $0xa0] sm:$0xff]  }
 0x572   : > { %2807 = vmatpush1.bf16.msra.mxu1 %v6972_v5  ;;  %v7023_v5 = vld [vmem:[#allocation6 + $0xe8] sm:$0xff]  }
 0x573   : > { %2808 = vmatprep.subr.bf16.mxu1 %v6980_v10  ;;  %v7026_v10 = vld [vmem:[#allocation6 + $0x70] sm:$0xff]  }
 0x5dd   : > { %v6891_v47 = vpop.permute.xlu0 %6890  ;;  %v6886_v59 = vpop.permute.xlu1 %6885 }
 0x5de   : > { %v6888_v17 = vunpack.i.h.bf16 %v6886_v59  ;;  %v6887_v42 = vunpack.i.l.bf16 %v6886_v59  ;;  %v6893_v53 = vunpack.i.h.bf16 %v6891_v47  ;;  %v6892_v14 = vunpack.i.l.bf16 %v6891_v47  ;;  %v6989_v47 = vld [vmem:[#allocation4 + $0xac] ss:$16 sps:$4 sm:$0xff]   ;;  %v6984_v59 = vld [vmem:[#allocation4 + $0xa0] ss:$16 sps:$4 sm:$0xff]  }
 0x5e0   : > { %v2421_v19 = vsel %vm1667_vm1, %v2325_v56, %v6887_v42  ;;  %v2422_v20 = vsel %vm1667_vm1, %v2393_v9, %v6888_v17  ;;  %v6978_v9 = vld [vmem:[#allocation4 + $0x80] ss:$16 sps:$4 sm:$0xff]   ;;  %v6987_v17 = vld [vmem:[#allocation4 + $0xa8] ss:$16 sps:$4 sm:$0xff]   ;;  %v6992_v42 = vld [vmem:[#allocation4 + $0xc4] ss:$16 sps:$4 sm:$0xff]  }
 0x5e1   : > { %v6896_v22 = vpop.permute.xlu1 %6895  ;;  %v2424_v26 = vsel %vm2423_vm3, %v2421_v19, %v6892_v14  ;;  %v2425_v29 = vsel %vm2423_vm3, %v2422_v20, %v6893_v53  ;;  %2809 = vmatpush1.bf16.msra.mxu1 %v6978_v9  ;;  %v6995_v53 = vld [vmem:[#allocation4 + $0xcc] ss:$16 sps:$4 sm:$0xff]   ;;  %v6990_v14 = vld [vmem:[#allocation4 + $0xc0] ss:$16 sps:$4 sm:$0xff]   ;;  %v6993_v19 = vld [vmem:[#allocation4 + $0xc8] ss:$16 sps:$4 sm:$0xff]  }
 0x5e2   : > { %v6898_v24 = vunpack.i.h.bf16 %v6896_v22  ;;  %v6897_v18 = vunpack.i.l.bf16 %v6896_v22  ;;  %2810 = vmatprep.subr.bf16.mxu1 %v6986_v16  ;;  %v6998_v20 = vld [vmem:[#allocation4 + $0xe4] ss:$16 sps:$4 sm:$0xff]   ;;  %v7001_v22 = vld [vmem:[#allocation4 + $0xec] ss:$16 sps:$4 sm:$0xff]  }
 0x5e3   : > { %v7025_v9 = vld [vmem:[#allocation6 + $0xa8] sm:$0xff]   ;;  %v7029_v16 = vld [vmem:[#allocation6 + $0xb0] sm:$0xff]  }
 0x5e4   : > { %v2427_v6 = vsel %vm2426_vm4, %v2424_v26, %v6897_v18  ;;  %v2428_v8 = vsel %vm2426_vm4, %v2425_v29, %v6898_v24  ;;  %v6996_v24 = vld [vmem:[#allocation4 + $0xe0] ss:$16 sps:$4 sm:$0xff]   ;;  %v6999_v18 = vld [vmem:[#allocation4 + $0xe8] ss:$16 sps:$4 sm:$0xff]  }
 0x5e5   : > { %v2429_v13 = vpack.c.bf16 %v2428_v8, %v2427_v6  ;;  %2811 = vmatpush1.bf16.msra.mxu1 %v6984_v59  ;;  %v7002_v26 = vld [vmem:[#allocation6 + $0x40] sm:$0xff]   ;;  %v7031_v59 = vld [vmem:[#allocation6 + $0xf8] sm:$0xff]  }
 0x5e6   : > { %2812 = vmatprep.subr.bf16.mxu1 %v6992_v42  ;;  %v7003_v29 = vld [vmem:[#allocation6 + $0xc0] sm:$0xff]   ;;  %v7033_v42 = vld [vmem:[#allocation6 + $0xb8] sm:$0xff]  }
 0x5e7   : > { %6721 = vmatmul.mubr.bf16.vlgmr.msra.gmra.mrb[12].mxu0 %v2429_v13 }
 0x5e8   : > { %2875 = vmatprep.mubr.bf16.mxu0 %v7406_v0  ;;  %2844 = vmatpush1.bf16.msra.mxu0 %v6957_v32  ;;  %v7004_v32 = vld [vmem:[#allocation6] sm:$0xff]  }
 0x5e9   : > { %2845 = vmatprep.subr.bf16.mxu0 %v6965_v36  ;;  %2813 = vmatpush1.bf16.msra.mxu1 %v6990_v14  ;;  %v7006_v36 = vld [vmem:[#allocation6 + $0x48] sm:$0xff]   ;;  %v2634_v14 = vsub.s32 3, %v7714_v23 }
 0x5ea   : > { %2814 = vmatprep.subr.bf16.mxu1 %v6998_v20 }
 0x5ec   : > { %2846 = vmatpush1.bf16.msra.mxu0 %v6963_v44  ;;  %v7008_v44 = vld [vmem:[#allocation6 + $0x8] sm:$0xff]  }
 0x5ed   : > { %2847 = vmatprep.subr.bf16.mxu0 %v6971_v60  ;;  %2815 = vmatpush1.bf16.msra.mxu1 %v6996_v24  ;;  %v7018_v60 = vld [vmem:[#allocation6 + $0x60] sm:$0xff]  }
 0x5ee   : > { %6514 = vmatprep.subr.bf16.mxu1 %v7002_v26 }
 0x5f0   : > { %2848 = vmatpush1.bf16.msra.mxu0 %v6969_v1  ;;  %v7020_v1 = vld [vmem:[#allocation6 + $0x20] sm:$0xff]  }
 0x5f1   : > { %2849 = vmatprep.subr.bf16.mxu0 %v6977_v3  ;;  %v7022_v3 = vld [vmem:[#allocation6 + $0x68] sm:$0xff]  }
 0x5f4   : > { %2850 = vmatpush1.bf16.msra.mxu0 %v6975_v7  ;;  %v7024_v7 = vld [vmem:[#allocation6 + $0x28] sm:$0xff]  }
 0x5f5   : > { %2851 = vmatprep.subr.bf16.mxu0 %v6983_v15  ;;  %v7028_v15 = vld [vmem:[#allocation6 + $0x30] sm:$0xff]  }
 0x5f8   : > { %2852 = vmatpush1.bf16.msra.mxu0 %v6981_v46  ;;  %v7027_v46 = vld [vmem:[#allocation6 + $0xf0] sm:$0xff]  }
 0x5f9   : > { %2853 = vmatprep.subr.bf16.mxu0 %v6989_v47  ;;  %v7030_v47 = vld [vmem:[#allocation6 + $0x78] sm:$0xff]  }
 0x5fc   : > { %2854 = vmatpush1.bf16.msra.mxu0 %v6987_v17  ;;  %v7032_v17 = vld [vmem:[#allocation6 + $0x38] sm:$0xff]  }
 0x5fd   : > { %2855 = vmatprep.subr.bf16.mxu0 %v6995_v53  ;;  %v2618_v53 = vld [vmem:[%s8622_s8] sm:$0xf] }
 0x5fe   : > { %v2631_v20 = vrot.slane %v2618_v53, %v7937_v63  ;;  %v2635_v24 = vrot.slane %v2618_v53, %v2634_v14 }
 0x600   : > { %2856 = vmatpush1.bf16.msra.mxu0 %v6993_v19  ;;  %v2623_v19 = vrot.slane %v2618_v53, %v7721_v25 }
 0x601   : > { %2857 = vmatprep.subr.bf16.mxu0 %v7001_v22  ;;  %v2627_v22 = vrot.slane %v2618_v53, %v7732_v28  ;;  %v7036_v53 = vld [vmem:[%s8615_s1 + $0xc4] ss:$12 sps:$4 sm:$0xff]  }
 0x604   : > { %2858 = vmatpush1.bf16.msra.mxu0 %v6999_v18 }
 0x605   : > { %6536 = vmatprep.subr.bf16.mxu0 %v7003_v29 }
 0x6ba   : > { %v2535_v4 = vpop.f32.mrb[12].mxu0 }
 0x6bb   : > { %v2536_v11 = vadd.f32 %v6234_v30, %v2535_v4  ;;  %v6722_v62 = vpop.f32.mrb[13].mxu0 }
 0x6bc   : > { %v2538_v33 = vpop.f32.mrb[14].mxu0 }
 0x6bd   : > { %v2539_v27 = vadd.f32 %v6234_v30, %v2538_v33  ;;  %v6723_v12 = vpop.f32.mrb[15].mxu0  ;;  %v2542_v38 = vadd.f32 %v7234_v37, %v2536_v11  ;;  %v6243_v33 = vld [vmem:[%s8619_s5] ss:$0 sm:$0xff] }
 0x6bf   : > { %2544 = vadd.xlane.f32.xlu1 %v2542_v38  ;;  %v2543_v41 = vadd.f32 %v7235_v40, %v2539_v27  ;;  %v6244_v40 = vld [vmem:[%s8620_s6] ss:$0 sm:$0xff] }
 0x6c1   : > { %2546 = vadd.xlane.f32.xlu0 %v2543_v41 }
 0x74c   : > { %v2545_v45 = vpop.xlane.xlu1 %2544 }
 0x74d   : > { %v2549_v48 = vmul.f32 0.0078125, %v2545_v45  ;;  %v7009_v45 = vld [vmem:[#allocation6 + $0x88] sm:$0xff]  }
 0x74e   : > { %v2547_v49 = vpop.xlane.xlu0 %2546 }
 0x74f   : > { %v8105_v50 = vsub.f32 %v2542_v38, %v2549_v48  ;;  %v2550_v51 = vmul.f32 0.0078125, %v2547_v49  ;;  %v7010_v48 = vld [vmem:[#allocation6 + $0x50] sm:$0xff]  }
 0x750   : > { %v7011_v49 = vld [vmem:[#allocation6 + $0xd0] sm:$0xff]  }
 0x751   : > { %v8107_v55 = vsub.f32 %v2543_v41, %v2550_v51  ;;  %v2553_v56 = vmul.f32 %v8105_v50, %v8105_v50  ;;  %v7013_v51 = vld [vmem:[#allocation6 + $0x90] sm:$0xff]  }
 0x753   : > { %2555 = vadd.xlane.f32.xlu0 %v2553_v56  ;;  %v2554_v57 = vmul.f32 %v8107_v55, %v8107_v55  ;;  %v7015_v56 = vld [vmem:[#allocation6 + $0xd8] sm:$0xff]  }
 0x755   : > { %2557 = vadd.xlane.f32.xlu1 %v2554_v57  ;;  %v7016_v57 = vld [vmem:[#allocation6 + $0x18] sm:$0xff]  }
 0x7e0   : > { %v2556_v6 = vpop.xlane.xlu0 %2555 }
 0x7e1   : > { %v2559_v8 = vmul.f32 0.0078125, %v2556_v6 }
 0x7e2   : > { %v2558_v13 = vpop.xlane.xlu1 %2557 }
 0x7e3   : > { %v2561_v30 = vadd.f32 1e-05, %v2559_v8  ;;  %v2560_v4 = vmul.f32 0.0078125, %v2558_v13 }
 0x7e5   : > { %7186 = vrsqrt.f32 %v2561_v30  ;;  %v2562_v11 = vadd.f32 1e-05, %v2560_v4 }
 0x7e7   : > { %7188 = vrsqrt.f32 %v2562_v11 }
 0x7ef   : > { %v7187_v62 = vpop.eup %7186 }
 0x7f0   : > { %v2565_v27 = vmul.f32 %v7187_v62, %v8105_v50  ;;  %v7012_v50 = vld [vmem:[#allocation6 + $0x10] sm:$0xff]  }
 0x7f1   : > { %v7189_v12 = vpop.eup %7188 }
 0x7f2   : > { %v2566_v37 = vmul.f32 %v7189_v12, %v8107_v55  ;;  %v2574_v38 = vmul.f32 %v6243_v33, %v2565_v27  ;;  %v7014_v55 = vld [vmem:[#allocation6 + $0x58] sm:$0xff]  }
 0x7f4   : > { %v2575_v41 = vmul.f32 %v6243_v33, %v2566_v37  ;;  %v8121_v39 = vadd.f32 %v6244_v40, %v2574_v38 }
 0x7f6   : > { %v8123_v31 = vadd.f32 %v6244_v40, %v2575_v41 }
 0x7f8   : > { %v2585_v35 = vpack.c.bf16 %v8123_v31, %v8121_v39 }
 0x7fa   : > { %2833 = vmatmul.mubr.bf16.vlgmr.msra.gmra.mrb[28].mxu1 %v2585_v35  ;;  %2876 = vmatmul.mubr.bf16.vlgmr.msra.gmra.mrb[16].mxu0 %v2585_v35 }
 0x7fb   : > { %6515 = vmatpush3.bf16.msra.mxu1 %v7004_v32  ;;  %6537 = vmatpush3.bf16.msra.mxu0 %v7005_v34 }
 0x7fc   : > { %6516 = vmatprep.subr.bf16.mxu1 %v7006_v36  ;;  %6538 = vmatprep.subr.bf16.mxu0 %v7007_v43 }
 0x7ff   : > { %6517 = vmatpush3.bf16.msra.mxu1 %v7008_v44  ;;  %6539 = vmatpush3.bf16.msra.mxu0 %v7009_v45 }
 0x800   : > { %6518 = vmatprep.subr.bf16.mxu1 %v7010_v48  ;;  %6540 = vmatprep.subr.bf16.mxu0 %v7011_v49 }
 0x803   : > { %6519 = vmatpush3.bf16.msra.mxu1 %v7012_v50  ;;  %6541 = vmatpush3.bf16.msra.mxu0 %v7013_v51 }
 0x804   : > { %6520 = vmatprep.subr.bf16.mxu1 %v7014_v55  ;;  %6542 = vmatprep.subr.bf16.mxu0 %v7015_v56 }
 0x807   : > { %6521 = vmatpush3.bf16.msra.mxu1 %v7016_v57  ;;  %6543 = vmatpush3.bf16.msra.mxu0 %v7017_v58  ;;  %v6277_v57 = vld [vmem:[%s8624_s10] ss:$0 sm:$0xff] }
 0x808   : > { %6522 = vmatprep.subr.bf16.mxu1 %v7018_v60  ;;  %6544 = vmatprep.subr.bf16.mxu0 %v7019_v52 }
 0x80b   : > { %6523 = vmatpush3.bf16.msra.mxu1 %v7020_v1  ;;  %6545 = vmatpush3.bf16.msra.mxu0 %v7021_v2 }
 0x80c   : > { %6524 = vmatprep.subr.bf16.mxu1 %v7022_v3  ;;  %6546 = vmatprep.subr.bf16.mxu0 %v7023_v5 }
 0x80f   : > { %6525 = vmatpush3.bf16.msra.mxu1 %v7024_v7  ;;  %6547 = vmatpush3.bf16.msra.mxu0 %v7025_v9 }
 0x810   : > { %6526 = vmatprep.subr.bf16.mxu1 %v7026_v10  ;;  %6548 = vmatprep.subr.bf16.mxu0 %v7027_v46 }
 0x813   : > { %6527 = vmatpush3.bf16.msra.mxu1 %v7028_v15  ;;  %6549 = vmatpush3.bf16.msra.mxu0 %v7029_v16 }
 0x814   : > { %6528 = vmatprep.subr.bf16.mxu1 %v7030_v47  ;;  %6550 = vmatprep.subr.bf16.mxu0 %v7031_v59 }
 0x817   : > { %6529 = vmatpush3.bf16.msra.mxu1 %v7032_v17  ;;  %6551 = vmatpush3.bf16.msra.mxu0 %v7033_v42  ;;  %v7034_v42 = vld [vmem:[%s8615_s1 + $0xc0] ss:$12 sps:$4 sm:$0xff]  }
 0x818   : > { %6724 = vmatprep.subr.bf16.mxu0 %v7407_v21  ;;  %3465 = vmatprep.subr.bf16.mxu1 %v7036_v53 }
 0x8cd   : > { %v2834_v18 = vpop.f32.mrb[28].mxu1  ;;  %v2877_v26 = vpop.f32.mrb[16].mxu0 }
 0x8ce   : > { %v2835_v29 = vadd.f32 %v2834_v18, %v2623_v19  ;;  %v2878_v6 = vadd.f32 %v2877_v26, %v2631_v20  ;;  %v2836_v8 = vpop.f32.mrb[29].mxu1  ;;  %v2879_v13 = vpop.f32.mrb[17].mxu0 }
 0x8cf   : > { %v2837_v30 = vadd.f32 %v2836_v8, %v2627_v22  ;;  %v2880_v4 = vadd.f32 %v2879_v13, %v2635_v24  ;;  %v2838_v11 = vpop.f32.mrb[30].mxu1  ;;  %v2881_v62 = vpop.f32.mrb[18].mxu0 }
 0x8d0   : > { %v2839_v33 = vadd.f32 %v2838_v11, %v2623_v19  ;;  %v2882_v27 = vadd.f32 %v2881_v62, %v2631_v20  ;;  %v2840_v12 = vpop.f32.mrb[31].mxu1  ;;  %v2883_v37 = vpop.f32.mrb[19].mxu0  ;;  %v2886_v41 = vmax.f32 %v2835_v29, 0.0  ;;  %v2888_v32 = vmax.f32 %v2878_v6, 0.0  ;;  %v7037_v19 = vld [vmem:[%s8615_s1 + $0xc8] ss:$12 sps:$4 sm:$0xff]  }
 0x8d1   : > { %v2841_v38 = vadd.f32 %v2840_v12, %v2627_v22  ;;  %v2884_v40 = vadd.f32 %v2883_v37, %v2635_v24  ;;  %v2887_v36 = vmax.f32 %v2837_v30, 0.0  ;;  %v2889_v43 = vmax.f32 %v2880_v4, 0.0  ;;  %v7038_v20 = vld [vmem:[%s8615_s1 + $0xd8] ss:$12 sps:$4 sm:$0xff]   ;;  %v7044_v30 = vld [vmem:[%s8615_s1 + $0xf4] ss:$12 sps:$4 sm:$0xff]  }
 0x8d2   : > { %v2890_v34 = vmax.f32 %v2839_v33, 0.0  ;;  %v2892_v35 = vmax.f32 %v2882_v27, 0.0  ;;  %v7042_v4 = vld [vmem:[%s8615_s1 + $0xf0] ss:$12 sps:$4 sm:$0xff]   ;;  %v7045_v11 = vld [vmem:[%s8615_s1 + $0xf8] ss:$12 sps:$4 sm:$0xff]  }
 0x8d3   : > { %v2891_v44 = vmax.f32 %v2841_v38, 0.0  ;;  %v2893_v45 = vmax.f32 %v2884_v40, 0.0  ;;  %v7048_v62 = vld [vmem:[%s8615_s1 + $0x10c] ss:$12 sps:$4 sm:$0xff]   ;;  %v7046_v33 = vld [vmem:[%s8615_s1 + $0x108] ss:$12 sps:$4 sm:$0xff]  }
 0x8d4   : > { %v2894_v48 = vpack.c.bf16 %v2890_v34, %v2886_v41  ;;  %v2896_v49 = vpack.c.bf16 %v2892_v35, %v2888_v32  ;;  %v7049_v27 = vld [vmem:[%s8615_s1 + $0x110] ss:$12 sps:$4 sm:$0xff]   ;;  %v7050_v12 = vld [vmem:[%s8615_s1 + $0x120] ss:$12 sps:$4 sm:$0xff]   ;;  %v7053_v38 = vld [vmem:[%s8615_s1 + $0x128] ss:$12 sps:$4 sm:$0xff]  }
 0x8d5   : > { %v2895_v50 = vpack.c.bf16 %v2891_v44, %v2887_v36  ;;  %v2897_v51 = vpack.c.bf16 %v2893_v45, %v2889_v43  ;;  %v7052_v37 = vld [vmem:[%s8615_s1 + $0x124] ss:$12 sps:$4 sm:$0xff]   ;;  %v7056_v40 = vld [vmem:[%s8615_s1 + $0x13c] ss:$12 sps:$4 sm:$0xff]   ;;  %v7057_v32 = vld [vmem:[%s8615_s1 + $0x140] ss:$12 sps:$4 sm:$0xff]  }
 0x8d6   : > { %v7054_v41 = vld [vmem:[%s8615_s1 + $0x138] ss:$12 sps:$4 sm:$0xff]   ;;  %v7060_v34 = vld [vmem:[%s8615_s1 + $0x154] ss:$12 sps:$4 sm:$0xff]   ;;  %v7058_v35 = vld [vmem:[%s8615_s1 + $0x150] ss:$12 sps:$4 sm:$0xff]  }
 0x8d7   : > { %3193 = vmatprep.mubr.bf16.mxu1 %v2895_v50  ;;  %3234 = vmatprep.mubr.bf16.mxu0 %v2897_v51  ;;  %v7061_v36 = vld [vmem:[%s8615_s1 + $0x158] ss:$12 sps:$4 sm:$0xff]   ;;  %v7062_v44 = vld [vmem:[%s8615_s1 + $0x168] ss:$12 sps:$4 sm:$0xff]   ;;  %v7065_v45 = vld [vmem:[%s8615_s1 + $0x170] ss:$12 sps:$4 sm:$0xff]  }
 0x8d8   : > { %3194 = vmatmul.mubr.bf16.vlgmr.msra.gmra.mrb[32].mxu1 %v2894_v48  ;;  %3235 = vmatmul.mubr.bf16.vlgmr.msra.gmra.mrb[20].mxu0 %v2896_v49  ;;  %v7064_v43 = vld [vmem:[%s8615_s1 + $0x16c] ss:$12 sps:$4 sm:$0xff]  }
 0x8d9   : > { %3497 = vmatprep.mubr.bf16.mxu1 %v7406_v0  ;;  %6740 = vmatprep.mubr.msk.bf16.mxu0 %vm7411_vm0, %v7407_v21 }
 0x8da   : > { %6725 = vmatpush3.bf16.msra.mxu0 %v7037_v19  ;;  %3466 = vmatpush1.bf16.msra.mxu1 %v7034_v42 }
 0x8db   : > { %6726 = vmatprep.subr.bf16.mxu0 %v7407_v21 }
 0x9ab   : > { %v6530_v55 = vpop.f32.mrb[32].mxu1  ;;  %v6552_v56 = vpop.f32.mrb[20].mxu0 }
 0x9ac   : > { %v6531_v58 = vpop.f32.mrb[33].mxu1  ;;  %v6553_v60 = vpop.f32.mrb[21].mxu0 }
 0x9ad   : > { %v6532_v52 = vadd.f32 %v6531_v58, %v6530_v55  ;;  %v6554_v1 = vadd.f32 %v6553_v60, %v6552_v56  ;;  %v6533_v2 = vpop.f32.mrb[34].mxu1  ;;  %v6555_v3 = vpop.f32.mrb[22].mxu0  ;;  %v6310_v58 = vld [vmem:[#allocation7] ss:$0 sm:$0xff] }
 0x9ae   : > { %v6534_v5 = vpop.f32.mrb[35].mxu1  ;;  %v6556_v7 = vpop.f32.mrb[23].mxu0 }
 0x9af   : > { %v3196_v9 = vadd.f32 %v6532_v52, %v6277_v57  ;;  %v6535_v10 = vadd.f32 %v6534_v5, %v6533_v2  ;;  %v6557_v46 = vadd.f32 %v6556_v7, %v6555_v3  ;;  %v6311_v3 = vld [vmem:[#allocation9] ss:$0 sm:$0xff] }
 0x9b1   : > { %v3237_v15 = vadd.f32 %v6554_v1, %v3196_v9  ;;  %v3199_v16 = vadd.f32 %v6535_v10, %v6277_v57 }
 0x9b3   : > { %v3240_v47 = vadd.f32 %v6557_v46, %v3199_v16  ;;  %v3243_v59 = vadd.f32 %v3237_v15, %v8121_v39  ;;  %v7040_v39 = vld [vmem:[%s8615_s1 + $0xdc] ss:$12 sps:$4 sm:$0xff]   ;;  %v8239_v46 = vld [vmem:[%s8616_s2 + $0x3] sm:$0x7] }
 0x9b4   : > { %3467 = vmatprep.subr.bf16.mxu1 %v7040_v39  ;;  %v3325_v15 = vrot.slane %v8239_v46, %v7721_v25  ;;  %v3329_v16 = vrot.slane %v8239_v46, %v7732_v28 }
 0x9b5   : > { %3245 = vadd.xlane.f32.xlu0 %v3243_v59  ;;  %v3244_v17 = vadd.f32 %v3240_v47, %v8123_v31  ;;  %v7041_v31 = vld [vmem:[%s8615_s1 + $0xe0] ss:$12 sps:$4 sm:$0xff]   ;;  %3468 = vmatpush1.bf16.msra.mxu1 %v7038_v20 }
 0x9b6   : > { %6727 = vmatpush3.bf16.msra.mxu0 %v7041_v31  ;;  %3469 = vmatprep.subr.bf16.mxu1 %v7044_v30 }
 0x9b7   : > { %3247 = vadd.xlane.f32.xlu1 %v3244_v17  ;;  %6728 = vmatprep.subr.bf16.mxu0 %v7407_v21 }
 0x9b9   : > { %3470 = vmatpush1.bf16.msra.mxu1 %v7042_v4 }
 0x9ba   : > { %6729 = vmatpush3.bf16.msra.mxu0 %v7045_v11  ;;  %3471 = vmatprep.subr.bf16.mxu1 %v7048_v62 }
 0x9bb   : > { %6730 = vmatprep.subr.bf16.mxu0 %v7407_v21 }
 0x9bd   : > { %3472 = vmatpush1.bf16.msra.mxu1 %v7046_v33 }
 0x9be   : > { %6731 = vmatpush3.bf16.msra.mxu0 %v7049_v27  ;;  %3473 = vmatprep.subr.bf16.mxu1 %v7052_v37 }
 0x9bf   : > { %6732 = vmatprep.subr.bf16.mxu0 %v7407_v21 }
 0x9c1   : > { %3474 = vmatpush1.bf16.msra.mxu1 %v7050_v12 }
 0x9c2   : > { %6733 = vmatpush3.bf16.msra.mxu0 %v7053_v38  ;;  %3475 = vmatprep.subr.bf16.mxu1 %v7056_v40 }
 0x9c3   : > { %6734 = vmatprep.subr.bf16.mxu0 %v7407_v21 }
 0x9c5   : > { %3476 = vmatpush1.bf16.msra.mxu1 %v7054_v41 }
 0x9c6   : > { %6735 = vmatpush3.bf16.msra.mxu0 %v7057_v32  ;;  %3477 = vmatprep.subr.bf16.mxu1 %v7060_v34 }
 0x9c7   : > { %6736 = vmatprep.subr.bf16.mxu0 %v7407_v21 }
 0x9c9   : > { %3478 = vmatpush1.bf16.msra.mxu1 %v7058_v35 }
 0x9ca   : > { %6737 = vmatpush3.bf16.msra.mxu0 %v7061_v36  ;;  %3479 = vmatprep.subr.bf16.mxu1 %v7064_v43 }
 0x9cb   : > { %6738 = vmatprep.subr.bf16.mxu0 %v7407_v21 }
 0x9cd   : > { %3480 = vmatpush1.bf16.msra.mxu1 %v7062_v44 }
 0x9ce   : > { %6739 = vmatpush3.bf16.msra.mxu0 %v7065_v45  ;;  %6744 = vmatprep.subr.bf16.mxu1 %v7407_v21 }
 0x9cf   : > { %6768 = vmatprep.subr.bf16.mxu0 %v7407_v21 }
 0xa42   : > { %v3246_v22 = vpop.xlane.xlu0 %3245 }
 0xa43   : > { %v3249_v24 = vmul.f32 0.0078125, %v3246_v22 }
 0xa44   : > { %v3248_v18 = vpop.xlane.xlu1 %3247 }
 0xa45   : > { %v3251_v26 = vsub.f32 %v3243_v59, %v3249_v24  ;;  %v3250_v29 = vmul.f32 0.0078125, %v3248_v18 }
 0xa47   : > { %v3252_v6 = vsub.f32 %v3244_v17, %v3250_v29  ;;  %v3253_v8 = vmul.f32 %v3251_v26, %v3251_v26 }
 0xa49   : > { %3255 = vadd.xlane.f32.xlu0 %v3253_v8  ;;  %v3254_v13 = vmul.f32 %v3252_v6, %v3252_v6 }
 0xa4b   : > { %3257 = vadd.xlane.f32.xlu1 %v3254_v13 }
 0xad6   : > { %v3256_v48 = vpop.xlane.xlu0 %3255 }
 0xad7   : > { %v3259_v49 = vmul.f32 0.0078125, %v3256_v48 }
 0xad8   : > { %v3258_v50 = vpop.xlane.xlu1 %3257 }
 0xad9   : > { %v3261_v51 = vadd.f32 1e-05, %v3259_v49  ;;  %v3260_v55 = vmul.f32 0.0078125, %v3258_v50 }
 0xadb   : > { %7190 = vrsqrt.f32 %v3261_v51  ;;  %v3262_v56 = vadd.f32 1e-05, %v3260_v55 }
 0xadd   : > { %7192 = vrsqrt.f32 %v3262_v56 }
 0xae5   : > { %v7191_v57 = vpop.eup %7190 }
 0xae6   : > { %v3265_v60 = vmul.f32 %v7191_v57, %v3251_v26 }
 0xae7   : > { %v7193_v52 = vpop.eup %7192 }
 0xae8   : > { %v3266_v1 = vmul.f32 %v7193_v52, %v3252_v6  ;;  %v3274_v2 = vmul.f32 %v6310_v58, %v3265_v60 }
 0xaea   : > { %v3275_v5 = vmul.f32 %v6310_v58, %v3266_v1  ;;  %v8226_v7 = vadd.f32 %v6311_v3, %v3274_v2 }
 0xaec   : > { %v8228_v9 = vadd.f32 %v6311_v3, %v3275_v5 }
 0xaee   : > { %v3285_v10 = vpack.c.bf16 %v8228_v9, %v8226_v7 }
 0xaf0   : > { %3498 = vmatmul.mubr.bf16.vlgmr.msra.gmra.mrb[36].mxu1 %v3285_v10  ;;  %6741 = vmatmul.mubr.bf16.vlgmr.msra.gmra.mrb[24].mxu0 %v3285_v10 }
 0xaf1   : > { %6746 = vmatprep.mubr.msk.bf16.mxu1 %vm7411_vm0, %v7407_v21  ;;  %6770 = vmatprep.mubr.msk.bf16.mxu0 %vm7411_vm0, %v7407_v21 }
 0xbc3   : > { %v3499_v47 = vpop.f32.mrb[36].mxu1  ;;  %v8245_v59 = vpop.f32.mrb[24].mxu0 }
 0xbc4   : > { %v8247_v17 = vadd.f32 %v3499_v47, %v3325_v15  ;;  %v3501_v42 = vpop.f32.mrb[37].mxu1  ;;  %v6742_v53 = vpop.f32.mrb[25].mxu0 }
 0xbc5   : > { %v3502_v19 = vadd.f32 %v3501_v42, %v3329_v16  ;;  %v3503_v39 = vpop.f32.mrb[38].mxu1  ;;  %v8249_v31 = vpop.f32.mrb[26].mxu0 }
 0xbc6   : > { %v3505_v20 = vpop.f32.mrb[39].mxu1  ;;  %v6743_v22 = vpop.f32.mrb[27].mxu0  ;;  %3551 = vrot.lane.b32.xlu1 %v8247_v17, %s7408_s20  ;;  %v8254_v24 = vadd.f32 %v3503_v39, %v3325_v15 }
 0xbc7   : > { %3847 = vrot.lane.b32.xlu0 %v3502_v19, %s7408_s20  ;;  %v3506_v18 = vadd.f32 %v3505_v20, %v3329_v16 }
 0xbca   : > { %3853 = vrot.lane.b32.xlu1 %v3502_v19, %s7409_s22 }
 0xbcb   : > { %3553 = vrot.lane.b32.xlu0 %v8254_v24, %s7408_s20 }
 0xbce   : > { %3859 = vrot.lane.b32.xlu1 %v3502_v19, %s7410_s21 }
 0xbcf   : > { %3855 = vrot.lane.b32.xlu0 %v3506_v18, %s7409_s22 }
 0xbd2   : > { %3849 = vrot.lane.b32.xlu1 %v3506_v18, %s7408_s20 }
 0xbd3   : > { %3861 = vrot.lane.b32.xlu0 %v3506_v18, %s7410_s21 }
 0xbd6   : > { %3557 = vrot.lane.b32.xlu1 %v8247_v17, %s7409_s22 }
 0xbd7   : > { %3559 = vrot.lane.b32.xlu0 %v8254_v24, %s7409_s22 }
 0xbda   : > { %3563 = vrot.lane.b32.xlu1 %v8247_v17, %s7410_s21 }
 0xbdb   : > { %3565 = vrot.lane.b32.xlu0 %v8254_v24, %s7410_s21 }
 0xc38   : > { %v8271_v26 = vpop.permute.xlu1 %3551 }
 0xc39   : > { %v3848_v29 = vpop.permute.xlu0 %3847 }
 0xc3c   : > { %v3854_v6 = vpop.permute.xlu1 %3853 }
 0xc3d   : > { %v8273_v8 = vpop.permute.xlu0 %3553  ;;  %v3865_v13 = vcombine.low %v3502_v19, %v3854_v6  ;;  %v3866_v30 = vcombine.high %v3502_v19, %v3854_v6 }
 0xc3f   : > { %v3873_v27 = vrot.slane %v3865_v13, %v7792_v54  ;;  %v3880_v12 = vrot.slane %v3866_v30, %v7792_v54 }
 0xc40   : > { %v3860_v4 = vpop.permute.xlu1 %3859 }
 0xc41   : > { %v3881_v11 = vcombine.low %v3848_v29, %v3860_v4  ;;  %v3882_v62 = vcombine.high %v3848_v29, %v3860_v4  ;;  %v3856_v33 = vpop.permute.xlu0 %3855 }
 0xc42   : > { %v3933_v40 = vcombine.low %v3506_v18, %v3856_v33  ;;  %v3934_v41 = vcombine.high %v3506_v18, %v3856_v33 }
 0xc43   : > { %v3889_v37 = vrot.slane %v3881_v11, %v7792_v54  ;;  %v3896_v38 = vrot.slane %v3882_v62, %v7792_v54 }
 0xc44   : > { %v3850_v32 = vpop.permute.xlu1 %3849  ;;  %v3941_v56 = vrot.slane %v3933_v40, %v7792_v54  ;;  %v3948_v57 = vrot.slane %v3934_v41, %v7792_v54 }
 0xc45   : > { %v3897_v34 = vcombine.low %v3873_v27, %v3889_v37  ;;  %v3898_v35 = vcombine.high %v3873_v27, %v3889_v37  ;;  %v3913_v36 = vcombine.low %v3880_v12, %v3896_v38  ;;  %v3914_v43 = vcombine.high %v3880_v12, %v3896_v38  ;;  %v3862_v44 = vpop.permute.xlu0 %3861 }
 0xc46   : > { %v3949_v45 = vcombine.low %v3850_v32, %v3862_v44  ;;  %v3950_v48 = vcombine.high %v3850_v32, %v3862_v44 }
 0xc47   : > { %v3905_v49 = vrot.slane %v3897_v34, %v7795_v61  ;;  %v3912_v50 = vrot.slane %v3898_v35, %v7795_v61  ;;  %v3921_v51 = vrot.slane %v3913_v36, %v7795_v61  ;;  %v3928_v55 = vrot.slane %v3914_v43, %v7795_v61 }
 0xc48   : > { %v3957_v58 = vrot.slane %v3949_v45, %v7792_v54  ;;  %v3964_v60 = vrot.slane %v3950_v48, %v7792_v54  ;;  %v3558_v52 = vpop.permute.xlu1 %3557 }
 0xc49   : > { %v4001_v1 = vcombine.low %v3905_v49, %v3912_v50  ;;  %v6373_v2 = vcombine.high %v3905_v49, %v3912_v50  ;;  %v4017_v3 = vcombine.low %v3921_v51, %v3928_v55  ;;  %v6374_v5 = vcombine.high %v3921_v51, %v3928_v55  ;;  %v3560_v10 = vpop.permute.xlu0 %3559 }
 0xc4a   : > { %v3965_v15 = vcombine.low %v3941_v56, %v3957_v58  ;;  %v3966_v16 = vcombine.high %v3941_v56, %v3957_v58  ;;  %v3981_v47 = vcombine.low %v3948_v57, %v3964_v60  ;;  %v3982_v42 = vcombine.high %v3948_v57, %v3964_v60 }
 0xc4b   : > { %v8288_v53 = vrot.slane %v4001_v1, %v7792_v54  ;;  %v8291_v19 = vrot.slane %v6373_v2, %v7792_v54  ;;  %v8294_v39 = vrot.slane %v4017_v3, %v7792_v54  ;;  %v8297_v20 = vrot.slane %v6374_v5, %v7792_v54 }
 0xc4c   : > { %v3973_v22 = vrot.slane %v3965_v15, %v7795_v61  ;;  %v3980_v18 = vrot.slane %v3966_v16, %v7795_v61  ;;  %v3989_v29 = vrot.slane %v3981_v47, %v7795_v61  ;;  %v3996_v6 = vrot.slane %v3982_v42, %v7795_v61  ;;  %v3564_v37 = vpop.permute.xlu1 %3563 }
 0xc4d   : > { %v3569_v13 = vcombine.low %v8247_v17, %v3558_v52  ;;  %v3570_v30 = vcombine.high %v8247_v17, %v3558_v52  ;;  %v3637_v4 = vcombine.low %v8254_v24, %v3560_v10  ;;  %v3638_v11 = vcombine.high %v8254_v24, %v3560_v10  ;;  %v3566_v38 = vpop.permute.xlu0 %3565 }
 0xc4e   : > { %v4069_v62 = vcombine.low %v3973_v22, %v3980_v18  ;;  %v6375_v33 = vcombine.high %v3973_v22, %v3980_v18  ;;  %v4085_v27 = vcombine.low %v3989_v29, %v3996_v6  ;;  %v6376_v12 = vcombine.high %v3989_v29, %v3996_v6 }
 0xc4f   : > { %v3577_v40 = vrot.slane %v3569_v13, %v7792_v54  ;;  %v3584_v41 = vrot.slane %v3570_v30, %v7792_v54  ;;  %v3585_v35 = vcombine.low %v8271_v26, %v3564_v37  ;;  %v3586_v36 = vcombine.high %v8271_v26, %v3564_v37 }
 0xc50   : > { %v8310_v32 = vrot.slane %v4069_v62, %v7792_v54  ;;  %v8313_v34 = vrot.slane %v6375_v33, %v7792_v54  ;;  %v8316_v17 = vrot.slane %v4085_v27, %v7792_v54  ;;  %v8319_v24 = vrot.slane %v6376_v12, %v7792_v54 }
 0xc51   : > { %v3653_v43 = vcombine.low %v8273_v8, %v3566_v38  ;;  %v3654_v44 = vcombine.high %v8273_v8, %v3566_v38  ;;  %v3645_v45 = vrot.slane %v3637_v4, %v7792_v54  ;;  %v3652_v48 = vrot.slane %v3638_v11, %v7792_v54 }
 0xc52   : > { %v4033_v49 = vcombine.low %v8288_v53, %v8291_v19  ;;  %v4049_v50 = vcombine.low %v8294_v39, %v8297_v20  ;;  %v3593_v51 = vrot.slane %v3585_v35, %v7792_v54  ;;  %v3600_v55 = vrot.slane %v3586_v36, %v7792_v54 }
 0xc53   : > { %v3661_v26 = vrot.slane %v3653_v43, %v7792_v54  ;;  %v3668_v56 = vrot.slane %v3654_v44, %v7792_v54  ;;  %v4101_v58 = vcombine.low %v8310_v32, %v8313_v34  ;;  %v4117_v60 = vcombine.low %v8316_v17, %v8319_v24 }
 0xc54   : > { %v4041_v8 = vrot.slane %v4033_v49, %v7795_v61  ;;  %v4057_v57 = vrot.slane %v4049_v50, %v7795_v61  ;;  %v3601_v52 = vcombine.low %v3577_v40, %v3593_v51  ;;  %v3602_v1 = vcombine.high %v3577_v40, %v3593_v51 }
 0xc55   : > { %v3617_v2 = vcombine.low %v3584_v41, %v3600_v55  ;;  %v3618_v3 = vcombine.high %v3584_v41, %v3600_v55  ;;  %v3669_v5 = vcombine.low %v3645_v45, %v3661_v26  ;;  %v3670_v10 = vcombine.high %v3645_v45, %v3661_v26 }
 0xc56   : > { %v3685_v15 = vcombine.low %v3652_v48, %v3668_v56  ;;  %v3686_v16 = vcombine.high %v3652_v48, %v3668_v56  ;;  %v3609_v47 = vrot.slane %v3601_v52, %v7795_v61  ;;  %v3616_v42 = vrot.slane %v3602_v1, %v7795_v61 }
 0xc57   : > { %v3625_v22 = vrot.slane %v3617_v2, %v7795_v61  ;;  %v3632_v18 = vrot.slane %v3618_v3, %v7795_v61  ;;  %v3677_v29 = vrot.slane %v3669_v5, %v7795_v61  ;;  %v3684_v6 = vrot.slane %v3670_v10, %v7795_v61 }
 0xc58   : > { %v3693_v13 = vrot.slane %v3685_v15, %v7795_v61  ;;  %v3700_v30 = vrot.slane %v3686_v16, %v7795_v61  ;;  %v3705_v4 = vcombine.low %v3609_v47, %v3616_v42  ;;  %v6369_v11 = vcombine.high %v3609_v47, %v3616_v42 }
 0xc59   : > { %v3721_v62 = vcombine.low %v3625_v22, %v3632_v18  ;;  %v6370_v33 = vcombine.high %v3625_v22, %v3632_v18  ;;  %v3773_v27 = vcombine.low %v3677_v29, %v3684_v6  ;;  %v6371_v12 = vcombine.high %v3677_v29, %v3684_v6 }
 0xc5a   : > { %v3789_v37 = vcombine.low %v3693_v13, %v3700_v30  ;;  %v6372_v38 = vcombine.high %v3693_v13, %v3700_v30  ;;  %v3712_v40 = vrot.slane %v3705_v4, %v7792_v54  ;;  %v3720_v41 = vrot.slane %v6369_v11, %v7792_v54 }
 0xc5b   : > { %v3728_v35 = vrot.slane %v3721_v62, %v7792_v54  ;;  %v3736_v36 = vrot.slane %v6370_v33, %v7792_v54  ;;  %v3780_v43 = vrot.slane %v3773_v27, %v7792_v54  ;;  %v3788_v44 = vrot.slane %v6371_v12, %v7792_v54 }
 0xc5c   : > { %v3796_v45 = vrot.slane %v3789_v37, %v7792_v54  ;;  %v3804_v48 = vrot.slane %v6372_v38, %v7792_v54  ;;  %v3737_v49 = vcombine.low %v3712_v40, %v3720_v41  ;;  %v4109_v51 = vrot.slane %v4101_v58, %v7795_v61 }
 0xc5d   : > { %v3753_v50 = vcombine.low %v3728_v35, %v3736_v36  ;;  %v4125_v55 = vrot.slane %v4117_v60, %v7795_v61  ;;  %v3805_v26 = vcombine.low %v3780_v43, %v3788_v44  ;;  %v4065_v5 = vcombine.low %v4041_v8, %v4057_v57 }
 0xc5e   : > { %v3821_v56 = vcombine.low %v3796_v45, %v3804_v48  ;;  %v3745_v52 = vrot.slane %v3737_v49, %v7795_v61  ;;  %v4102_v60 = vcombine.high %v8310_v32, %v8313_v34  ;;  %v4118_v22 = vcombine.high %v8316_v17, %v8319_v24 }
 0xc5f   : > { %v3761_v1 = vrot.slane %v3753_v50, %v7795_v61  ;;  %v3813_v2 = vrot.slane %v3805_v26, %v7795_v61  ;;  %v4133_v10 = vcombine.low %v4109_v51, %v4125_v55  ;;  %v4134_v58 = vcombine.high %v4109_v51, %v4125_v55 }
 0xc60   : > { %v3829_v3 = vrot.slane %v3821_v56, %v7795_v61  ;;  %v4066_v18 = vcombine.high %v4041_v8, %v4057_v57  ;;  %v4034_v29 = vcombine.high %v8288_v53, %v8291_v19  ;;  %v4050_v6 = vcombine.high %v8294_v39, %v8297_v20 }
 0xc61   : > { %v4137_v15 = vpack.c.bf16 %v4133_v10, %v4065_v5  ;;  %v3769_v16 = vcombine.low %v3745_v52, %v3761_v1  ;;  %v4116_v4 = vrot.slane %v4102_v60, %v7795_v61  ;;  %v4132_v11 = vrot.slane %v4118_v22, %v7795_v61 }
 0xc62   : > { %v3837_v47 = vcombine.low %v3813_v2, %v3829_v3  ;;  %v4138_v30 = vpack.c.bf16 %v4134_v58, %v4066_v18  ;;  %v4048_v32 = vrot.slane %v4034_v29, %v7795_v61  ;;  %v4064_v34 = vrot.slane %v4050_v6, %v7795_v61 }
 0xc63   : > { %v4441_v42 = vsel %vm1667_vm1, %v4137_v15, 0  ;;  %v4135_v24 = vcombine.low %v4116_v4, %v4132_v11  ;;  %v3738_v8 = vcombine.high %v3712_v40, %v3720_v41  ;;  %v3754_v53 = vcombine.high %v3728_v35, %v3736_v36 }
 0xc64   : > { %6745 = vmatpush3.bf16.xpose.msra.mxu1 %v4441_v42  ;;  %v3841_v13 = vpack.c.bf16 %v3837_v47, %v3769_v16  ;;  %v4488_v17 = vsel %vm1667_vm1, %v4138_v30, 0  ;;  %v3806_v19 = vcombine.high %v3780_v43, %v3788_v44  ;;  %v3822_v39 = vcombine.high %v3796_v45, %v3804_v48 }
 0xc65   : > { %6750 = vmatprep.subr.bf16.mxu1 %v7407_v21  ;;  %v3770_v20 = vcombine.high %v3745_v52, %v3761_v1  ;;  %v3838_v57 = vcombine.high %v3813_v2, %v3829_v3  ;;  %v4067_v62 = vcombine.low %v4048_v32, %v4064_v34  ;;  %v3752_v27 = vrot.slane %v3738_v8, %v7795_v61 }
 0xc66   : > { %v3768_v12 = vrot.slane %v3754_v53, %v7795_v61  ;;  %v3820_v37 = vrot.slane %v3806_v19, %v7795_v61  ;;  %v3836_v38 = vrot.slane %v3822_v39, %v7795_v61  ;;  %v4136_v35 = vcombine.high %v4116_v4, %v4132_v11 }
 0xc67   : > { %v4139_v33 = vpack.c.bf16 %v4135_v24, %v4067_v62  ;;  %v3842_v40 = vpack.c.bf16 %v3838_v57, %v3770_v20  ;;  %v4068_v44 = vcombine.high %v4048_v32, %v4064_v34 }
 0xc68   : > { %v3771_v36 = vcombine.low %v3752_v27, %v3768_v12  ;;  %v3839_v43 = vcombine.low %v3820_v37, %v3836_v38  ;;  %v3772_v50 = vcombine.high %v3752_v27, %v3768_v12  ;;  %v3840_v51 = vcombine.high %v3820_v37, %v3836_v38 }
 0xc69   : > { %v4535_v41 = vsel %vm1667_vm1, %v4139_v33, 0  ;;  %v4140_v45 = vpack.c.bf16 %v4136_v35, %v4068_v44 }
 0xc6a   : > { %v3843_v48 = vpack.c.bf16 %v3839_v43, %v3771_v36  ;;  %v3844_v55 = vpack.c.bf16 %v3840_v51, %v3772_v50 }
 0xc6b   : > { %6747 = vmatmul.mubr.msk.bf16.vlgmr.msra.gmra.mrb[40].mxu1 %vm1667_vm1, %v3841_v13  ;;  %v4582_v49 = vsel %vm1667_vm1, %v4140_v45, 0 }
 0xc6c   : > { %6751 = vmatpush3.bf16.xpose.msra.mxu1 %v4488_v17  ;;  %6752 = vmatprep.mubr.msk.bf16.mxu1 %vm7411_vm0, %v7407_v21  ;;  %v3333_v17 = vrot.slane %v8239_v46, %v7937_v63 }
 0xc6d   : > { %6756 = vmatprep.subr.bf16.mxu1 %v7407_v21 }
 0xc6e   : > { %v8410_v24 = vadd.f32 %v8249_v31, %v3333_v17  ;;  %v8415_v8 = vadd.f32 %v8245_v59, %v3333_v17 }
 0xc73   : > { %6753 = vmatmul.mubr.msk.bf16.vlgmr.msra.gmra.mrb[44].mxu1 %vm1667_vm1, %v3842_v40 }
 0xc74   : > { %6757 = vmatpush3.bf16.xpose.msra.mxu1 %v4535_v41  ;;  %6758 = vmatprep.mubr.msk.bf16.mxu1 %vm7411_vm0, %v7407_v21 }
 0xc75   : > { %6762 = vmatprep.subr.bf16.mxu1 %v7407_v21 }
 0xc7b   : > { %6759 = vmatmul.mubr.msk.bf16.vlgmr.msra.gmra.mrb[48].mxu1 %vm1667_vm1, %v3843_v48 }
 0xc7c   : > { %6763 = vmatpush3.bf16.xpose.msra.mxu1 %v4582_v49  ;;  %6764 = vmatprep.mubr.msk.bf16.mxu1 %vm7411_vm0, %v7407_v21 }
 0xc7d   : > { %6774 = vmatprep.subr.bf16.mxu1 %v7407_v21 }
 0xc83   : > { %6765 = vmatmul.mubr.msk.bf16.vlgmr.msra.gmra.mrb[52].mxu1 %vm1667_vm1, %v3844_v55 }
 0xc84   : > { %6776 = vmatprep.mubr.msk.bf16.mxu1 %vm7411_vm0, %v7407_v21 }
 0xd3e   : > { %v4477_v26 = vpop.f32.mrb[40].mxu1 }
 0xd3f   : > { %v6748_v56 = vpop.f32.mrb[41].mxu1  ;;  %v4625_v52 = vsel %vm1856_vm2, %v4477_v26, -inf }
 0xd40   : > { %4626 = vmax.xlane.f32.xlu1 %v4625_v52  ;;  %v4480_v1 = vpop.f32.mrb[42].mxu1 }
 0xd41   : > { %v6749_v2 = vpop.f32.mrb[43].mxu1  ;;  %v4628_v3 = vsel %vm1856_vm2, %v4480_v1, -inf }
 0xd42   : > { %4629 = vmax.xlane.f32.xlu0 %v4628_v3 }
 0xd46   : > { %v4524_v5 = vpop.f32.mrb[44].mxu1 }
 0xd47   : > { %v6754_v10 = vpop.f32.mrb[45].mxu1  ;;  %v4631_v15 = vsel %vm1856_vm2, %v4524_v5, -inf }
 0xd48   : > { %4632 = vmax.xlane.f32.xlu0 %v4631_v15  ;;  %v4527_v16 = vpop.f32.mrb[46].mxu1 }
 0xd49   : > { %v6755_v47 = vpop.f32.mrb[47].mxu1  ;;  %v4634_v42 = vsel %vm1856_vm2, %v4527_v16, -inf }
 0xd4a   : > { %4635 = vmax.xlane.f32.xlu1 %v4634_v42 }
 0xd4e   : > { %v4571_v58 = vpop.f32.mrb[48].mxu1 }
 0xd4f   : > { %v6760_v60 = vpop.f32.mrb[49].mxu1  ;;  %v4637_v22 = vsel %vm1856_vm2, %v4571_v58, -inf }
 0xd50   : > { %4638 = vmax.xlane.f32.xlu0 %v4637_v22  ;;  %v4574_v18 = vpop.f32.mrb[50].mxu1 }
 0xd51   : > { %v6761_v29 = vpop.f32.mrb[51].mxu1  ;;  %v4640_v6 = vsel %vm1856_vm2, %v4574_v18, -inf }
 0xd52   : > { %4641 = vmax.xlane.f32.xlu1 %v4640_v6 }
 0xd56   : > { %v4618_v13 = vpop.f32.mrb[52].mxu1 }
 0xd57   : > { %v6766_v30 = vpop.f32.mrb[53].mxu1  ;;  %v4643_v4 = vsel %vm1856_vm2, %v4618_v13, -inf }
 0xd58   : > { %4644 = vmax.xlane.f32.xlu0 %v4643_v4  ;;  %v4621_v11 = vpop.f32.mrb[54].mxu1 }
 0xd59   : > { %v6767_v32 = vpop.f32.mrb[55].mxu1  ;;  %v4646_v34 = vsel %vm1856_vm2, %v4621_v11, -inf }
 0xd5a   : > { %4647 = vmax.xlane.f32.xlu1 %v4646_v34 }
 0xd6b   : > { %4145 = vrot.lane.b32.xlu1 %v8410_v24, %s7408_s20 }
 0xd6e   : > { %4143 = vrot.lane.b32.xlu0 %v8415_v8, %s7408_s20 }
 0xd6f   : > { %4149 = vrot.lane.b32.xlu1 %v8415_v8, %s7409_s22 }
 0xd72   : > { %4151 = vrot.lane.b32.xlu0 %v8410_v24, %s7409_s22 }
 0xd73   : > { %4155 = vrot.lane.b32.xlu1 %v8415_v8, %s7410_s21 }
 0xd76   : > { %4157 = vrot.lane.b32.xlu0 %v8410_v24, %s7410_s21 }
 0xdcd   : > { %v4627_v46 = vpop.xlane.xlu1 %4626 }
 0xdce   : > { %v4649_v31 = vsub.f32 %v4477_v26, %v4627_v46 }
 0xdcf   : > { %v4630_v53 = vpop.xlane.xlu0 %4629 }
 0xdd0   : > { %v4657_v59 = vmul.f32 1.442695, %v4649_v31  ;;  %v4650_v19 = vsub.f32 %v4480_v1, %v4630_v53 }
 0xdd2   : > { %7194 = vpow2.f32 %v4657_v59  ;;  %v4659_v39 = vmul.f32 1.442695, %v4650_v19 }
 0xdd4   : > { %7196 = vpow2.f32 %v4659_v39 }
 0xdd5   : > { %v4633_v20 = vpop.xlane.xlu0 %4632 }
 0xdd6   : > { %v4651_v57 = vsub.f32 %v4524_v5, %v4633_v20 }
 0xdd7   : > { %v4636_v62 = vpop.xlane.xlu1 %4635 }
 0xdd8   : > { %v4661_v33 = vmul.f32 1.442695, %v4651_v57  ;;  %v4652_v27 = vsub.f32 %v4527_v16, %v4636_v62 }
 0xdda   : > { %7198 = vpow2.f32 %v4661_v33  ;;  %v4663_v12 = vmul.f32 1.442695, %v4652_v27 }
 0xddc   : > { %v8427_v37 = vpop.eup %7194  ;;  %7200 = vpow2.f32 %v4663_v12 }
 0xddd   : > { %v4639_v38 = vpop.xlane.xlu0 %4638  ;;  %v4673_v40 = vsel %vm1856_vm2, %v8427_v37, 0.0 }
 0xdde   : > { %v8431_v41 = vpop.eup %7196  ;;  %v4653_v35 = vsub.f32 %v4571_v58, %v4639_v38  ;;  %4674 = vadd.xlane.f32.xlu0 %v4673_v40 }
 0xddf   : > { %v4642_v36 = vpop.xlane.xlu1 %4641  ;;  %v4676_v43 = vsel %vm1856_vm2, %v8431_v41, 0.0 }
 0xde0   : > { %v4665_v44 = vmul.f32 1.442695, %v4653_v35  ;;  %v4654_v45 = vsub.f32 %v4574_v18, %v4642_v36  ;;  %4677 = vadd.xlane.f32.xlu1 %v4676_v43 }
 0xde2   : > { %7202 = vpow2.f32 %v4665_v44  ;;  %v4667_v48 = vmul.f32 1.442695, %v4654_v45 }
 0xde4   : > { %v8435_v49 = vpop.eup %7198  ;;  %7204 = vpow2.f32 %v4667_v48 }
 0xde5   : > { %v4645_v50 = vpop.xlane.xlu0 %4644  ;;  %v4679_v51 = vsel %vm1856_vm2, %v8435_v49, 0.0 }
 0xde6   : > { %v8439_v55 = vpop.eup %7200  ;;  %v4655_v26 = vsub.f32 %v4618_v13, %v4645_v50  ;;  %4680 = vadd.xlane.f32.xlu0 %v4679_v51 }
 0xde7   : > { %v4648_v56 = vpop.xlane.xlu1 %4647  ;;  %v4682_v52 = vsel %vm1856_vm2, %v8439_v55, 0.0 }
 0xde8   : > { %v4669_v1 = vmul.f32 1.442695, %v4655_v26  ;;  %v4656_v2 = vsub.f32 %v4621_v11, %v4648_v56  ;;  %4683 = vadd.xlane.f32.xlu1 %v4682_v52 }
 0xde9   : > { %v4144_v3 = vpop.permute.xlu0 %4143 }
 0xdea   : > { %7206 = vpow2.f32 %v4669_v1  ;;  %v4671_v5 = vmul.f32 1.442695, %v4656_v2 }
 0xdeb   : > { %v4146_v10 = vpop.permute.xlu1 %4145 }
 0xdec   : > { %v8443_v15 = vpop.eup %7202  ;;  %7208 = vpow2.f32 %v4671_v5 }
 0xded   : > { %v4152_v16 = vpop.permute.xlu0 %4151  ;;  %v4685_v47 = vsel %vm1856_vm2, %v8443_v15, 0.0 }
 0xdee   : > { %v8447_v42 = vpop.eup %7204  ;;  %4686 = vadd.xlane.f32.xlu1 %v4685_v47  ;;  %v4229_v58 = vcombine.low %v8410_v24, %v4152_v16  ;;  %v4230_v60 = vcombine.high %v8410_v24, %v4152_v16 }
 0xdef   : > { %v4150_v22 = vpop.permute.xlu1 %4149  ;;  %v4688_v18 = vsel %vm1856_vm2, %v8447_v42, 0.0 }
 0xdf0   : > { %4689 = vadd.xlane.f32.xlu0 %v4688_v18  ;;  %v4161_v29 = vcombine.low %v8415_v8, %v4150_v22  ;;  %v4237_v4 = vrot.slane %v4229_v58, %v7792_v54  ;;  %v4244_v11 = vrot.slane %v4230_v60, %v7792_v54  ;;  %v4162_v32 = vcombine.high %v8415_v8, %v4150_v22 }
 0xdf1   : > { %v4158_v6 = vpop.permute.xlu0 %4157 }
 0xdf2   : > { %v4245_v13 = vcombine.low %v4146_v10, %v4158_v6  ;;  %v4246_v30 = vcombine.high %v4146_v10, %v4158_v6  ;;  %v4169_v59 = vrot.slane %v4161_v29, %v7792_v54  ;;  %v4176_v33 = vrot.slane %v4162_v32, %v7792_v54 }
 0xdf3   : > { %v4156_v34 = vpop.permute.xlu1 %4155 }
 0xdf4   : > { %v8457_v17 = vpop.eup %7206  ;;  %v4253_v24 = vrot.slane %v4245_v13, %v7792_v54  ;;  %v4260_v46 = vrot.slane %v4246_v30, %v7792_v54  ;;  %v4177_v31 = vcombine.low %v4144_v3, %v4156_v34  ;;  %v4178_v53 = vcombine.high %v4144_v3, %v4156_v34 }
 0xdf5   : > { %v4691_v19 = vsel %vm1856_vm2, %v8457_v17, 0.0 }
 0xdf6   : > { %v8464_v39 = vpop.eup %7208  ;;  %v4261_v20 = vcombine.low %v4237_v4, %v4253_v24  ;;  %v4262_v57 = vcombine.high %v4237_v4, %v4253_v24  ;;  %v4277_v62 = vcombine.low %v4244_v11, %v4260_v46  ;;  %v4278_v8 = vcombine.high %v4244_v11, %v4260_v46  ;;  %4692 = vadd.xlane.f32.xlu0 %v4691_v19 }
 0xdf7   : > { %v4185_v27 = vrot.slane %v4177_v31, %v7792_v54  ;;  %v4192_v12 = vrot.slane %v4178_v53, %v7792_v54  ;;  %v4694_v38 = vsel %vm1856_vm2, %v8464_v39, 0.0 }
 0xdf8   : > { %v4269_v40 = vrot.slane %v4261_v20, %v7795_v61  ;;  %v4276_v35 = vrot.slane %v4262_v57, %v7795_v61  ;;  %v4285_v36 = vrot.slane %v4277_v62, %v7795_v61  ;;  %v4292_v43 = vrot.slane %v4278_v8, %v7795_v61  ;;  %4695 = vadd.xlane.f32.xlu1 %v4694_v38 }
 0xdf9   : > { %v4193_v44 = vcombine.low %v4169_v59, %v4185_v27  ;;  %v4194_v45 = vcombine.high %v4169_v59, %v4185_v27  ;;  %v4209_v48 = vcombine.low %v4176_v33, %v4192_v12  ;;  %v4210_v50 = vcombine.high %v4176_v33, %v4192_v12 }
 0xdfa   : > { %v4365_v51 = vcombine.low %v4269_v40, %v4276_v35  ;;  %v6379_v26 = vcombine.high %v4269_v40, %v4276_v35  ;;  %v4381_v56 = vcombine.low %v4285_v36, %v4292_v43  ;;  %v6380_v52 = vcombine.high %v4285_v36, %v4292_v43 }
 0xdfb   : > { %v4201_v1 = vrot.slane %v4193_v44, %v7795_v61  ;;  %v4208_v2 = vrot.slane %v4194_v45, %v7795_v61  ;;  %v4217_v3 = vrot.slane %v4209_v48, %v7795_v61  ;;  %v4224_v5 = vrot.slane %v4210_v50, %v7795_v61 }
 0xdfc   : > { %v4372_v10 = vrot.slane %v4365_v51, %v7792_v54  ;;  %v4380_v16 = vrot.slane %v6379_v26, %v7792_v54  ;;  %v4388_v47 = vrot.slane %v4381_v56, %v7792_v54  ;;  %v4396_v58 = vrot.slane %v6380_v52, %v7792_v54 }
 0xdfd   : > { %v4297_v60 = vcombine.low %v4201_v1, %v4208_v2  ;;  %v6377_v22 = vcombine.high %v4201_v1, %v4208_v2  ;;  %v4313_v18 = vcombine.low %v4217_v3, %v4224_v5  ;;  %v6378_v29 = vcombine.high %v4217_v3, %v4224_v5 }
 0xdfe   : > { %v4397_v6 = vcombine.low %v4372_v10, %v4380_v16  ;;  %v4413_v13 = vcombine.low %v4388_v47, %v4396_v58  ;;  %v4398_v30 = vcombine.high %v4372_v10, %v4380_v16  ;;  %v4414_v4 = vcombine.high %v4388_v47, %v4396_v58 }
 0xdff   : > { %v4304_v11 = vrot.slane %v4297_v60, %v7792_v54  ;;  %v4312_v32 = vrot.slane %v6377_v22, %v7792_v54  ;;  %v4320_v34 = vrot.slane %v4313_v18, %v7792_v54  ;;  %v4328_v24 = vrot.slane %v6378_v29, %v7792_v54 }
 0xe00   : > { %v4405_v46 = vrot.slane %v4397_v6, %v7795_v61  ;;  %v4421_v31 = vrot.slane %v4413_v13, %v7795_v61  ;;  %v4412_v53 = vrot.slane %v4398_v30, %v7795_v61  ;;  %v4428_v59 = vrot.slane %v4414_v4, %v7795_v61 }
 0xe01   : > { %v4329_v19 = vcombine.low %v4304_v11, %v4312_v32  ;;  %v4345_v20 = vcombine.low %v4320_v34, %v4328_v24  ;;  %v4330_v57 = vcombine.high %v4304_v11, %v4312_v32  ;;  %v4346_v62 = vcombine.high %v4320_v34, %v4328_v24 }
 0xe02   : > { %v4431_v8 = vcombine.low %v4412_v53, %v4428_v59  ;;  %v4432_v33 = vcombine.high %v4412_v53, %v4428_v59  ;;  %v4429_v35 = vcombine.low %v4405_v46, %v4421_v31  ;;  %v4430_v36 = vcombine.high %v4405_v46, %v4421_v31  ;;  %v7068_v59 = vld [vmem:[#allocation2 + $0x50] sm:$0xff]  }
 0xe03   : > { %v4337_v27 = vrot.slane %v4329_v19, %v7795_v61  ;;  %v4353_v12 = vrot.slane %v4345_v20, %v7795_v61  ;;  %v4344_v38 = vrot.slane %v4330_v57, %v7795_v61  ;;  %v4360_v40 = vrot.slane %v4346_v62, %v7795_v61  ;;  %v7069_v19 = vld [vmem:[#allocation2 + $0x58] sm:$0xff]  }
 0xe05   : > { %v4361_v43 = vcombine.low %v4337_v27, %v4353_v12  ;;  %v4362_v44 = vcombine.high %v4337_v27, %v4353_v12  ;;  %v4363_v45 = vcombine.low %v4344_v38, %v4360_v40  ;;  %v4364_v48 = vcombine.high %v4344_v38, %v4360_v40 }
 0xe07   : > { %v4433_v50 = vpack.c.bf16 %v4429_v35, %v4361_v43  ;;  %v4434_v51 = vpack.c.bf16 %v4430_v36, %v4362_v44  ;;  %v4435_v26 = vpack.c.bf16 %v4431_v8, %v4363_v45  ;;  %v4436_v56 = vpack.c.bf16 %v4432_v33, %v4364_v48 }
 0xe09   : > { %6769 = vmatpush3.bf16.msra.mxu0 %v4433_v50  ;;  %6775 = vmatpush3.bf16.msra.mxu1 %v4434_v51 }
 0xe0a   : > { %6780 = vmatprep.subr.bf16.mxu0 %v7407_v21  ;;  %6786 = vmatprep.subr.bf16.mxu1 %v7407_v21 }
 0xe6b   : > { %v4675_v52 = vpop.xlane.xlu0 %4674 }
 0xe6c   : > { %7210 = vrcp.f32 %v4675_v52 }
 0xe6d   : > { %v4678_v1 = vpop.xlane.xlu1 %4677 }
 0xe6e   : > { %7212 = vrcp.f32 %v4678_v1 }
 0xe73   : > { %v4681_v2 = vpop.xlane.xlu0 %4680 }
 0xe74   : > { %7214 = vrcp.f32 %v4681_v2 }
 0xe75   : > { %v4684_v3 = vpop.xlane.xlu1 %4683 }
 0xe76   : > { %v7211_v5 = vpop.eup %7210  ;;  %7216 = vrcp.f32 %v4684_v3 }
 0xe77   : > { %v4705_v16 = vmul.f32 %v7211_v5, %v8427_v37 }
 0xe78   : > { %v7213_v10 = vpop.eup %7212 }
 0xe79   : > { %v4706_v47 = vmul.f32 %v7213_v10, %v8431_v41 }
 0xe7b   : > { %v4687_v58 = vpop.xlane.xlu1 %4686  ;;  %v4713_v60 = vpack.c.bf16 %v4706_v47, %v4705_v16 }
 0xe7c   : > { %7218 = vrcp.f32 %v4687_v58 }
 0xe7d   : > { %v4690_v22 = vpop.xlane.xlu0 %4689  ;;  %6771 = vmatmul.mubr.msk.bf16.vlgmr.msra.gmra.mrb[28].mxu0 %vm1856_vm2, %v4713_v60 }
 0xe7e   : > { %v7215_v18 = vpop.eup %7214  ;;  %7220 = vrcp.f32 %v4690_v22  ;;  %6781 = vmatpush3.bf16.msra.mxu0 %v4435_v26  ;;  %6782 = vmatprep.mubr.msk.bf16.mxu0 %vm7411_vm0, %v7407_v21 }
 0xe7f   : > { %6792 = vmatprep.subr.bf16.mxu0 %v7407_v21  ;;  %v4707_v6 = vmul.f32 %v7215_v18, %v8435_v49 }
 0xe80   : > { %v7217_v29 = vpop.eup %7216 }
 0xe81   : > { %v4708_v37 = vmul.f32 %v7217_v29, %v8439_v55 }
 0xe83   : > { %v4693_v41 = vpop.xlane.xlu0 %4692  ;;  %v4714_v13 = vpack.c.bf16 %v4708_v37, %v4707_v6 }
 0xe84   : > { %7222 = vrcp.f32 %v4693_v41 }
 0xe85   : > { %6777 = vmatmul.mubr.msk.bf16.vlgmr.msra.gmra.mrb[56].mxu1 %vm1856_vm2, %v4714_v13  ;;  %v4696_v30 = vpop.xlane.xlu1 %4695 }
 0xe86   : > { %v7219_v4 = vpop.eup %7218  ;;  %6787 = vmatpush3.bf16.msra.mxu1 %v4436_v56  ;;  %7224 = vrcp.f32 %v4696_v30  ;;  %6788 = vmatprep.mubr.msk.bf16.mxu1 %vm7411_vm0, %v7407_v21 }
 0xe87   : > { %v4709_v32 = vmul.f32 %v7219_v4, %v8443_v15  ;;  %v7066_v15 = vld [vmem:[#allocation2 + $0x40] sm:$0xff]  }
 0xe88   : > { %v7221_v11 = vpop.eup %7220 }
 0xe89   : > { %v4710_v34 = vmul.f32 %v7221_v11, %v8447_v42  ;;  %v7067_v42 = vld [vmem:[#allocation2 + $0x48] sm:$0xff]  }
 0xe8b   : > { %v4715_v49 = vpack.c.bf16 %v4710_v34, %v4709_v32 }
 0xe8d   : > { %6783 = vmatmul.mubr.msk.bf16.vlgmr.msra.gmra.mrb[32].mxu0 %vm1856_vm2, %v4715_v49 }
 0xe8e   : > { %v7223_v55 = vpop.eup %7222  ;;  %6808 = vmatprep.mubr.msk.bf16.mxu0 %vm7411_vm0, %v7407_v21  ;;  %6793 = vmatpush3.bf16.msra.mxu0 %v7066_v15 }
 0xe8f   : > { %v4711_v46 = vmul.f32 %v7223_v55, %v8457_v17  ;;  %6794 = vmatprep.subr.bf16.mxu0 %v7407_v21  ;;  %v7070_v17 = vld [vmem:[#allocation2 + $0x60] sm:$0xff]  }
 0xe90   : > { %v7225_v24 = vpop.eup %7224 }
 0xe91   : > { %v4712_v31 = vmul.f32 %v7225_v24, %v8464_v39  ;;  %v7071_v39 = vld [vmem:[#allocation2 + $0x68] sm:$0xff]  }
 0xe92   : > { %6795 = vmatpush3.bf16.msra.mxu0 %v7067_v42 }
 0xe93   : > { %v4716_v53 = vpack.c.bf16 %v4712_v31, %v4711_v46  ;;  %6796 = vmatprep.subr.bf16.mxu0 %v7407_v21 }
 0xe95   : > { %6789 = vmatmul.mubr.msk.bf16.vlgmr.msra.gmra.mrb[60].mxu1 %vm1856_vm2, %v4716_v53 }
 0xe96   : > { %5603 = vmatprep.mubr.bf16.mxu1 %v7406_v0  ;;  %6797 = vmatpush3.bf16.msra.mxu0 %v7068_v59 }
 0xe97   : > { %6798 = vmatprep.subr.bf16.mxu0 %v7407_v21 }
 0xe9a   : > { %6799 = vmatpush3.bf16.msra.mxu0 %v7069_v19 }
 0xe9b   : > { %6800 = vmatprep.subr.bf16.mxu0 %v7407_v21 }
 0xe9e   : > { %6801 = vmatpush3.bf16.msra.mxu0 %v7070_v17 }
 0xe9f   : > { %6802 = vmatprep.subr.bf16.mxu0 %v7407_v21 }
 0xea2   : > { %6803 = vmatpush3.bf16.msra.mxu0 %v7071_v39 }
 0xea3   : > { %6804 = vmatprep.subr.bf16.mxu0 %v7407_v21 }
 0xf50   : > { %v4754_v20 = vpop.f32.mrb[28].mxu0 }
 0xf51   : > { %v6772_v57 = vpop.f32.mrb[29].mxu0 }
 0xf52   : > { %v4757_v62 = vpop.f32.mrb[30].mxu0 }
 0xf53   : > { %v6773_v8 = vpop.f32.mrb[31].mxu0 }
 0xf58   : > { %v4798_v33 = vpop.f32.mrb[56].mxu1 }
 0xf59   : > { %v6778_v27 = vpop.f32.mrb[57].mxu1 }
 0xf5a   : > { %v4801_v12 = vpop.f32.mrb[58].mxu1 }
 0xf5b   : > { %v6779_v38 = vpop.f32.mrb[59].mxu1 }
 0xf60   : > { %v4842_v40 = vpop.f32.mrb[32].mxu0 }
 0xf61   : > { %v4893_v35 = vcombine.low %v4754_v20, %v4842_v40  ;;  %v4894_v36 = vcombine.high %v4754_v20, %v4842_v40  ;;  %v6784_v43 = vpop.f32.mrb[33].mxu0 }
 0xf62   : > { %v4845_v44 = vpop.f32.mrb[34].mxu0  ;;  %v7072_v43 = vld [vmem:[#allocation2 + $0x70] sm:$0xff]  }
 0xf63   : > { %v4961_v45 = vcombine.low %v4757_v62, %v4845_v44  ;;  %v4962_v48 = vcombine.high %v4757_v62, %v4845_v44  ;;  %v6785_v50 = vpop.f32.mrb[35].mxu0  ;;  %v4901_v1 = vrot.slane %v4893_v35, %v7792_v54  ;;  %v4908_v2 = vrot.slane %v4894_v36, %v7792_v54  ;;  %6805 = vmatpush3.bf16.msra.mxu0 %v7072_v43  ;;  %v7077_v43 = vld [vmem:[#allocation4 + $0x108] ss:$16 sps:$4 sm:$0xff]  }
 0xf64   : > { %6806 = vmatprep.subr.bf16.mxu0 %v7407_v21 }
 0xf65   : > { %v4969_v6 = vrot.slane %v4961_v45, %v7792_v54  ;;  %v4976_v37 = vrot.slane %v4962_v48, %v7792_v54 }
 0xf68   : > { %v4886_v51 = vpop.f32.mrb[60].mxu1 }
 0xf69   : > { %v4909_v26 = vcombine.low %v4798_v33, %v4886_v51  ;;  %v4910_v56 = vcombine.high %v4798_v33, %v4886_v51  ;;  %v6790_v52 = vpop.f32.mrb[61].mxu1 }
 0xf6a   : > { %v4889_v3 = vpop.f32.mrb[62].mxu1 }
 0xf6b   : > { %v4917_v5 = vrot.slane %v4909_v26, %v7792_v54  ;;  %v4924_v10 = vrot.slane %v4910_v56, %v7792_v54  ;;  %v4977_v16 = vcombine.low %v4801_v12, %v4889_v3  ;;  %v4978_v47 = vcombine.high %v4801_v12, %v4889_v3  ;;  %v6791_v58 = vpop.f32.mrb[63].mxu1 }
 0xf6d   : > { %v4925_v60 = vcombine.low %v4901_v1, %v4917_v5  ;;  %v4926_v22 = vcombine.high %v4901_v1, %v4917_v5  ;;  %v4941_v18 = vcombine.low %v4908_v2, %v4924_v10  ;;  %v4942_v29 = vcombine.high %v4908_v2, %v4924_v10 }
 0xf6e   : > { %v4985_v41 = vrot.slane %v4977_v16, %v7792_v54  ;;  %v4992_v13 = vrot.slane %v4978_v47, %v7792_v54 }
 0xf6f   : > { %v4933_v30 = vrot.slane %v4925_v60, %v7795_v61  ;;  %v4940_v4 = vrot.slane %v4926_v22, %v7795_v61  ;;  %v4949_v11 = vrot.slane %v4941_v18, %v7795_v61  ;;  %v4956_v32 = vrot.slane %v4942_v29, %v7795_v61  ;;  %v7073_v29 = vld [vmem:[#allocation2 + $0x78] sm:$0xff]  }
 0xf70   : > { %v4993_v34 = vcombine.low %v4969_v6, %v4985_v41  ;;  %v4994_v49 = vcombine.high %v4969_v6, %v4985_v41  ;;  %v5009_v55 = vcombine.low %v4976_v37, %v4992_v13  ;;  %v5010_v24 = vcombine.high %v4976_v37, %v4992_v13  ;;  %6807 = vmatpush3.bf16.msra.mxu0 %v7073_v29  ;;  %v7101_v29 = vld [vmem:[#allocation4 + $0x188] ss:$16 sps:$4 sm:$0xff]  }
 0xf71   : > { %v5029_v46 = vcombine.low %v4933_v30, %v4940_v4  ;;  %v6389_v31 = vcombine.high %v4933_v30, %v4940_v4  ;;  %v5045_v53 = vcombine.low %v4949_v11, %v4956_v32  ;;  %v6390_v15 = vcombine.high %v4949_v11, %v4956_v32 }
 0xf72   : > { %v5001_v42 = vrot.slane %v4993_v34, %v7795_v61  ;;  %v5008_v59 = vrot.slane %v4994_v49, %v7795_v61  ;;  %v5017_v19 = vrot.slane %v5009_v55, %v7795_v61  ;;  %v5024_v17 = vrot.slane %v5010_v24, %v7795_v61 }
 0xf73   : > { %v5036_v39 = vrot.slane %v5029_v46, %v7792_v54  ;;  %v5044_v20 = vrot.slane %v6389_v31, %v7792_v54  ;;  %v5052_v57 = vrot.slane %v5045_v53, %v7792_v54  ;;  %v5060_v62 = vrot.slane %v6390_v15, %v7792_v54 }
 0xf74   : > { %v5097_v8 = vcombine.low %v5001_v42, %v5008_v59  ;;  %v6391_v33 = vcombine.high %v5001_v42, %v5008_v59  ;;  %v5113_v27 = vcombine.low %v5017_v19, %v5024_v17  ;;  %v6392_v12 = vcombine.high %v5017_v19, %v5024_v17 }
 0xf75   : > { %v5062_v38 = vcombine.high %v5036_v39, %v5044_v20  ;;  %v5078_v40 = vcombine.high %v5052_v57, %v5060_v62  ;;  %v5061_v35 = vcombine.low %v5036_v39, %v5044_v20  ;;  %v5077_v36 = vcombine.low %v5052_v57, %v5060_v62  ;;  %v6394_v20 = vld [vmem:[%s8618_s4 + $0x1] ss:$0 sm:$0xff] }
 0xf76   : > { %v5104_v44 = vrot.slane %v5097_v8, %v7792_v54  ;;  %v5112_v45 = vrot.slane %v6391_v33, %v7792_v54  ;;  %v5120_v48 = vrot.slane %v5113_v27, %v7792_v54  ;;  %v5128_v50 = vrot.slane %v6392_v12, %v7792_v54 }
 0xf77   : > { %v5076_v51 = vrot.slane %v5062_v38, %v7795_v61  ;;  %v5092_v26 = vrot.slane %v5078_v40, %v7795_v61  ;;  %v5069_v56 = vrot.slane %v5061_v35, %v7795_v61  ;;  %v5085_v52 = vrot.slane %v5077_v36, %v7795_v61  ;;  %v7074_v35 = vld [vmem:[#allocation4 + $0x100] ss:$16 sps:$4 sm:$0xff]   ;;  %v7076_v36 = vld [vmem:[#allocation4 + $0x104] ss:$16 sps:$4 sm:$0xff]  }
 0xf78   : > { %v5130_v1 = vcombine.high %v5104_v44, %v5112_v45  ;;  %v5146_v2 = vcombine.high %v5120_v48, %v5128_v50  ;;  %v5129_v3 = vcombine.low %v5104_v44, %v5112_v45  ;;  %v5145_v5 = vcombine.low %v5120_v48, %v5128_v50  ;;  %v7082_v44 = vld [vmem:[#allocation4 + $0x124] ss:$16 sps:$4 sm:$0xff]   ;;  %5571 = vmatprep.subr.bf16.mxu1 %v7076_v36  ;;  %v7085_v45 = vld [vmem:[#allocation4 + $0x12c] ss:$16 sps:$4 sm:$0xff]   ;;  %v7080_v48 = vld [vmem:[#allocation4 + $0x120] ss:$16 sps:$4 sm:$0xff]  }
 0xf79   : > { %v5095_v10 = vcombine.low %v5076_v51, %v5092_v26  ;;  %v5093_v16 = vcombine.low %v5069_v56, %v5085_v52  ;;  %v5094_v47 = vcombine.high %v5069_v56, %v5085_v52  ;;  %v5096_v58 = vcombine.high %v5076_v51, %v5092_v26  ;;  %5572 = vmatpush1.bf16.msra.mxu1 %v7074_v35  ;;  %v7083_v50 = vld [vmem:[#allocation4 + $0x128] ss:$16 sps:$4 sm:$0xff]   ;;  %v7125_v35 = vld [vmem:[#allocation6 + $0x180] sm:$0xff]  }
 0xf7a   : > { %v5144_v54 = vrot.slane %v5130_v1, %v7795_v61  ;;  %v5160_v60 = vrot.slane %v5146_v2, %v7795_v61  ;;  %v5137_v22 = vrot.slane %v5129_v3, %v7795_v61  ;;  %v5153_v18 = vrot.slane %v5145_v5, %v7795_v61  ;;  %5573 = vmatprep.subr.bf16.mxu1 %v7082_v44  ;;  %v7088_v3 = vld [vmem:[#allocation4 + $0x144] ss:$16 sps:$4 sm:$0xff]   ;;  %v7091_v5 = vld [vmem:[#allocation4 + $0x14c] ss:$16 sps:$4 sm:$0xff]  }
 0xf7b   : > { %v7128_v44 = vld [vmem:[#allocation6 + $0x108] sm:$0xff]  }
 0xf7c   : > { %v5163_v6 = vcombine.low %v5144_v54, %v5160_v60  ;;  %v5162_v37 = vcombine.high %v5137_v22, %v5153_v18  ;;  %v5161_v41 = vcombine.low %v5137_v22, %v5153_v18  ;;  %v5164_v13 = vcombine.high %v5144_v54, %v5160_v60  ;;  %v7092_v54 = vld [vmem:[#allocation4 + $0x160] ss:$16 sps:$4 sm:$0xff]   ;;  %v7095_v60 = vld [vmem:[#allocation4 + $0x168] ss:$16 sps:$4 sm:$0xff]   ;;  %v7100_v18 = vld [vmem:[#allocation4 + $0x184] ss:$16 sps:$4 sm:$0xff]  }
 0xf7d   : > { %5574 = vmatpush1.bf16.msra.mxu1 %v7080_v48  ;;  %v7098_v22 = vld [vmem:[#allocation4 + $0x180] ss:$16 sps:$4 sm:$0xff]  }
 0xf7e   : > { %v6904_v30 = vpack.i.bf16 %v5163_v6, %v5095_v10  ;;  %v6899_v21 = vpack.i.bf16 %v5162_v37, %v5094_v47  ;;  %v6909_v4 = vpack.i.bf16 %v5164_v13, %v5096_v58  ;;  %v7086_v10 = vld [vmem:[#allocation4 + $0x140] ss:$16 sps:$4 sm:$0xff]   ;;  %5575 = vmatprep.subr.bf16.mxu1 %v7088_v3  ;;  %v7094_v47 = vld [vmem:[#allocation4 + $0x164] ss:$16 sps:$4 sm:$0xff]   ;;  %v7097_v58 = vld [vmem:[#allocation4 + $0x16c] ss:$16 sps:$4 sm:$0xff]  }
 0xf7f   : > { %v7103_v6 = vld [vmem:[#allocation4 + $0x18c] ss:$16 sps:$4 sm:$0xff]   ;;  %v7106_v37 = vld [vmem:[#allocation4 + $0x1a4] ss:$16 sps:$4 sm:$0xff]   ;;  %v7104_v13 = vld [vmem:[#allocation4 + $0x1a0] ss:$16 sps:$4 sm:$0xff]  }
 0xf80   : > { %6905 = vrot.lane.b32.xlu1 %v6904_v30, %s7409_s22  ;;  %6900 = vrot.lane.b32.xlu0 %v6899_v21, %s7410_s21  ;;  %v7107_v30 = vld [vmem:[#allocation4 + $0x1a8] ss:$16 sps:$4 sm:$0xff]   ;;  %v7112_v21 = vld [vmem:[#allocation4 + $0x1c4] ss:$16 sps:$4 sm:$0xff]  }
 0xf81   : > { %5576 = vmatpush1.bf16.msra.mxu1 %v7086_v10  ;;  %v7130_v48 = vld [vmem:[#allocation6 + $0x150] sm:$0xff]   ;;  %v7140_v3 = vld [vmem:[#allocation6 + $0x120] sm:$0xff]   ;;  %v7142_v10 = vld [vmem:[#allocation6 + $0x168] sm:$0xff]  }
 0xf82   : > { %5577 = vmatprep.subr.bf16.mxu1 %v7094_v47  ;;  %v7144_v47 = vld [vmem:[#allocation6 + $0x128] sm:$0xff]  }
 0xf84   : > { %6910 = vrot.lane.b32.xlu1 %v6909_v4, %s7408_s20  ;;  %v7115_v4 = vld [vmem:[#allocation4 + $0x1cc] ss:$16 sps:$4 sm:$0xff]  }
 0xf85   : > { %5578 = vmatpush1.bf16.msra.mxu1 %v7092_v54  ;;  %v7146_v54 = vld [vmem:[#allocation6 + $0x170] sm:$0xff]  }
 0xf86   : > { %5579 = vmatprep.subr.bf16.mxu1 %v7100_v18  ;;  %v7149_v18 = vld [vmem:[#allocation6 + $0x1b0] sm:$0xff]  }
 0xf89   : > { %5580 = vmatpush1.bf16.msra.mxu1 %v7098_v22  ;;  %v7148_v22 = vld [vmem:[#allocation6 + $0x130] sm:$0xff]  }
 0xf8a   : > { %5581 = vmatprep.subr.bf16.mxu1 %v7106_v37  ;;  %v7152_v37 = vld [vmem:[#allocation6 + $0x138] sm:$0xff]  }
 0xf8d   : > { %5582 = vmatpush1.bf16.msra.mxu1 %v7104_v13  ;;  %v6407_v13 = vld [vmem:[%s8622_s8 + $0x4] sm:$0xf] }
 0xf8e   : > { %5583 = vmatprep.subr.bf16.mxu1 %v7112_v21  ;;  %v5402_v21 = vrot.slane %v6407_v13, %v7937_v63 }
 0xff2   : > { %v6906_v11 = vpop.permute.xlu1 %6905  ;;  %v6901_v32 = vpop.permute.xlu0 %6900 }
 0xff3   : > { %v6903_v34 = vunpack.i.h.bf16 %v6901_v32  ;;  %v6902_v49 = vunpack.i.l.bf16 %v6901_v32  ;;  %v6908_v61 = vunpack.i.h.bf16 %v6906_v11  ;;  %v6907_v55 = vunpack.i.l.bf16 %v6906_v11  ;;  %v7110_v11 = vld [vmem:[#allocation4 + $0x1c0] ss:$16 sps:$4 sm:$0xff]   ;;  %v7113_v32 = vld [vmem:[#allocation4 + $0x1c8] ss:$16 sps:$4 sm:$0xff]  }
 0xff4   : > { %5584 = vmatpush1.bf16.msra.mxu1 %v7110_v11  ;;  %v5406_v11 = vrot.slane %v6407_v13, %v2634_v14 }
 0xff5   : > { %v5189_v24 = vsel %vm1667_vm1, %v5093_v16, %v6902_v49  ;;  %v5190_v46 = vsel %vm1667_vm1, %v5161_v41, %v6903_v34  ;;  %v7089_v16 = vld [vmem:[#allocation4 + $0x148] ss:$16 sps:$4 sm:$0xff]   ;;  %v7109_v41 = vld [vmem:[#allocation4 + $0x1ac] ss:$16 sps:$4 sm:$0xff]   ;;  %v7118_v34 = vld [vmem:[#allocation4 + $0x1e4] ss:$16 sps:$4 sm:$0xff]  }
 0xff6   : > { %v6911_v31 = vpop.permute.xlu1 %6910  ;;  %v5191_v42 = vsel %vm2423_vm3, %v5189_v24, %v6907_v55  ;;  %v5192_v59 = vsel %vm2423_vm3, %v5190_v46, %v6908_v61  ;;  %v7121_v49 = vld [vmem:[#allocation4 + $0x1ec] ss:$16 sps:$4 sm:$0xff]   ;;  %v7116_v61 = vld [vmem:[#allocation4 + $0x1e0] ss:$16 sps:$4 sm:$0xff]   ;;  %5585 = vmatprep.subr.bf16.mxu1 %v7118_v34  ;;  %v7119_v55 = vld [vmem:[#allocation4 + $0x1e8] ss:$16 sps:$4 sm:$0xff]  }
 0xff7   : > { %v6913_v53 = vunpack.i.h.bf16 %v6911_v31  ;;  %v6912_v15 = vunpack.i.l.bf16 %v6911_v31  ;;  %v7122_v24 = vld [vmem:[#allocation6 + $0x140] sm:$0xff]  }
 0xff8   : > { %v7123_v46 = vld [vmem:[#allocation6 + $0x1c0] sm:$0xff]   ;;  %5586 = vmatpush1.bf16.msra.mxu1 %v7116_v61 }
 0xff9   : > { %v5193_v19 = vsel %vm2426_vm4, %v5191_v42, %v6912_v15  ;;  %v5194_v17 = vsel %vm2426_vm4, %v5192_v59, %v6913_v53  ;;  %6592 = vmatprep.subr.bf16.mxu1 %v7122_v24 }
 0xffa   : > { %v5195_v39 = vpack.c.bf16 %v5194_v17, %v5193_v19 }
 0xffc   : > { %6809 = vmatmul.mubr.bf16.vlgmr.msra.gmra.mrb[36].mxu0 %v5195_v39 }
 0xffd   : > { %5646 = vmatprep.mubr.bf16.mxu0 %v7406_v0  ;;  %v7079_v0 = vld [vmem:[#allocation4 + $0x10c] ss:$16 sps:$4 sm:$0xff]  }
 0xffe   : > { %5614 = vmatprep.subr.bf16.mxu0 %v7079_v0  ;;  %v7127_v0 = vld [vmem:[#allocation6 + $0x1c8] sm:$0xff]  }
 0xfff   : > { %5615 = vmatpush1.bf16.msra.mxu0 %v7077_v43  ;;  %v7126_v43 = vld [vmem:[#allocation6 + $0x148] sm:$0xff]  }
0x1000   : > { %5616 = vmatprep.subr.bf16.mxu0 %v7085_v45  ;;  %v7129_v45 = vld [vmem:[#allocation6 + $0x188] sm:$0xff]  }
0x1003   : > { %5617 = vmatpush1.bf16.msra.mxu0 %v7083_v50  ;;  %v7131_v50 = vld [vmem:[#allocation6 + $0x1d0] sm:$0xff]  }
0x1004   : > { %5618 = vmatprep.subr.bf16.mxu0 %v7091_v5  ;;  %v7141_v5 = vld [vmem:[#allocation6 + $0x1a0] sm:$0xff]  }
0x1007   : > { %5619 = vmatpush1.bf16.msra.mxu0 %v7089_v16  ;;  %v7143_v16 = vld [vmem:[#allocation6 + $0x1e8] sm:$0xff]  }
0x1008   : > { %5620 = vmatprep.subr.bf16.mxu0 %v7097_v58  ;;  %v7145_v58 = vld [vmem:[#allocation6 + $0x1a8] sm:$0xff]  }
0x100b   : > { %5621 = vmatpush1.bf16.msra.mxu0 %v7095_v60  ;;  %v7147_v60 = vld [vmem:[#allocation6 + $0x1f0] sm:$0xff]  }
0x100c   : > { %5622 = vmatprep.subr.bf16.mxu0 %v7103_v6  ;;  %v7151_v6 = vld [vmem:[#allocation6 + $0x1f8] sm:$0xff]  }
0x100f   : > { %5623 = vmatpush1.bf16.msra.mxu0 %v7101_v29  ;;  %v7150_v29 = vld [vmem:[#allocation6 + $0x178] sm:$0xff]  }
0x1010   : > { %5624 = vmatprep.subr.bf16.mxu0 %v7109_v41  ;;  %v7153_v41 = vld [vmem:[#allocation6 + $0x1b8] sm:$0xff]  }
0x1013   : > { %5625 = vmatpush1.bf16.msra.mxu0 %v7107_v30  ;;  %v5394_v30 = vrot.slane %v6407_v13, %v7721_v25 }
0x1014   : > { %5626 = vmatprep.subr.bf16.mxu0 %v7115_v4  ;;  %v5398_v4 = vrot.slane %v6407_v13, %v7732_v28 }
0x1017   : > { %5627 = vmatpush1.bf16.msra.mxu0 %v7113_v32 }
0x1018   : > { %5628 = vmatprep.subr.bf16.mxu0 %v7121_v49 }
0x101b   : > { %5629 = vmatpush1.bf16.msra.mxu0 %v7119_v55 }
0x101c   : > { %6614 = vmatprep.subr.bf16.mxu0 %v7123_v46 }
0x10cf   : > { %v5303_v57 = vpop.f32.mrb[36].mxu0 }
0x10d0   : > { %v5304_v62 = vadd.f32 %v6394_v20, %v5303_v57  ;;  %v6810_v8 = vpop.f32.mrb[37].mxu0 }
0x10d1   : > { %v5306_v33 = vpop.f32.mrb[38].mxu0 }
0x10d2   : > { %v5307_v27 = vadd.f32 %v6394_v20, %v5306_v33  ;;  %v6811_v12 = vpop.f32.mrb[39].mxu0  ;;  %v5310_v38 = vadd.f32 %v5304_v62, %v8226_v7  ;;  %v6404_v20 = vld [vmem:[%s8619_s5 + $0x1] ss:$0 sm:$0xff] }
0x10d3   : > { %v6406_v33 = vld [vmem:[%s8620_s6 + $0x1] ss:$0 sm:$0xff] }
0x10d4   : > { %5312 = vadd.xlane.f32.xlu0 %v5310_v38  ;;  %v5311_v40 = vadd.f32 %v5307_v27, %v8228_v9 }
0x10d6   : > { %5314 = vadd.xlane.f32.xlu1 %v5311_v40 }
0x1161   : > { %v5313_v7 = vpop.xlane.xlu0 %5312 }
0x1162   : > { %v5316_v51 = vmul.f32 0.0078125, %v5313_v7  ;;  %v7132_v7 = vld [vmem:[#allocation6 + $0x110] sm:$0xff]  }
0x1163   : > { %v5315_v9 = vpop.xlane.xlu1 %5314 }
0x1164   : > { %v8571_v26 = vsub.f32 %v5310_v38, %v5316_v51  ;;  %v5317_v56 = vmul.f32 0.0078125, %v5315_v9  ;;  %v7133_v51 = vld [vmem:[#allocation6 + $0x190] sm:$0xff]   ;;  %v7134_v9 = vld [vmem:[#allocation6 + $0x158] sm:$0xff]  }
0x1166   : > { %v8573_v52 = vsub.f32 %v5311_v40, %v5317_v56  ;;  %v5320_v1 = vmul.f32 %v8571_v26, %v8571_v26  ;;  %v7124_v40 = vld [vmem:[#allocation6 + $0x100] sm:$0xff]   ;;  %v7136_v56 = vld [vmem:[#allocation6 + $0x118] sm:$0xff]  }
0x1168   : > { %5322 = vadd.xlane.f32.xlu0 %v5320_v1  ;;  %v5321_v2 = vmul.f32 %v8573_v52, %v8573_v52  ;;  %v7138_v1 = vld [vmem:[#allocation6 + $0x160] sm:$0xff]  }
0x116c   : > { %5324 = vadd.xlane.f32.xlu0 %v5321_v2  ;;  %v7139_v2 = vld [vmem:[#allocation6 + $0x1e0] sm:$0xff]  }
0x11f5   : > { %v5323_v31 = vpop.xlane.xlu0 %5322 }
0x11f6   : > { %v5326_v53 = vmul.f32 0.0078125, %v5323_v31 }
0x11f8   : > { %v5328_v15 = vadd.f32 1e-05, %v5326_v53 }
0x11f9   : > { %v5325_v42 = vpop.xlane.xlu0 %5324 }
0x11fa   : > { %7226 = vrsqrt.f32 %v5328_v15  ;;  %v5327_v59 = vmul.f32 0.0078125, %v5325_v42 }
0x11fc   : > { %v5329_v19 = vadd.f32 1e-05, %v5327_v59 }
0x11fe   : > { %7228 = vrsqrt.f32 %v5329_v19 }
0x1204   : > { %v7227_v17 = vpop.eup %7226 }
0x1205   : > { %v5332_v39 = vmul.f32 %v7227_v17, %v8571_v26  ;;  %v7135_v26 = vld [vmem:[#allocation6 + $0x1d8] sm:$0xff]  }
0x1207   : > { %v5342_v8 = vmul.f32 %v6404_v20, %v5332_v39 }
0x1208   : > { %v7229_v57 = vpop.eup %7228 }
0x1209   : > { %v5333_v62 = vmul.f32 %v7229_v57, %v8573_v52  ;;  %v8587_v12 = vadd.f32 %v6406_v33, %v5342_v8  ;;  %v7137_v52 = vld [vmem:[#allocation6 + $0x198] sm:$0xff]  }
0x120b   : > { %v5343_v27 = vmul.f32 %v6404_v20, %v5333_v62 }
0x120d   : > { %v8589_v38 = vadd.f32 %v6406_v33, %v5343_v27 }
0x120f   : > { %v5354_v36 = vpack.c.bf16 %v8589_v38, %v8587_v12 }
0x1211   : > { %5604 = vmatmul.mubr.bf16.vlgmr.msra.gmra.mrb[64].mxu1 %v5354_v36  ;;  %5647 = vmatmul.mubr.bf16.vlgmr.msra.gmra.mrb[40].mxu0 %v5354_v36 }
0x1212   : > { %6593 = vmatpush3.bf16.msra.mxu1 %v7124_v40  ;;  %6615 = vmatpush3.bf16.msra.mxu0 %v7125_v35 }
0x1213   : > { %6594 = vmatprep.subr.bf16.mxu1 %v7126_v43  ;;  %6616 = vmatprep.subr.bf16.mxu0 %v7127_v0  ;;  %v6441_v0 = vld [vmem:[%s8624_s10 + $0x1] ss:$0 sm:$0xff] }
0x1216   : > { %6595 = vmatpush3.bf16.msra.mxu1 %v7128_v44  ;;  %6617 = vmatpush3.bf16.msra.mxu0 %v7129_v45 }
0x1217   : > { %6596 = vmatprep.subr.bf16.mxu1 %v7130_v48  ;;  %6618 = vmatprep.subr.bf16.mxu0 %v7131_v50 }
0x121a   : > { %6597 = vmatpush3.bf16.msra.mxu1 %v7132_v7  ;;  %6619 = vmatpush3.bf16.msra.mxu0 %v7133_v51 }
0x121b   : > { %6598 = vmatprep.subr.bf16.mxu1 %v7134_v9  ;;  %6620 = vmatprep.subr.bf16.mxu0 %v7135_v26 }
0x121e   : > { %6599 = vmatpush3.bf16.msra.mxu1 %v7136_v56  ;;  %6621 = vmatpush3.bf16.msra.mxu0 %v7137_v52 }
0x121f   : > { %6600 = vmatprep.subr.bf16.mxu1 %v7138_v1  ;;  %6622 = vmatprep.subr.bf16.mxu0 %v7139_v2 }
0x1222   : > { %6601 = vmatpush3.bf16.msra.mxu1 %v7140_v3  ;;  %6623 = vmatpush3.bf16.msra.mxu0 %v7141_v5 }
0x1223   : > { %6602 = vmatprep.subr.bf16.mxu1 %v7142_v10  ;;  %6624 = vmatprep.subr.bf16.mxu0 %v7143_v16 }
0x1226   : > { %6603 = vmatpush3.bf16.msra.mxu1 %v7144_v47  ;;  %6625 = vmatpush3.bf16.msra.mxu0 %v7145_v58 }
0x1227   : > { %6604 = vmatprep.subr.bf16.mxu1 %v7146_v54  ;;  %6626 = vmatprep.subr.bf16.mxu0 %v7147_v60 }
0x122a   : > { %6605 = vmatpush3.bf16.msra.mxu1 %v7148_v22  ;;  %6627 = vmatpush3.bf16.msra.mxu0 %v7149_v18 }
0x122b   : > { %6606 = vmatprep.subr.bf16.mxu1 %v7150_v29  ;;  %6628 = vmatprep.subr.bf16.mxu0 %v7151_v6 }
0x122e   : > { %6607 = vmatpush3.bf16.msra.mxu1 %v7152_v37  ;;  %6629 = vmatpush3.bf16.msra.mxu0 %v7153_v41 }
0x12e4   : > { %v5605_v32 = vpop.f32.mrb[64].mxu1  ;;  %v5648_v34 = vpop.f32.mrb[40].mxu0 }
0x12e5   : > { %v5606_v49 = vadd.f32 %v5605_v32, %v5394_v30  ;;  %v5649_v61 = vadd.f32 %v5648_v34, %v5402_v21  ;;  %v5607_v55 = vpop.f32.mrb[65].mxu1  ;;  %v5650_v24 = vpop.f32.mrb[41].mxu0  ;;  %v6475_v34 = vld [vmem:[#allocation9 + $0x1] ss:$0 sm:$0xff] }
0x12e6   : > { %v5608_v46 = vadd.f32 %v5607_v55, %v5398_v4  ;;  %v5651_v31 = vadd.f32 %v5650_v24, %v5406_v11  ;;  %v5609_v53 = vpop.f32.mrb[66].mxu1  ;;  %v5652_v15 = vpop.f32.mrb[42].mxu0 }
0x12e7   : > { %v5610_v42 = vadd.f32 %v5609_v53, %v5394_v30  ;;  %v5653_v59 = vadd.f32 %v5652_v15, %v5402_v21  ;;  %v5611_v25 = vpop.f32.mrb[67].mxu1  ;;  %v5654_v19 = vpop.f32.mrb[43].mxu0  ;;  %v5657_v28 = vmax.f32 %v5606_v49, 0.0  ;;  %v5659_v39 = vmax.f32 %v5649_v61, 0.0 }
0x12e8   : > { %v5612_v63 = vadd.f32 %v5611_v25, %v5398_v4  ;;  %v5655_v17 = vadd.f32 %v5654_v19, %v5406_v11  ;;  %v5658_v20 = vmax.f32 %v5608_v46, 0.0  ;;  %v5660_v57 = vmax.f32 %v5651_v31, 0.0  ;;  %v6474_v4 = vld [vmem:[#allocation7 + $0x1] ss:$0 sm:$0xff] }
0x12e9   : > { %v5661_v23 = vmax.f32 %v5610_v42, 0.0  ;;  %v5663_v14 = vmax.f32 %v5653_v59, 0.0 }
0x12ea   : > { %v5662_v62 = vmax.f32 %v5612_v63, 0.0  ;;  %v5664_v8 = vmax.f32 %v5655_v17, 0.0 }
0x12eb   : > { %v5665_v33 = vpack.c.bf16 %v5661_v23, %v5657_v28  ;;  %v5667_v27 = vpack.c.bf16 %v5663_v14, %v5659_v39 }
0x12ec   : > { %v5666_v40 = vpack.c.bf16 %v5662_v62, %v5658_v20  ;;  %v5668_v35 = vpack.c.bf16 %v5664_v8, %v5660_v57 }
0x12ee   : > { %5966 = vmatprep.mubr.bf16.mxu1 %v5666_v40  ;;  %6007 = vmatprep.mubr.bf16.mxu0 %v5668_v35 }
0x12ef   : > { %5967 = vmatmul.mubr.bf16.vlgmr.msra.gmra.mrb[68].mxu1 %v5665_v33  ;;  %6008 = vmatmul.mubr.bf16.vlgmr.msra.gmra.mrb[44].mxu0 %v5667_v27 }
0x13c2   : > { %v6608_v36 = vpop.f32.mrb[68].mxu1  ;;  %v6630_v43 = vpop.f32.mrb[44].mxu0 }
0x13c3   : > { %v6609_v44 = vpop.f32.mrb[69].mxu1  ;;  %v6631_v45 = vpop.f32.mrb[45].mxu0 }
0x13c4   : > { %v6610_v48 = vadd.f32 %v6609_v44, %v6608_v36  ;;  %v6632_v50 = vadd.f32 %v6631_v45, %v6630_v43  ;;  %v6611_v7 = vpop.f32.mrb[70].mxu1  ;;  %v6633_v51 = vpop.f32.mrb[46].mxu0 }
0x13c5   : > { %v6612_v9 = vpop.f32.mrb[71].mxu1  ;;  %v6634_v26 = vpop.f32.mrb[47].mxu0 }
0x13c6   : > { %v5969_v56 = vadd.f32 %v6610_v48, %v6441_v0  ;;  %v6613_v52 = vadd.f32 %v6612_v9, %v6611_v7  ;;  %v6635_v1 = vadd.f32 %v6634_v26, %v6633_v51 }
0x13c8   : > { %v6010_v2 = vadd.f32 %v6632_v50, %v5969_v56  ;;  %v5972_v3 = vadd.f32 %v6613_v52, %v6441_v0 }
0x13ca   : > { %v6013_v5 = vadd.f32 %v6635_v1, %v5972_v3  ;;  %v6016_v10 = vadd.f32 %v6010_v2, %v8587_v12 }
0x13cc   : > { %6018 = vadd.xlane.f32.xlu1 %v6016_v10  ;;  %v6017_v16 = vadd.f32 %v6013_v5, %v8589_v38 }
0x13ce   : > { %6020 = vadd.xlane.f32.xlu0 %v6017_v16 }
0x1459   : > { %v6019_v47 = vpop.xlane.xlu1 %6018 }
0x145a   : > { %v6022_v58 = vmul.f32 0.0078125, %v6019_v47 }
0x145b   : > { %v6021_v54 = vpop.xlane.xlu0 %6020 }
0x145c   : > { %v6024_v60 = vsub.f32 %v6016_v10, %v6022_v58  ;;  %v6023_v22 = vmul.f32 0.0078125, %v6021_v54 }
0x145e   : > { %v6025_v18 = vsub.f32 %v6017_v16, %v6023_v22  ;;  %v6026_v29 = vmul.f32 %v6024_v60, %v6024_v60 }
0x1460   : > { %6028 = vadd.xlane.f32.xlu1 %v6026_v29  ;;  %v6027_v6 = vmul.f32 %v6025_v18, %v6025_v18 }
0x1462   : > { %6030 = vadd.xlane.f32.xlu0 %v6027_v6 }
0x14ed   : > { %v6029_v37 = vpop.xlane.xlu1 %6028 }
0x14ee   : > { %v6032_v41 = vmul.f32 0.0078125, %v6029_v37 }
0x14ef   : > { %v6031_v13 = vpop.xlane.xlu0 %6030 }
0x14f0   : > { %v6034_v30 = vadd.f32 1e-05, %v6032_v41  ;;  %v6033_v12 = vmul.f32 0.0078125, %v6031_v13 }
0x14f2   : > { %7230 = vrsqrt.f32 %v6034_v30  ;;  %v6035_v21 = vadd.f32 1e-05, %v6033_v12 }
0x14f4   : > { %7232 = vrsqrt.f32 %v6035_v21 }
0x14fc   : > { %v7231_v38 = vpop.eup %7230 }
0x14fd   : > { %v6038_v11 = vmul.f32 %v7231_v38, %v6024_v60 }
0x14fe   : > { %v7233_v32 = vpop.eup %7232 }
0x14ff   : > { %v6048_v49 = vmul.f32 %v6474_v4, %v6038_v11  ;;  %v6039_v61 = vmul.f32 %v7233_v32, %v6025_v18 }
0x1501   : > { %v6058_v55 = vadd.f32 %v6475_v34, %v6048_v49  ;;  %v6049_v24 = vmul.f32 %v6474_v4, %v6039_v61 }
0x1503   : > { %6060 = vst [vmem:[%s513_s13] sm:$0xff] %v6058_v55  ;;  %v6059_v46 = vadd.f32 %v6475_v34, %v6049_v24 }
0x1505   : > { %6061 = vst [vmem:[%s513_s13 + $0x8] sm:$0xff] %v6059_v46 }
0x1506 PF: > { %s8652_s14 = sld [smem:[#allocation13_spill]] }
0x150c   : > { %s26_s25 = sadd.s32 1, %s8652_s14  }
0x150d   : > { %p23_p6 = scmp.ge.s32.totalorder %s26_s25, 4  }
0x150f   :  { %25 = sbr.rel (!%p23_p6) target bundleno = 7 (0x7), region = 135 }
0x1516   :  { %6083 = vsyncpa [#allocation3], 1 }
0x1517   :  { %6085 = vsyncpa [#allocation3 + $0x1], 1 }
0x1518   :  { %6086 = vsyncpa [#allocation5], 1 }
0x1519   :  { %6087 = vsyncpa [#allocation8], 1 }

</bundles_post_ra>
